<compile_context>
chip_gen: v7x
topology: tpu7x:2x2x1
jax: 0.10.0
libtpu: 0.0.40
codegen_flags: <defaults>
</compile_context>

<pallas_src>
import functools

import jax
import jax.numpy as jnp
from jax.experimental import pallas as pl
from jax.experimental.pallas import tpu as pltpu


# ---------------------------------------------------------------------------
# Pallas kernels (all activations use the lane-dense (N, H, W*C) layout)
# ---------------------------------------------------------------------------

def _conv3x3_kernel(x_ref, w_ref, b_ref, scale_ref, shift_ref,
                    y_ref, sum_ref, ssq_ref, xpad_ref,
                    *, H, W, Cout, apply_act):
    """Fused (BN affine + ReLU prologue) -> 3x3 conv -> (sum, sumsq) epilogue.

    x_ref     : (1, H, W*Cin)       raw (pre-BN) or already-activated input, f32
    w_ref     : (3, W*Cin, W*Cout)  banded weights, one band per ky, bf16
    b_ref     : (1, W*Cout)         bias tiled over W
    scale_ref : (1, W*Cin)          input-BN scale tiled over W (identity if !apply_act)
    shift_ref : (1, W*Cin)          input-BN shift tiled over W
    y_ref     : (1, H, W*Cout)      raw conv output (pre-BN), f32, lane dense
    sum_ref   : (1, 1, W*Cout)      column sums of y over H
    ssq_ref   : (1, 1, W*Cout)      column sums of y*y over H
    xpad_ref  : (H+16, W*Cin)       VMEM scratch; interior lives at rows [8, 8+H)
                                    so the store is sublane-aligned; rows 7 and
                                    8+H act as the zero halo.
    """
    x = x_ref[0]                                            # (H, W*Cin) f32
    if apply_act:
        x = jnp.maximum(x * scale_ref[0, :][None, :]
                        + shift_ref[0, :][None, :], 0.0)
    # Zero-fill then write the interior at an aligned sublane offset:
    # handles padding=1 along H fully in-kernel.
    xpad_ref[...] = jnp.zeros_like(xpad_ref)
    xpad_ref[8:8 + H, :] = x

    acc = jnp.zeros((H, W * Cout), jnp.float32)
    # One matmul per ky tap with K = W*Cin; the 3 kx taps and the zero padding
    # along W are already folded into the banded weight matrix.
    for ky in range(3):
        acc = acc + jnp.dot(xpad_ref[7 + ky:7 + ky + H, :].astype(jnp.bfloat16),
                            w_ref[ky],
                            preferred_element_type=jnp.float32)
    acc = acc + b_ref[0, :][None, :]

    y_ref[...] = acc[None]
    sum_ref[...] = jnp.sum(acc, axis=0, keepdims=True)[None]
    ssq_ref[...] = jnp.sum(acc * acc, axis=0, keepdims=True)[None]


def _bn_relu_kernel(x_ref, scale_ref, shift_ref, o_ref):
    # x_ref/o_ref: (1, H, W*C) lane dense; scale/shift: (1, W*C).
    o_ref[...] = jnp.maximum(
        x_ref[...] * scale_ref[0, :][None, None, :]
        + shift_ref[0, :][None, None, :], 0.0)


def _conv1x1_kernel(x_ref, w_ref, b_ref, scale_ref, shift_ref, o_ref):
    # Fused BN+ReLU of the previous layer, then 1x1 conv (classifier head).
    a = jnp.maximum(x_ref[0] * scale_ref[0, :][None, :]
                    + shift_ref[0, :][None, :], 0.0)
    y = jnp.dot(a.astype(jnp.bfloat16), w_ref[...],
                preferred_element_type=jnp.float32)
    o_ref[...] = (y + b_ref[0, :][None, :])[None]


# ---------------------------------------------------------------------------
# Pallas-call wrappers
# ---------------------------------------------------------------------------

def _band_weights(w_hwio, W):
    """Fold the 3 kx taps + zero padding along W of a 3x3 conv into 3
    block-tridiagonal (W*Cin, W*Cout) matrices (one per ky) via kron."""
    Cin, Cout = w_hwio.shape[2], w_hwio.shape[3]
    eye_w = jnp.eye(W, dtype=jnp.float32)
    bands = []
    for ky in range(3):
        band = jnp.zeros((W * Cin, W * Cout), jnp.float32)
        for kx in range(3):
            blk = jnp.kron(eye_w, w_hwio[ky, kx])           # (W*Cin, W*Cout)
            padded = jnp.pad(blk, ((Cin, Cin), (0, 0)))
            band = band + padded[(2 - kx) * Cin:(2 - kx) * Cin + W * Cin, :]
        bands.append(band)
    return jnp.stack(bands).astype(jnp.bfloat16)            # (3, W*Cin, W*Cout)


def conv3x3_bn_stats(x, w_hwio, b, in_scale=None, in_shift=None):
    """3x3 conv (stride 1, padding 1) with an optional fused input BN+ReLU
    prologue; also returns per-channel sum / sum-of-squares of the raw output
    so BatchNorm statistics never need an extra HBM pass.

    x: NHWC (f32).  Returns (y_raw NHWC, sum_c (Cout,), sumsq_c (Cout,)).
    """
    # TODO(synk): for large H the grid should gain a row-strip axis with a
    # 1-row halo (and a per-generation VMEM budget); whole images fit VMEM at
    # the small shapes used here.
    N, H, W, Cin = x.shape
    Cout = w_hwio.shape[-1]
    apply_act = in_scale is not None

    wband = _band_weights(w_hwio, W)
    b_d = jnp.tile(b, W).reshape(1, W * Cout)
    if apply_act:
        sc_d = jnp.tile(in_scale, W).reshape(1, W * Cin)
        sh_d = jnp.tile(in_shift, W).reshape(1, W * Cin)
    else:
        sc_d = jnp.ones((1, W * Cin), jnp.float32)
        sh_d = jnp.zeros((1, W * Cin), jnp.float32)
    x_d = x.reshape(N, H, W * Cin)                          # lane-dense, free

    kernel = functools.partial(_conv3x3_kernel, H=H, W=W, Cout=Cout,
                               apply_act=apply_act)
    y_d, s_d, ss_d = pl.pallas_call(
        kernel,
        out_shape=(jax.ShapeDtypeStruct((N, H, W * Cout), jnp.float32),
                   jax.ShapeDtypeStruct((N, 1, W * Cout), jnp.float32),
                   jax.ShapeDtypeStruct((N, 1, W * Cout), jnp.float32)),
        grid=(N,),
        in_specs=[
            pl.BlockSpec((1, H, W * Cin), lambda n: (n, 0, 0)),
            pl.BlockSpec((3, W * Cin, W * Cout), lambda n: (0, 0, 0)),
            pl.BlockSpec((1, W * Cout), lambda n: (0, 0)),
            pl.BlockSpec((1, W * Cin), lambda n: (0, 0)),
            pl.BlockSpec((1, W * Cin), lambda n: (0, 0)),
        ],
        out_specs=(
            pl.BlockSpec((1, H, W * Cout), lambda n: (n, 0, 0)),
            pl.BlockSpec((1, 1, W * Cout), lambda n: (n, 0, 0)),
            pl.BlockSpec((1, 1, W * Cout), lambda n: (n, 0, 0)),
        ),
        scratch_shapes=[pltpu.VMEM((H + 16, W * Cin), jnp.float32)],
        compiler_params=pltpu.CompilerParams(
            dimension_semantics=("parallel",)),
    )(x_d, wband, b_d, sc_d, sh_d)

    # Tiny per-batch partial sums -> per-channel totals (negligible HBM traffic).
    sum_c = s_d.reshape(N, W, Cout).sum(axis=(0, 1))
    ssq_c = ss_d.reshape(N, W, Cout).sum(axis=(0, 1))
    return y_d.reshape(N, H, W, Cout), sum_c, ssq_c


def bn_relu_apply(y_raw, scale, shift):
    """Materialize BN affine + ReLU (only at block boundaries, where the
    activated tensor feeds pooling / upsampling / concat glue)."""
    N, H, W, C = y_raw.shape
    out = pl.pallas_call(
        _bn_relu_kernel,
        out_shape=jax.ShapeDtypeStruct((N, H, W * C), jnp.float32),
        grid=(N,),
        in_specs=[pl.BlockSpec((1, H, W * C), lambda n: (n, 0, 0)),
                  pl.BlockSpec((1, W * C), lambda n: (0, 0)),
                  pl.BlockSpec((1, W * C), lambda n: (0, 0))],
        out_specs=pl.BlockSpec((1, H, W * C), lambda n: (n, 0, 0)),
        compiler_params=pltpu.CompilerParams(
            dimension_semantics=("parallel",)),
    )(y_raw.reshape(N, H, W * C),
      jnp.tile(scale, W).reshape(1, W * C),
      jnp.tile(shift, W).reshape(1, W * C))
    return out.reshape(N, H, W, C)


def conv1x1_fused(y_raw, w1, b, in_scale, in_shift):
    """Final 1x1 classifier conv with the previous layer's BN+ReLU fused in."""
    N, H, W, Cin = y_raw.shape
    Cout = w1.shape[-1]
    wk = jnp.kron(jnp.eye(W, dtype=jnp.float32), w1).astype(jnp.bfloat16)
    out = pl.pallas_call(
        _conv1x1_kernel,
        out_shape=jax.ShapeDtypeStruct((N, H, W * Cout), jnp.float32),
        grid=(N,),
        in_specs=[pl.BlockSpec((1, H, W * Cin), lambda n: (n, 0, 0)),
                  pl.BlockSpec((W * Cin, W * Cout), lambda n: (0, 0)),
                  pl.BlockSpec((1, W * Cout), lambda n: (0, 0)),
                  pl.BlockSpec((1, W * Cin), lambda n: (0, 0)),
                  pl.BlockSpec((1, W * Cin), lambda n: (0, 0))],
        out_specs=pl.BlockSpec((1, H, W * Cout), lambda n: (n, 0, 0)),
        compiler_params=pltpu.CompilerParams(
            dimension_semantics=("parallel",)),
    )(y_raw.reshape(N, H, W * Cin), wk,
      jnp.tile(b, W).reshape(1, W * Cout),
      jnp.tile(in_scale, W).reshape(1, W * Cin),
      jnp.tile(in_shift, W).reshape(1, W * Cin))
    return out.reshape(N, H, W, Cout)


# ---------------------------------------------------------------------------
# Glue ops (plain JAX)
# TODO(synk): avg-pool / bilinear upsample / concat glue is not fused into the
# neighbouring conv kernels; at these small shapes it is a minor cost.
# ---------------------------------------------------------------------------

def avg_pool_2x2(x):
    """AvgPool2d(kernel=2, stride=2, padding=0, ceil_mode=True) for even H/W."""
    N, H, W, C = x.shape
    # TODO(synk): ceil_mode partial windows for odd spatial sizes not handled.
    assert H % 2 == 0 and W % 2 == 0
    return x.reshape(N, H // 2, 2, W // 2, 2, C).mean(axis=(2, 4))


def upsample_bilinear_2x_align_corners(x):
    """F.interpolate(mode='bilinear', scale_factor=2, align_corners=True)."""
    N, H, W, C = x.shape
    Ho, Wo = 2 * H, 2 * W

    def axis_coords(n_in, n_out):
        if n_in == 1:
            idx = jnp.zeros((n_out,), jnp.int32)
            return idx, idx, jnp.zeros((n_out,), jnp.float32)
        src = jnp.arange(n_out, dtype=jnp.float32) * (n_in - 1) / (n_out - 1)
        lo = jnp.floor(src).astype(jnp.int32)
        hi = jnp.minimum(lo + 1, n_in - 1)
        return lo, hi, src - lo.astype(jnp.float32)

    y0, y1, fy = axis_coords(H, Ho)
    x0, x1, fx = axis_coords(W, Wo)
    rows = (x[:, y0, :, :] * (1.0 - fy)[None, :, None, None]
            + x[:, y1, :, :] * fy[None, :, None, None])
    out = (rows[:, :, x0, :] * (1.0 - fx)[None, None, :, None]
           + rows[:, :, x1, :] * fx[None, None, :, None])
    return out


# ---------------------------------------------------------------------------
# Parameter init (deterministic, mirrors init_weights semantics)
# ---------------------------------------------------------------------------

def _conv_init(key, cin, cout, k):
    wk, bk = jax.random.split(key)
    fan_in = cin * k * k
    std = (2.0 / fan_in) ** 0.5  # kaiming_normal_, mode='fan_in', relu
    w = jax.random.normal(wk, (k, k, cin, cout), jnp.float32) * std
    b = jax.random.truncated_normal(bk, -2.0, 2.0, (cout,), jnp.float32) * 0.001
    return {"w": w, "b": b}


def _bn_init(c):
    return {"gamma": jnp.ones((c,), jnp.float32),
            "beta": jnp.zeros((c,), jnp.float32)}


def _conv_block_init(key, cin, cout):
    keys = jax.random.split(key, 3)
    convs, bns = [], []
    c = cin
    for i in range(3):
        convs.append(_conv_init(keys[i], c, cout, 3))
        bns.append(_bn_init(cout))
        c = cout
    # NOTE: no Python bools (e.g. `pool`) are stored in the traced pytree;
    # pooling is a static structural property derived from the block index.
    return {"convs": convs, "bns": bns}


def init_unet_params(key, input_channels, num_classes, num_filters):
    params = {"down": [], "up": []}
    out = input_channels
    for i in range(len(num_filters)):
        cin = input_channels if i == 0 else out
        out = num_filters[i]
        key, sub = jax.random.split(key)
        params["down"].append(_conv_block_init(sub, cin, out))
    n = len(num_filters) - 2
    for i in range(n, -1, -1):
        cin = out + num_filters[i]
        out = num_filters[i]
        key, sub = jax.random.split(key)
        # bilinear=True -> no transposed-conv weights, just the conv block
        params["up"].append({"conv_block": _conv_block_init(sub, cin, out)})
    key, sub = jax.random.split(key)
    params["last"] = _conv_init(sub, out, num_classes, 1)
    return params


# ---------------------------------------------------------------------------
# Forward pass
# ---------------------------------------------------------------------------

def _bn_affine(sum_c, ssq_c, count, gamma, beta, eps=1e-5):
    mean = sum_c / count
    var = jnp.maximum(ssq_c / count - mean * mean, 0.0)   # biased (training-mode)
    scale = gamma * jax.lax.rsqrt(var + eps)
    shift = beta - mean * scale
    return scale, shift


def conv_block_raw(x_act, p):
    """Three fused conv layers. Returns the *raw* third conv output plus its
    BN scale/shift so the consumer can fuse the last BN+ReLU as well."""
    N, H, W, _ = x_act.shape
    count = float(N * H * W)
    y = x_act
    sc = sh = None
    for conv, bn in zip(p["convs"], p["bns"]):
        y, s_c, ss_c = conv3x3_bn_stats(y, conv["w"], conv["b"],
                                        in_scale=sc, in_shift=sh)
        sc, sh = _bn_affine(s_c, ss_c, count, bn["gamma"], bn["beta"])
    return y, sc, sh


def down_block_apply(x, p, pool):
    if pool:                                   # static Python bool (structural)
        x = avg_pool_2x2(x)
    y, sc, sh = conv_block_raw(x, p)
    return bn_relu_apply(y, sc, sh)


def up_block_apply(x, bridge, p, materialize=True):
    up = upsample_bilinear_2x_align_corners(x)
    dY = bridge.shape[1] - up.shape[1]
    dX = bridge.shape[2] - up.shape[2]
    up = jnp.pad(up, ((0, 0),
                      (dY // 2, dY - dY // 2),
                      (dX // 2, dX - dX // 2),
                      (0, 0)))
    assert up.shape[2] == bridge.shape[2]
    out = jnp.concatenate([up, bridge], axis=-1)   # torch.cat([up, bridge], 1)
    y, sc, sh = conv_block_raw(out, p["conv_block"])
    if materialize:
        return bn_relu_apply(y, sc, sh)
    return y, sc, sh


def unet_forward(params, x_nchw, val=False):
    x = jnp.transpose(x_nchw, (0, 2, 3, 1))        # NCHW -> NHWC
    blocks = []
    n_down = len(params["down"])
    for i, p in enumerate(params["down"]):
        x = down_block_apply(x, p, pool=(i != 0))  # pool derived from index, not traced
        if i != n_down - 1:
            blocks.append(x)
    n_up = len(params["up"])
    y = sc = sh = None
    for i, p in enumerate(params["up"]):
        if i == n_up - 1:
            # Last up block: keep the raw conv output and fuse its BN+ReLU
            # into the 1x1 classifier head.
            y, sc, sh = up_block_apply(x, blocks[-i - 1], p, materialize=False)
        else:
            x = up_block_apply(x, blocks[-i - 1], p, materialize=True)
    # val=True only stashes activation maps in the reference; no output effect.
    out = conv1x1_fused(y, params["last"]["w"][0, 0], params["last"]["b"], sc, sh)
    return jnp.transpose(out, (0, 3, 1, 2))        # NHWC -> NCHW


# ---------------------------------------------------------------------------
# Main
# ---------------------------------------------------------------------------

if __name__ == "__main__":
    key = jax.random.PRNGKey(0)
    input_channels = 3
    num_classes = 2
    num_filters = [8, 16, 32]
    batch, H, W = 2, 16, 16

    pkey, xkey = jax.random.split(key)
    params = init_unet_params(pkey, input_channels, num_classes, num_filters)
    x = jax.random.normal(xkey, (batch, input_channels, H, W), jnp.float32)

    fwd = jax.jit(unet_forward)
    out = jax.block_until_ready(fwd(params, x))
    assert out.shape == (batch, num_classes, H, W), out.shape
    assert jnp.all(jnp.isfinite(out))
    print("KERNEL_OK")
</pallas_src>

<mosaic_0001>
module attributes {stable_mosaic.version = 11 : i64} {
  func.func @_conv3x3_kernel(%arg0: i32, %arg1: memref<1x16x48xf32, #tpu.memory_space<vmem>>, %arg2: memref<3x48x128xbf16, #tpu.memory_space<vmem>>, %arg3: memref<1x128xf32, #tpu.memory_space<vmem>>, %arg4: memref<1x48xf32, #tpu.memory_space<vmem>>, %arg5: memref<1x48xf32, #tpu.memory_space<vmem>>, %arg6: memref<1x16x128xf32, #tpu.memory_space<vmem>>, %arg7: memref<1x1x128xf32, #tpu.memory_space<vmem>>, %arg8: memref<1x1x128xf32, #tpu.memory_space<vmem>>, %arg9: memref<32x48xf32, #tpu.memory_space<vmem>>) attributes {dimension_semantics = [#tpu.dimension_semantics<parallel>], iteration_bounds = array<i64: 2>, scalar_prefetch = 0 : i64, scratch_operands = 1 : i64, tpu.core_type = #tpu.core_type<tc>, window_params = [{transform_indices = @transform_0, window_bounds = array<i64: 1, 16, 48>}, {pipeline_mode = #tpu.pipeline_mode<synchronous>, transform_indices = @transform_1, window_bounds = array<i64: 3, 48, 128>}, {pipeline_mode = #tpu.pipeline_mode<synchronous>, transform_indices = @transform_2, window_bounds = array<i64: 1, 128>}, {pipeline_mode = #tpu.pipeline_mode<synchronous>, transform_indices = @transform_3, window_bounds = array<i64: 1, 48>}, {pipeline_mode = #tpu.pipeline_mode<synchronous>, transform_indices = @transform_4, window_bounds = array<i64: 1, 48>}, {transform_indices = @transform_5, window_bounds = array<i64: 1, 16, 128>}, {transform_indices = @transform_6, window_bounds = array<i64: 1, 1, 128>}, {transform_indices = @transform_7, window_bounds = array<i64: 1, 1, 128>}]} {
    %c0 = arith.constant 0 : index
    %c0_0 = arith.constant 0 : index
    %c0_1 = arith.constant 0 : index
    %0 = vector.load %arg1[%c0, %c0_0, %c0_1] : memref<1x16x48xf32, #tpu.memory_space<vmem>>, vector<1x16x48xf32>
    %1 = vector.shape_cast %0 : vector<1x16x48xf32> to vector<16x48xf32>
    %cst = arith.constant 0.000000e+00 : f32
    %2 = vector.broadcast %cst : f32 to vector<32x48xf32>
    %c0_2 = arith.constant 0 : index
    %c0_3 = arith.constant 0 : index
    %3 = vector.load %arg9[%c0_2, %c0_3] : memref<32x48xf32, #tpu.memory_space<vmem>>, vector<32x48xf32>
    tpu.vector_store %arg9[%c0_2, %c0_3], %2 {strides = array<i32>} : memref<32x48xf32, #tpu.memory_space<vmem>>, vector<32x48xf32>,
    %c8 = arith.constant 8 : index
    %c0_4 = arith.constant 0 : index
    %4 = vector.load %arg9[%c8, %c0_4] : memref<32x48xf32, #tpu.memory_space<vmem>>, vector<16x48xf32>
    tpu.vector_store %arg9[%c8, %c0_4], %1 {strides = array<i32>} : memref<32x48xf32, #tpu.memory_space<vmem>>, vector<16x48xf32>,
    %cst_5 = arith.constant 0.000000e+00 : f32
    %5 = vector.broadcast %cst_5 : f32 to vector<16x128xf32>
    %c7 = arith.constant 7 : index
    %c0_6 = arith.constant 0 : index
    %6 = vector.load %arg9[%c7, %c0_6] : memref<32x48xf32, #tpu.memory_space<vmem>>, vector<16x48xf32>
    %7 = arith.truncf %6 : vector<16x48xf32> to vector<16x48xbf16>
    %c0_7 = arith.constant 0 : index
    %c0_8 = arith.constant 0 : index
    %c0_9 = arith.constant 0 : index
    %8 = vector.load %arg2[%c0_7, %c0_8, %c0_9] : memref<3x48x128xbf16, #tpu.memory_space<vmem>>, vector<1x48x128xbf16>
    %9 = vector.shape_cast %8 : vector<1x48x128xbf16> to vector<48x128xbf16>
    %cst_10 = arith.constant dense<0.000000e+00> : vector<16x128xf32>
    %10 = tpu.matmul %7, %9, %cst_10 {dimension_numbers = #tpu.dot_dimension_numbers<[1], [0], [0], [1], [0, 0, 1, 1], [], []>} : vector<16x48xbf16>, vector<48x128xbf16>, vector<16x128xf32> -> vector<16x128xf32>
    %11 = arith.addf %5, %10 : vector<16x128xf32>
    %c8_11 = arith.constant 8 : index
    %c0_12 = arith.constant 0 : index
    %12 = vector.load %arg9[%c8_11, %c0_12] : memref<32x48xf32, #tpu.memory_space<vmem>>, vector<16x48xf32>
    %13 = arith.truncf %12 : vector<16x48xf32> to vector<16x48xbf16>
    %c1 = arith.constant 1 : index
    %c0_13 = arith.constant 0 : index
    %c0_14 = arith.constant 0 : index
    %14 = vector.load %arg2[%c1, %c0_13, %c0_14] : memref<3x48x128xbf16, #tpu.memory_space<vmem>>, vector<1x48x128xbf16>
    %15 = vector.shape_cast %14 : vector<1x48x128xbf16> to vector<48x128xbf16>
    %cst_15 = arith.constant dense<0.000000e+00> : vector<16x128xf32>
    %16 = tpu.matmul %13, %15, %cst_15 {dimension_numbers = #tpu.dot_dimension_numbers<[1], [0], [0], [1], [0, 0, 1, 1], [], []>} : vector<16x48xbf16>, vector<48x128xbf16>, vector<16x128xf32> -> vector<16x128xf32>
    %17 = arith.addf %11, %16 : vector<16x128xf32>
    %c9 = arith.constant 9 : index
    %c0_16 = arith.constant 0 : index
    %18 = vector.load %arg9[%c9, %c0_16] : memref<32x48xf32, #tpu.memory_space<vmem>>, vector<16x48xf32>
    %19 = arith.truncf %18 : vector<16x48xf32> to vector<16x48xbf16>
    %c2 = arith.constant 2 : index
    %c0_17 = arith.constant 0 : index
    %c0_18 = arith.constant 0 : index
    %20 = vector.load %arg2[%c2, %c0_17, %c0_18] : memref<3x48x128xbf16, #tpu.memory_space<vmem>>, vector<1x48x128xbf16>
    %21 = vector.shape_cast %20 : vector<1x48x128xbf16> to vector<48x128xbf16>
    %cst_19 = arith.constant dense<0.000000e+00> : vector<16x128xf32>
    %22 = tpu.matmul %19, %21, %cst_19 {dimension_numbers = #tpu.dot_dimension_numbers<[1], [0], [0], [1], [0, 0, 1, 1], [], []>} : vector<16x48xbf16>, vector<48x128xbf16>, vector<16x128xf32> -> vector<16x128xf32>
    %23 = arith.addf %17, %22 : vector<16x128xf32>
    %c0_20 = arith.constant 0 : index
    %c0_21 = arith.constant 0 : index
    %24 = vector.load %arg3[%c0_20, %c0_21] : memref<1x128xf32, #tpu.memory_space<vmem>>, vector<1x128xf32>
    %25 = vector.shape_cast %24 : vector<1x128xf32> to vector<128xf32>
    %26 = vector.shape_cast %25 : vector<128xf32> to vector<1x128xf32>
    %27 = vector.broadcast %26 : vector<1x128xf32> to vector<16x128xf32>
    %28 = arith.addf %23, %27 : vector<16x128xf32>
    %29 = vector.shape_cast %28 : vector<16x128xf32> to vector<1x16x128xf32>
    %c0_22 = arith.constant 0 : index
    %c0_23 = arith.constant 0 : index
    %c0_24 = arith.constant 0 : index
    %30 = vector.load %arg6[%c0_22, %c0_23, %c0_24] : memref<1x16x128xf32, #tpu.memory_space<vmem>>, vector<1x16x128xf32>
    tpu.vector_store %arg6[%c0_22, %c0_23, %c0_24], %29 {strides = array<i32>} : memref<1x16x128xf32, #tpu.memory_space<vmem>>, vector<1x16x128xf32>,
    %cst_25 = arith.constant dense<0.000000e+00> : vector<128xf32>
    %31 = vector.multi_reduction <add>, %28, %cst_25 [0] : vector<16x128xf32> to vector<128xf32>
    %32 = vector.shape_cast %31 : vector<128xf32> to vector<1x128xf32>
    %33 = vector.shape_cast %32 : vector<1x128xf32> to vector<1x1x128xf32>
    %c0_26 = arith.constant 0 : index
    %c0_27 = arith.constant 0 : index
    %c0_28 = arith.constant 0 : index
    %34 = vector.load %arg7[%c0_26, %c0_27, %c0_28] : memref<1x1x128xf32, #tpu.memory_space<vmem>>, vector<1x1x128xf32>
    tpu.vector_store %arg7[%c0_26, %c0_27, %c0_28], %33 {strides = array<i32>} : memref<1x1x128xf32, #tpu.memory_space<vmem>>, vector<1x1x128xf32>,
    %35 = arith.mulf %28, %28 : vector<16x128xf32>
    %cst_29 = arith.constant dense<0.000000e+00> : vector<128xf32>
    %36 = vector.multi_reduction <add>, %35, %cst_29 [0] : vector<16x128xf32> to vector<128xf32>
    %37 = vector.shape_cast %36 : vector<128xf32> to vector<1x128xf32>
    %38 = vector.shape_cast %37 : vector<1x128xf32> to vector<1x1x128xf32>
    %c0_30 = arith.constant 0 : index
    %c0_31 = arith.constant 0 : index
    %c0_32 = arith.constant 0 : index
    %39 = vector.load %arg8[%c0_30, %c0_31, %c0_32] : memref<1x1x128xf32, #tpu.memory_space<vmem>>, vector<1x1x128xf32>
    tpu.vector_store %arg8[%c0_30, %c0_31, %c0_32], %38 {strides = array<i32>} : memref<1x1x128xf32, #tpu.memory_space<vmem>>, vector<1x1x128xf32>,
    return
  }
  func.func @transform_0(%arg0: i32) -> (i32, i32, i32) {
    %c0_i32 = arith.constant 0 : i32
    %c0_i32_0 = arith.constant 0 : i32
    %c0_i32_1 = arith.constant 0 : i32
    return %arg0, %c0_i32, %c0_i32_0 : i32, i32, i32
  }
  func.func @transform_1(%arg0: i32) -> (i32, i32, i32) {
    %c0_i32 = arith.constant 0 : i32
    %c0_i32_0 = arith.constant 0 : i32
    %c0_i32_1 = arith.constant 0 : i32
    %c0_i32_2 = arith.constant 0 : i32
    return %c0_i32, %c0_i32_0, %c0_i32_1 : i32, i32, i32
  }
  func.func @transform_2(%arg0: i32) -> (i32, i32) {
    %c0_i32 = arith.constant 0 : i32
    %c0_i32_0 = arith.constant 0 : i32
    %c0_i32_1 = arith.constant 0 : i32
    return %c0_i32, %c0_i32_0 : i32, i32
  }
  func.func @transform_3(%arg0: i32) -> (i32, i32) {
    %c0_i32 = arith.constant 0 : i32
    %c0_i32_0 = arith.constant 0 : i32
    %c0_i32_1 = arith.constant 0 : i32
    return %c0_i32, %c0_i32_0 : i32, i32
  }
  func.func @transform_4(%arg0: i32) -> (i32, i32) {
    %c0_i32 = arith.constant 0 : i32
    %c0_i32_0 = arith.constant 0 : i32
    %c0_i32_1 = arith.constant 0 : i32
    return %c0_i32, %c0_i32_0 : i32, i32
  }
  func.func @transform_5(%arg0: i32) -> (i32, i32, i32) {
    %c0_i32 = arith.constant 0 : i32
    %c0_i32_0 = arith.constant 0 : i32
    %c0_i32_1 = arith.constant 0 : i32
    return %arg0, %c0_i32, %c0_i32_0 : i32, i32, i32
  }
  func.func @transform_6(%arg0: i32) -> (i32, i32, i32) {
    %c0_i32 = arith.constant 0 : i32
    %c0_i32_0 = arith.constant 0 : i32
    %c0_i32_1 = arith.constant 0 : i32
    return %arg0, %c0_i32, %c0_i32_0 : i32, i32, i32
  }
  func.func @transform_7(%arg0: i32) -> (i32, i32, i32) {
    %c0_i32 = arith.constant 0 : i32
    %c0_i32_0 = arith.constant 0 : i32
    %c0_i32_1 = arith.constant 0 : i32
    return %arg0, %c0_i32, %c0_i32_0 : i32, i32, i32
  }
}

module attributes {stable_mosaic.version = 11 : i64} {
  func.func @_conv3x3_kernel(%arg0: i32, %arg1: memref<1x16x128xf32, #tpu.memory_space<vmem>>, %arg2: memref<3x128x128xbf16, #tpu.memory_space<vmem>>, %arg3: memref<1x128xf32, #tpu.memory_space<vmem>>, %arg4: memref<1x128xf32, #tpu.memory_space<vmem>>, %arg5: memref<1x128xf32, #tpu.memory_space<vmem>>, %arg6: memref<1x16x128xf32, #tpu.memory_space<vmem>>, %arg7: memref<1x1x128xf32, #tpu.memory_space<vmem>>, %arg8: memref<1x1x128xf32, #tpu.memory_space<vmem>>, %arg9: memref<32x128xf32, #tpu.memory_space<vmem>>) attributes {dimension_semantics = [#tpu.dimension_semantics<parallel>], iteration_bounds = array<i64: 2>, scalar_prefetch = 0 : i64, scratch_operands = 1 : i64, tpu.core_type = #tpu.core_type<tc>, window_params = [{transform_indices = @transform_0, window_bounds = array<i64: 1, 16, 128>}, {pipeline_mode = #tpu.pipeline_mode<synchronous>, transform_indices = @transform_1, window_bounds = array<i64: 3, 128, 128>}, {pipeline_mode = #tpu.pipeline_mode<synchronous>, transform_indices = @transform_2, window_bounds = array<i64: 1, 128>}, {pipeline_mode = #tpu.pipeline_mode<synchronous>, transform_indices = @transform_3, window_bounds = array<i64: 1, 128>}, {pipeline_mode = #tpu.pipeline_mode<synchronous>, transform_indices = @transform_4, window_bounds = array<i64: 1, 128>}, {transform_indices = @transform_5, window_bounds = array<i64: 1, 16, 128>}, {transform_indices = @transform_6, window_bounds = array<i64: 1, 1, 128>}, {transform_indices = @transform_7, window_bounds = array<i64: 1, 1, 128>}]} {
    %c0 = arith.constant 0 : index
    %c0_0 = arith.constant 0 : index
    %c0_1 = arith.constant 0 : index
    %0 = vector.load %arg1[%c0, %c0_0, %c0_1] : memref<1x16x128xf32, #tpu.memory_space<vmem>>, vector<1x16x128xf32>
    %1 = vector.shape_cast %0 : vector<1x16x128xf32> to vector<16x128xf32>
    %c0_2 = arith.constant 0 : index
    %c0_3 = arith.constant 0 : index
    %2 = vector.load %arg4[%c0_2, %c0_3] : memref<1x128xf32, #tpu.memory_space<vmem>>, vector<1x128xf32>
    %3 = vector.shape_cast %2 : vector<1x128xf32> to vector<128xf32>
    %4 = vector.shape_cast %3 : vector<128xf32> to vector<1x128xf32>
    %5 = vector.broadcast %4 : vector<1x128xf32> to vector<16x128xf32>
    %6 = arith.mulf %1, %5 : vector<16x128xf32>
    %c0_4 = arith.constant 0 : index
    %c0_5 = arith.constant 0 : index
    %7 = vector.load %arg5[%c0_4, %c0_5] : memref<1x128xf32, #tpu.memory_space<vmem>>, vector<1x128xf32>
    %8 = vector.shape_cast %7 : vector<1x128xf32> to vector<128xf32>
    %9 = vector.shape_cast %8 : vector<128xf32> to vector<1x128xf32>
    %10 = vector.broadcast %9 : vector<1x128xf32> to vector<16x128xf32>
    %11 = arith.addf %6, %10 : vector<16x128xf32>
    %cst = arith.constant 0.000000e+00 : f32
    %12 = vector.broadcast %cst : f32 to vector<16x128xf32>
    %13 = arith.maximumf %11, %12 : vector<16x128xf32>
    %cst_6 = arith.constant 0.000000e+00 : f32
    %14 = vector.broadcast %cst_6 : f32 to vector<32x128xf32>
    %c0_7 = arith.constant 0 : index
    %c0_8 = arith.constant 0 : index
    %15 = vector.load %arg9[%c0_7, %c0_8] : memref<32x128xf32, #tpu.memory_space<vmem>>, vector<32x128xf32>
    tpu.vector_store %arg9[%c0_7, %c0_8], %14 {strides = array<i32>} : memref<32x128xf32, #tpu.memory_space<vmem>>, vector<32x128xf32>,
    %c8 = arith.constant 8 : index
    %c0_9 = arith.constant 0 : index
    %16 = vector.load %arg9[%c8, %c0_9] : memref<32x128xf32, #tpu.memory_space<vmem>>, vector<16x128xf32>
    tpu.vector_store %arg9[%c8, %c0_9], %13 {strides = array<i32>} : memref<32x128xf32, #tpu.memory_space<vmem>>, vector<16x128xf32>,
    %cst_10 = arith.constant 0.000000e+00 : f32
    %17 = vector.broadcast %cst_10 : f32 to vector<16x128xf32>
    %c7 = arith.constant 7 : index
    %c0_11 = arith.constant 0 : index
    %18 = vector.load %arg9[%c7, %c0_11] : memref<32x128xf32, #tpu.memory_space<vmem>>, vector<16x128xf32>
    %19 = arith.truncf %18 : vector<16x128xf32> to vector<16x128xbf16>
    %c0_12 = arith.constant 0 : index
    %c0_13 = arith.constant 0 : index
    %c0_14 = arith.constant 0 : index
    %20 = vector.load %arg2[%c0_12, %c0_13, %c0_14] : memref<3x128x128xbf16, #tpu.memory_space<vmem>>, vector<1x128x128xbf16>
    %21 = vector.shape_cast %20 : vector<1x128x128xbf16> to vector<128x128xbf16>
    %cst_15 = arith.constant dense<0.000000e+00> : vector<16x128xf32>
    %22 = tpu.matmul %19, %21, %cst_15 {dimension_numbers = #tpu.dot_dimension_numbers<[1], [0], [0], [1], [0, 0, 1, 1], [], []>} : vector<16x128xbf16>, vector<128x128xbf16>, vector<16x128xf32> -> vector<16x128xf32>
    %23 = arith.addf %17, %22 : vector<16x128xf32>
    %c8_16 = arith.constant 8 : index
    %c0_17 = arith.constant 0 : index
    %24 = vector.load %arg9[%c8_16, %c0_17] : memref<32x128xf32, #tpu.memory_space<vmem>>, vector<16x128xf32>
    %25 = arith.truncf %24 : vector<16x128xf32> to vector<16x128xbf16>
    %c1 = arith.constant 1 : index
    %c0_18 = arith.constant 0 : index
    %c0_19 = arith.constant 0 : index
    %26 = vector.load %arg2[%c1, %c0_18, %c0_19] : memref<3x128x128xbf16, #tpu.memory_space<vmem>>, vector<1x128x128xbf16>
    %27 = vector.shape_cast %26 : vector<1x128x128xbf16> to vector<128x128xbf16>
    %cst_20 = arith.constant dense<0.000000e+00> : vector<16x128xf32>
    %28 = tpu.matmul %25, %27, %cst_20 {dimension_numbers = #tpu.dot_dimension_numbers<[1], [0], [0], [1], [0, 0, 1, 1], [], []>} : vector<16x128xbf16>, vector<128x128xbf16>, vector<16x128xf32> -> vector<16x128xf32>
    %29 = arith.addf %23, %28 : vector<16x128xf32>
    %c9 = arith.constant 9 : index
    %c0_21 = arith.constant 0 : index
    %30 = vector.load %arg9[%c9, %c0_21] : memref<32x128xf32, #tpu.memory_space<vmem>>, vector<16x128xf32>
    %31 = arith.truncf %30 : vector<16x128xf32> to vector<16x128xbf16>
    %c2 = arith.constant 2 : index
    %c0_22 = arith.constant 0 : index
    %c0_23 = arith.constant 0 : index
    %32 = vector.load %arg2[%c2, %c0_22, %c0_23] : memref<3x128x128xbf16, #tpu.memory_space<vmem>>, vector<1x128x128xbf16>
    %33 = vector.shape_cast %32 : vector<1x128x128xbf16> to vector<128x128xbf16>
    %cst_24 = arith.constant dense<0.000000e+00> : vector<16x128xf32>
    %34 = tpu.matmul %31, %33, %cst_24 {dimension_numbers = #tpu.dot_dimension_numbers<[1], [0], [0], [1], [0, 0, 1, 1], [], []>} : vector<16x128xbf16>, vector<128x128xbf16>, vector<16x128xf32> -> vector<16x128xf32>
    %35 = arith.addf %29, %34 : vector<16x128xf32>
    %c0_25 = arith.constant 0 : index
    %c0_26 = arith.constant 0 : index
    %36 = vector.load %arg3[%c0_25, %c0_26] : memref<1x128xf32, #tpu.memory_space<vmem>>, vector<1x128xf32>
    %37 = vector.shape_cast %36 : vector<1x128xf32> to vector<128xf32>
    %38 = vector.shape_cast %37 : vector<128xf32> to vector<1x128xf32>
    %39 = vector.broadcast %38 : vector<1x128xf32> to vector<16x128xf32>
    %40 = arith.addf %35, %39 : vector<16x128xf32>
    %41 = vector.shape_cast %40 : vector<16x128xf32> to vector<1x16x128xf32>
    %c0_27 = arith.constant 0 : index
    %c0_28 = arith.constant 0 : index
    %c0_29 = arith.constant 0 : index
    %42 = vector.load %arg6[%c0_27, %c0_28, %c0_29] : memref<1x16x128xf32, #tpu.memory_space<vmem>>, vector<1x16x128xf32>
    tpu.vector_store %arg6[%c0_27, %c0_28, %c0_29], %41 {strides = array<i32>} : memref<1x16x128xf32, #tpu.memory_space<vmem>>, vector<1x16x128xf32>,
    %cst_30 = arith.constant dense<0.000000e+00> : vector<128xf32>
    %43 = vector.multi_reduction <add>, %40, %cst_30 [0] : vector<16x128xf32> to vector<128xf32>
    %44 = vector.shape_cast %43 : vector<128xf32> to vector<1x128xf32>
    %45 = vector.shape_cast %44 : vector<1x128xf32> to vector<1x1x128xf32>
    %c0_31 = arith.constant 0 : index
    %c0_32 = arith.constant 0 : index
    %c0_33 = arith.constant 0 : index
    %46 = vector.load %arg7[%c0_31, %c0_32, %c0_33] : memref<1x1x128xf32, #tpu.memory_space<vmem>>, vector<1x1x128xf32>
    tpu.vector_store %arg7[%c0_31, %c0_32, %c0_33], %45 {strides = array<i32>} : memref<1x1x128xf32, #tpu.memory_space<vmem>>, vector<1x1x128xf32>,
    %47 = arith.mulf %40, %40 : vector<16x128xf32>
    %cst_34 = arith.constant dense<0.000000e+00> : vector<128xf32>
    %48 = vector.multi_reduction <add>, %47, %cst_34 [0] : vector<16x128xf32> to vector<128xf32>
    %49 = vector.shape_cast %48 : vector<128xf32> to vector<1x128xf32>
    %50 = vector.shape_cast %49 : vector<1x128xf32> to vector<1x1x128xf32>
    %c0_35 = arith.constant 0 : index
    %c0_36 = arith.constant 0 : index
    %c0_37 = arith.constant 0 : index
    %51 = vector.load %arg8[%c0_35, %c0_36, %c0_37] : memref<1x1x128xf32, #tpu.memory_space<vmem>>, vector<1x1x128xf32>
    tpu.vector_store %arg8[%c0_35, %c0_36, %c0_37], %50 {strides = array<i32>} : memref<1x1x128xf32, #tpu.memory_space<vmem>>, vector<1x1x128xf32>,
    return
  }
  func.func @transform_0(%arg0: i32) -> (i32, i32, i32) {
    %c0_i32 = arith.constant 0 : i32
    %c0_i32_0 = arith.constant 0 : i32
    %c0_i32_1 = arith.constant 0 : i32
    return %arg0, %c0_i32, %c0_i32_0 : i32, i32, i32
  }
  func.func @transform_1(%arg0: i32) -> (i32, i32, i32) {
    %c0_i32 = arith.constant 0 : i32
    %c0_i32_0 = arith.constant 0 : i32
    %c0_i32_1 = arith.constant 0 : i32
    %c0_i32_2 = arith.constant 0 : i32
    return %c0_i32, %c0_i32_0, %c0_i32_1 : i32, i32, i32
  }
  func.func @transform_2(%arg0: i32) -> (i32, i32) {
    %c0_i32 = arith.constant 0 : i32
    %c0_i32_0 = arith.constant 0 : i32
    %c0_i32_1 = arith.constant 0 : i32
    return %c0_i32, %c0_i32_0 : i32, i32
  }
  func.func @transform_3(%arg0: i32) -> (i32, i32) {
    %c0_i32 = arith.constant 0 : i32
    %c0_i32_0 = arith.constant 0 : i32
    %c0_i32_1 = arith.constant 0 : i32
    return %c0_i32, %c0_i32_0 : i32, i32
  }
  func.func @transform_4(%arg0: i32) -> (i32, i32) {
    %c0_i32 = arith.constant 0 : i32
    %c0_i32_0 = arith.constant 0 : i32
    %c0_i32_1 = arith.constant 0 : i32
    return %c0_i32, %c0_i32_0 : i32, i32
  }
  func.func @transform_5(%arg0: i32) -> (i32, i32, i32) {
    %c0_i32 = arith.constant 0 : i32
    %c0_i32_0 = arith.constant 0 : i32
    %c0_i32_1 = arith.constant 0 : i32
    return %arg0, %c0_i32, %c0_i32_0 : i32, i32, i32
  }
  func.func @transform_6(%arg0: i32) -> (i32, i32, i32) {
    %c0_i32 = arith.constant 0 : i32
    %c0_i32_0 = arith.constant 0 : i32
    %c0_i32_1 = arith.constant 0 : i32
    return %arg0, %c0_i32, %c0_i32_0 : i32, i32, i32
  }
  func.func @transform_7(%arg0: i32) -> (i32, i32, i32) {
    %c0_i32 = arith.constant 0 : i32
    %c0_i32_0 = arith.constant 0 : i32
    %c0_i32_1 = arith.constant 0 : i32
    return %arg0, %c0_i32, %c0_i32_0 : i32, i32, i32
  }
}

module attributes {stable_mosaic.version = 11 : i64} {
  func.func @_bn_relu_kernel(%arg0: i32, %arg1: memref<1x16x128xf32, #tpu.memory_space<vmem>>, %arg2: memref<1x128xf32, #tpu.memory_space<vmem>>, %arg3: memref<1x128xf32, #tpu.memory_space<vmem>>, %arg4: memref<1x16x128xf32, #tpu.memory_space<vmem>>) attributes {dimension_semantics = [#tpu.dimension_semantics<parallel>], iteration_bounds = array<i64: 2>, scalar_prefetch = 0 : i64, scratch_operands = 0 : i64, tpu.core_type = #tpu.core_type<tc>, window_params = [{transform_indices = @transform_0, window_bounds = array<i64: 1, 16, 128>}, {pipeline_mode = #tpu.pipeline_mode<synchronous>, transform_indices = @transform_1, window_bounds = array<i64: 1, 128>}, {pipeline_mode = #tpu.pipeline_mode<synchronous>, transform_indices = @transform_2, window_bounds = array<i64: 1, 128>}, {transform_indices = @transform_3, window_bounds = array<i64: 1, 16, 128>}]} {
    %c0 = arith.constant 0 : index
    %c0_0 = arith.constant 0 : index
    %c0_1 = arith.constant 0 : index
    %0 = vector.load %arg1[%c0, %c0_0, %c0_1] : memref<1x16x128xf32, #tpu.memory_space<vmem>>, vector<1x16x128xf32>
    %c0_2 = arith.constant 0 : index
    %c0_3 = arith.constant 0 : index
    %1 = vector.load %arg2[%c0_2, %c0_3] : memref<1x128xf32, #tpu.memory_space<vmem>>, vector<1x128xf32>
    %2 = vector.shape_cast %1 : vector<1x128xf32> to vector<128xf32>
    %3 = vector.shape_cast %2 : vector<128xf32> to vector<1x1x128xf32>
    %4 = vector.broadcast %3 : vector<1x1x128xf32> to vector<1x16x128xf32>
    %5 = arith.mulf %0, %4 : vector<1x16x128xf32>
    %c0_4 = arith.constant 0 : index
    %c0_5 = arith.constant 0 : index
    %6 = vector.load %arg3[%c0_4, %c0_5] : memref<1x128xf32, #tpu.memory_space<vmem>>, vector<1x128xf32>
    %7 = vector.shape_cast %6 : vector<1x128xf32> to vector<128xf32>
    %8 = vector.shape_cast %7 : vector<128xf32> to vector<1x1x128xf32>
    %9 = vector.broadcast %8 : vector<1x1x128xf32> to vector<1x16x128xf32>
    %10 = arith.addf %5, %9 : vector<1x16x128xf32>
    %cst = arith.constant 0.000000e+00 : f32
    %11 = vector.broadcast %cst : f32 to vector<1x16x128xf32>
    %12 = arith.maximumf %10, %11 : vector<1x16x128xf32>
    %c0_6 = arith.constant 0 : index
    %c0_7 = arith.constant 0 : index
    %c0_8 = arith.constant 0 : index
    %13 = vector.load %arg4[%c0_6, %c0_7, %c0_8] : memref<1x16x128xf32, #tpu.memory_space<vmem>>, vector<1x16x128xf32>
    tpu.vector_store %arg4[%c0_6, %c0_7, %c0_8], %12 {strides = array<i32>} : memref<1x16x128xf32, #tpu.memory_space<vmem>>, vector<1x16x128xf32>,
    return
  }
  func.func @transform_0(%arg0: i32) -> (i32, i32, i32) {
    %c0_i32 = arith.constant 0 : i32
    %c0_i32_0 = arith.constant 0 : i32
    %c0_i32_1 = arith.constant 0 : i32
    return %arg0, %c0_i32, %c0_i32_0 : i32, i32, i32
  }
  func.func @transform_1(%arg0: i32) -> (i32, i32) {
    %c0_i32 = arith.constant 0 : i32
    %c0_i32_0 = arith.constant 0 : i32
    %c0_i32_1 = arith.constant 0 : i32
    return %c0_i32, %c0_i32_0 : i32, i32
  }
  func.func @transform_2(%arg0: i32) -> (i32, i32) {
    %c0_i32 = arith.constant 0 : i32
    %c0_i32_0 = arith.constant 0 : i32
    %c0_i32_1 = arith.constant 0 : i32
    return %c0_i32, %c0_i32_0 : i32, i32
  }
  func.func @transform_3(%arg0: i32) -> (i32, i32, i32) {
    %c0_i32 = arith.constant 0 : i32
    %c0_i32_0 = arith.constant 0 : i32
    %c0_i32_1 = arith.constant 0 : i32
    return %arg0, %c0_i32, %c0_i32_0 : i32, i32, i32
  }
}

module attributes {stable_mosaic.version = 11 : i64} {
  func.func @_bn_relu_kernel(%arg0: i32, %arg1: memref<1x8x128xf32, #tpu.memory_space<vmem>>, %arg2: memref<1x128xf32, #tpu.memory_space<vmem>>, %arg3: memref<1x128xf32, #tpu.memory_space<vmem>>, %arg4: memref<1x8x128xf32, #tpu.memory_space<vmem>>) attributes {dimension_semantics = [#tpu.dimension_semantics<parallel>], iteration_bounds = array<i64: 2>, scalar_prefetch = 0 : i64, scratch_operands = 0 : i64, tpu.core_type = #tpu.core_type<tc>, window_params = [{transform_indices = @transform_0, window_bounds = array<i64: 1, 8, 128>}, {pipeline_mode = #tpu.pipeline_mode<synchronous>, transform_indices = @transform_1, window_bounds = array<i64: 1, 128>}, {pipeline_mode = #tpu.pipeline_mode<synchronous>, transform_indices = @transform_2, window_bounds = array<i64: 1, 128>}, {transform_indices = @transform_3, window_bounds = array<i64: 1, 8, 128>}]} {
    %c0 = arith.constant 0 : index
    %c0_0 = arith.constant 0 : index
    %c0_1 = arith.constant 0 : index
    %0 = vector.load %arg1[%c0, %c0_0, %c0_1] : memref<1x8x128xf32, #tpu.memory_space<vmem>>, vector<1x8x128xf32>
    %c0_2 = arith.constant 0 : index
    %c0_3 = arith.constant 0 : index
    %1 = vector.load %arg2[%c0_2, %c0_3] : memref<1x128xf32, #tpu.memory_space<vmem>>, vector<1x128xf32>
    %2 = vector.shape_cast %1 : vector<1x128xf32> to vector<128xf32>
    %3 = vector.shape_cast %2 : vector<128xf32> to vector<1x1x128xf32>
    %4 = vector.broadcast %3 : vector<1x1x128xf32> to vector<1x8x128xf32>
    %5 = arith.mulf %0, %4 : vector<1x8x128xf32>
    %c0_4 = arith.constant 0 : index
    %c0_5 = arith.constant 0 : index
    %6 = vector.load %arg3[%c0_4, %c0_5] : memref<1x128xf32, #tpu.memory_space<vmem>>, vector<1x128xf32>
    %7 = vector.shape_cast %6 : vector<1x128xf32> to vector<128xf32>
    %8 = vector.shape_cast %7 : vector<128xf32> to vector<1x1x128xf32>
    %9 = vector.broadcast %8 : vector<1x1x128xf32> to vector<1x8x128xf32>
    %10 = arith.addf %5, %9 : vector<1x8x128xf32>
    %cst = arith.constant 0.000000e+00 : f32
    %11 = vector.broadcast %cst : f32 to vector<1x8x128xf32>
    %12 = arith.maximumf %10, %11 : vector<1x8x128xf32>
    %c0_6 = arith.constant 0 : index
    %c0_7 = arith.constant 0 : index
    %c0_8 = arith.constant 0 : index
    %13 = vector.load %arg4[%c0_6, %c0_7, %c0_8] : memref<1x8x128xf32, #tpu.memory_space<vmem>>, vector<1x8x128xf32>
    tpu.vector_store %arg4[%c0_6, %c0_7, %c0_8], %12 {strides = array<i32>} : memref<1x8x128xf32, #tpu.memory_space<vmem>>, vector<1x8x128xf32>,
    return
  }
  func.func @transform_0(%arg0: i32) -> (i32, i32, i32) {
    %c0_i32 = arith.constant 0 : i32
    %c0_i32_0 = arith.constant 0 : i32
    %c0_i32_1 = arith.constant 0 : i32
    return %arg0, %c0_i32, %c0_i32_0 : i32, i32, i32
  }
  func.func @transform_1(%arg0: i32) -> (i32, i32) {
    %c0_i32 = arith.constant 0 : i32
    %c0_i32_0 = arith.constant 0 : i32
    %c0_i32_1 = arith.constant 0 : i32
    return %c0_i32, %c0_i32_0 : i32, i32
  }
  func.func @transform_2(%arg0: i32) -> (i32, i32) {
    %c0_i32 = arith.constant 0 : i32
    %c0_i32_0 = arith.constant 0 : i32
    %c0_i32_1 = arith.constant 0 : i32
    return %c0_i32, %c0_i32_0 : i32, i32
  }
  func.func @transform_3(%arg0: i32) -> (i32, i32, i32) {
    %c0_i32 = arith.constant 0 : i32
    %c0_i32_0 = arith.constant 0 : i32
    %c0_i32_1 = arith.constant 0 : i32
    return %arg0, %c0_i32, %c0_i32_0 : i32, i32, i32
  }
}

module attributes {stable_mosaic.version = 11 : i64} {
  func.func @_conv3x3_kernel(%arg0: i32, %arg1: memref<1x8x128xf32, #tpu.memory_space<vmem>>, %arg2: memref<3x128x128xbf16, #tpu.memory_space<vmem>>, %arg3: memref<1x128xf32, #tpu.memory_space<vmem>>, %arg4: memref<1x128xf32, #tpu.memory_space<vmem>>, %arg5: memref<1x128xf32, #tpu.memory_space<vmem>>, %arg6: memref<1x8x128xf32, #tpu.memory_space<vmem>>, %arg7: memref<1x1x128xf32, #tpu.memory_space<vmem>>, %arg8: memref<1x1x128xf32, #tpu.memory_space<vmem>>, %arg9: memref<24x128xf32, #tpu.memory_space<vmem>>) attributes {dimension_semantics = [#tpu.dimension_semantics<parallel>], iteration_bounds = array<i64: 2>, scalar_prefetch = 0 : i64, scratch_operands = 1 : i64, tpu.core_type = #tpu.core_type<tc>, window_params = [{transform_indices = @transform_0, window_bounds = array<i64: 1, 8, 128>}, {pipeline_mode = #tpu.pipeline_mode<synchronous>, transform_indices = @transform_1, window_bounds = array<i64: 3, 128, 128>}, {pipeline_mode = #tpu.pipeline_mode<synchronous>, transform_indices = @transform_2, window_bounds = array<i64: 1, 128>}, {pipeline_mode = #tpu.pipeline_mode<synchronous>, transform_indices = @transform_3, window_bounds = array<i64: 1, 128>}, {pipeline_mode = #tpu.pipeline_mode<synchronous>, transform_indices = @transform_4, window_bounds = array<i64: 1, 128>}, {transform_indices = @transform_5, window_bounds = array<i64: 1, 8, 128>}, {transform_indices = @transform_6, window_bounds = array<i64: 1, 1, 128>}, {transform_indices = @transform_7, window_bounds = array<i64: 1, 1, 128>}]} {
    %c0 = arith.constant 0 : index
    %c0_0 = arith.constant 0 : index
    %c0_1 = arith.constant 0 : index
    %0 = vector.load %arg1[%c0, %c0_0, %c0_1] : memref<1x8x128xf32, #tpu.memory_space<vmem>>, vector<1x8x128xf32>
    %1 = vector.shape_cast %0 : vector<1x8x128xf32> to vector<8x128xf32>
    %c0_2 = arith.constant 0 : index
    %c0_3 = arith.constant 0 : index
    %2 = vector.load %arg4[%c0_2, %c0_3] : memref<1x128xf32, #tpu.memory_space<vmem>>, vector<1x128xf32>
    %3 = vector.shape_cast %2 : vector<1x128xf32> to vector<128xf32>
    %4 = vector.shape_cast %3 : vector<128xf32> to vector<1x128xf32>
    %5 = vector.broadcast %4 : vector<1x128xf32> to vector<8x128xf32>
    %6 = arith.mulf %1, %5 : vector<8x128xf32>
    %c0_4 = arith.constant 0 : index
    %c0_5 = arith.constant 0 : index
    %7 = vector.load %arg5[%c0_4, %c0_5] : memref<1x128xf32, #tpu.memory_space<vmem>>, vector<1x128xf32>
    %8 = vector.shape_cast %7 : vector<1x128xf32> to vector<128xf32>
    %9 = vector.shape_cast %8 : vector<128xf32> to vector<1x128xf32>
    %10 = vector.broadcast %9 : vector<1x128xf32> to vector<8x128xf32>
    %11 = arith.addf %6, %10 : vector<8x128xf32>
    %cst = arith.constant 0.000000e+00 : f32
    %12 = vector.broadcast %cst : f32 to vector<8x128xf32>
    %13 = arith.maximumf %11, %12 : vector<8x128xf32>
    %cst_6 = arith.constant 0.000000e+00 : f32
    %14 = vector.broadcast %cst_6 : f32 to vector<24x128xf32>
    %c0_7 = arith.constant 0 : index
    %c0_8 = arith.constant 0 : index
    %15 = vector.load %arg9[%c0_7, %c0_8] : memref<24x128xf32, #tpu.memory_space<vmem>>, vector<24x128xf32>
    tpu.vector_store %arg9[%c0_7, %c0_8], %14 {strides = array<i32>} : memref<24x128xf32, #tpu.memory_space<vmem>>, vector<24x128xf32>,
    %c8 = arith.constant 8 : index
    %c0_9 = arith.constant 0 : index
    %16 = vector.load %arg9[%c8, %c0_9] : memref<24x128xf32, #tpu.memory_space<vmem>>, vector<8x128xf32>
    tpu.vector_store %arg9[%c8, %c0_9], %13 {strides = array<i32>} : memref<24x128xf32, #tpu.memory_space<vmem>>, vector<8x128xf32>,
    %cst_10 = arith.constant 0.000000e+00 : f32
    %17 = vector.broadcast %cst_10 : f32 to vector<8x128xf32>
    %c7 = arith.constant 7 : index
    %c0_11 = arith.constant 0 : index
    %18 = vector.load %arg9[%c7, %c0_11] : memref<24x128xf32, #tpu.memory_space<vmem>>, vector<8x128xf32>
    %19 = arith.truncf %18 : vector<8x128xf32> to vector<8x128xbf16>
    %c0_12 = arith.constant 0 : index
    %c0_13 = arith.constant 0 : index
    %c0_14 = arith.constant 0 : index
    %20 = vector.load %arg2[%c0_12, %c0_13, %c0_14] : memref<3x128x128xbf16, #tpu.memory_space<vmem>>, vector<1x128x128xbf16>
    %21 = vector.shape_cast %20 : vector<1x128x128xbf16> to vector<128x128xbf16>
    %cst_15 = arith.constant dense<0.000000e+00> : vector<8x128xf32>
    %22 = tpu.matmul %19, %21, %cst_15 {dimension_numbers = #tpu.dot_dimension_numbers<[1], [0], [0], [1], [0, 0, 1, 1], [], []>} : vector<8x128xbf16>, vector<128x128xbf16>, vector<8x128xf32> -> vector<8x128xf32>
    %23 = arith.addf %17, %22 : vector<8x128xf32>
    %c8_16 = arith.constant 8 : index
    %c0_17 = arith.constant 0 : index
    %24 = vector.load %arg9[%c8_16, %c0_17] : memref<24x128xf32, #tpu.memory_space<vmem>>, vector<8x128xf32>
    %25 = arith.truncf %24 : vector<8x128xf32> to vector<8x128xbf16>
    %c1 = arith.constant 1 : index
    %c0_18 = arith.constant 0 : index
    %c0_19 = arith.constant 0 : index
    %26 = vector.load %arg2[%c1, %c0_18, %c0_19] : memref<3x128x128xbf16, #tpu.memory_space<vmem>>, vector<1x128x128xbf16>
    %27 = vector.shape_cast %26 : vector<1x128x128xbf16> to vector<128x128xbf16>
    %cst_20 = arith.constant dense<0.000000e+00> : vector<8x128xf32>
    %28 = tpu.matmul %25, %27, %cst_20 {dimension_numbers = #tpu.dot_dimension_numbers<[1], [0], [0], [1], [0, 0, 1, 1], [], []>} : vector<8x128xbf16>, vector<128x128xbf16>, vector<8x128xf32> -> vector<8x128xf32>
    %29 = arith.addf %23, %28 : vector<8x128xf32>
    %c9 = arith.constant 9 : index
    %c0_21 = arith.constant 0 : index
    %30 = vector.load %arg9[%c9, %c0_21] : memref<24x128xf32, #tpu.memory_space<vmem>>, vector<8x128xf32>
    %31 = arith.truncf %30 : vector<8x128xf32> to vector<8x128xbf16>
    %c2 = arith.constant 2 : index
    %c0_22 = arith.constant 0 : index
    %c0_23 = arith.constant 0 : index
    %32 = vector.load %arg2[%c2, %c0_22, %c0_23] : memref<3x128x128xbf16, #tpu.memory_space<vmem>>, vector<1x128x128xbf16>
    %33 = vector.shape_cast %32 : vector<1x128x128xbf16> to vector<128x128xbf16>
    %cst_24 = arith.constant dense<0.000000e+00> : vector<8x128xf32>
    %34 = tpu.matmul %31, %33, %cst_24 {dimension_numbers = #tpu.dot_dimension_numbers<[1], [0], [0], [1], [0, 0, 1, 1], [], []>} : vector<8x128xbf16>, vector<128x128xbf16>, vector<8x128xf32> -> vector<8x128xf32>
    %35 = arith.addf %29, %34 : vector<8x128xf32>
    %c0_25 = arith.constant 0 : index
    %c0_26 = arith.constant 0 : index
    %36 = vector.load %arg3[%c0_25, %c0_26] : memref<1x128xf32, #tpu.memory_space<vmem>>, vector<1x128xf32>
    %37 = vector.shape_cast %36 : vector<1x128xf32> to vector<128xf32>
    %38 = vector.shape_cast %37 : vector<128xf32> to vector<1x128xf32>
    %39 = vector.broadcast %38 : vector<1x128xf32> to vector<8x128xf32>
    %40 = arith.addf %35, %39 : vector<8x128xf32>
    %41 = vector.shape_cast %40 : vector<8x128xf32> to vector<1x8x128xf32>
    %c0_27 = arith.constant 0 : index
    %c0_28 = arith.constant 0 : index
    %c0_29 = arith.constant 0 : index
    %42 = vector.load %arg6[%c0_27, %c0_28, %c0_29] : memref<1x8x128xf32, #tpu.memory_space<vmem>>, vector<1x8x128xf32>
    tpu.vector_store %arg6[%c0_27, %c0_28, %c0_29], %41 {strides = array<i32>} : memref<1x8x128xf32, #tpu.memory_space<vmem>>, vector<1x8x128xf32>,
    %cst_30 = arith.constant dense<0.000000e+00> : vector<128xf32>
    %43 = vector.multi_reduction <add>, %40, %cst_30 [0] : vector<8x128xf32> to vector<128xf32>
    %44 = vector.shape_cast %43 : vector<128xf32> to vector<1x128xf32>
    %45 = vector.shape_cast %44 : vector<1x128xf32> to vector<1x1x128xf32>
    %c0_31 = arith.constant 0 : index
    %c0_32 = arith.constant 0 : index
    %c0_33 = arith.constant 0 : index
    %46 = vector.load %arg7[%c0_31, %c0_32, %c0_33] : memref<1x1x128xf32, #tpu.memory_space<vmem>>, vector<1x1x128xf32>
    tpu.vector_store %arg7[%c0_31, %c0_32, %c0_33], %45 {strides = array<i32>} : memref<1x1x128xf32, #tpu.memory_space<vmem>>, vector<1x1x128xf32>,
    %47 = arith.mulf %40, %40 : vector<8x128xf32>
    %cst_34 = arith.constant dense<0.000000e+00> : vector<128xf32>
    %48 = vector.multi_reduction <add>, %47, %cst_34 [0] : vector<8x128xf32> to vector<128xf32>
    %49 = vector.shape_cast %48 : vector<128xf32> to vector<1x128xf32>
    %50 = vector.shape_cast %49 : vector<1x128xf32> to vector<1x1x128xf32>
    %c0_35 = arith.constant 0 : index
    %c0_36 = arith.constant 0 : index
    %c0_37 = arith.constant 0 : index
    %51 = vector.load %arg8[%c0_35, %c0_36, %c0_37] : memref<1x1x128xf32, #tpu.memory_space<vmem>>, vector<1x1x128xf32>
    tpu.vector_store %arg8[%c0_35, %c0_36, %c0_37], %50 {strides = array<i32>} : memref<1x1x128xf32, #tpu.memory_space<vmem>>, vector<1x1x128xf32>,
    return
  }
  func.func @transform_0(%arg0: i32) -> (i32, i32, i32) {
    %c0_i32 = arith.constant 0 : i32
    %c0_i32_0 = arith.constant 0 : i32
    %c0_i32_1 = arith.constant 0 : i32
    return %arg0, %c0_i32, %c0_i32_0 : i32, i32, i32
  }
  func.func @transform_1(%arg0: i32) -> (i32, i32, i32) {
    %c0_i32 = arith.constant 0 : i32
    %c0_i32_0 = arith.constant 0 : i32
    %c0_i32_1 = arith.constant 0 : i32
    %c0_i32_2 = arith.constant 0 : i32
    return %c0_i32, %c0_i32_0, %c0_i32_1 : i32, i32, i32
  }
  func.func @transform_2(%arg0: i32) -> (i32, i32) {
    %c0_i32 = arith.constant 0 : i32
    %c0_i32_0 = arith.constant 0 : i32
    %c0_i32_1 = arith.constant 0 : i32
    return %c0_i32, %c0_i32_0 : i32, i32
  }
  func.func @transform_3(%arg0: i32) -> (i32, i32) {
    %c0_i32 = arith.constant 0 : i32
    %c0_i32_0 = arith.constant 0 : i32
    %c0_i32_1 = arith.constant 0 : i32
    return %c0_i32, %c0_i32_0 : i32, i32
  }
  func.func @transform_4(%arg0: i32) -> (i32, i32) {
    %c0_i32 = arith.constant 0 : i32
    %c0_i32_0 = arith.constant 0 : i32
    %c0_i32_1 = arith.constant 0 : i32
    return %c0_i32, %c0_i32_0 : i32, i32
  }
  func.func @transform_5(%arg0: i32) -> (i32, i32, i32) {
    %c0_i32 = arith.constant 0 : i32
    %c0_i32_0 = arith.constant 0 : i32
    %c0_i32_1 = arith.constant 0 : i32
    return %arg0, %c0_i32, %c0_i32_0 : i32, i32, i32
  }
  func.func @transform_6(%arg0: i32) -> (i32, i32, i32) {
    %c0_i32 = arith.constant 0 : i32
    %c0_i32_0 = arith.constant 0 : i32
    %c0_i32_1 = arith.constant 0 : i32
    return %arg0, %c0_i32, %c0_i32_0 : i32, i32, i32
  }
  func.func @transform_7(%arg0: i32) -> (i32, i32, i32) {
    %c0_i32 = arith.constant 0 : i32
    %c0_i32_0 = arith.constant 0 : i32
    %c0_i32_1 = arith.constant 0 : i32
    return %arg0, %c0_i32, %c0_i32_0 : i32, i32, i32
  }
}

module attributes {stable_mosaic.version = 11 : i64} {
  func.func @_conv3x3_kernel(%arg0: i32, %arg1: memref<1x8x64xf32, #tpu.memory_space<vmem>>, %arg2: memref<3x64x128xbf16, #tpu.memory_space<vmem>>, %arg3: memref<1x128xf32, #tpu.memory_space<vmem>>, %arg4: memref<1x64xf32, #tpu.memory_space<vmem>>, %arg5: memref<1x64xf32, #tpu.memory_space<vmem>>, %arg6: memref<1x8x128xf32, #tpu.memory_space<vmem>>, %arg7: memref<1x1x128xf32, #tpu.memory_space<vmem>>, %arg8: memref<1x1x128xf32, #tpu.memory_space<vmem>>, %arg9: memref<24x64xf32, #tpu.memory_space<vmem>>) attributes {dimension_semantics = [#tpu.dimension_semantics<parallel>], iteration_bounds = array<i64: 2>, scalar_prefetch = 0 : i64, scratch_operands = 1 : i64, tpu.core_type = #tpu.core_type<tc>, window_params = [{transform_indices = @transform_0, window_bounds = array<i64: 1, 8, 64>}, {pipeline_mode = #tpu.pipeline_mode<synchronous>, transform_indices = @transform_1, window_bounds = array<i64: 3, 64, 128>}, {pipeline_mode = #tpu.pipeline_mode<synchronous>, transform_indices = @transform_2, window_bounds = array<i64: 1, 128>}, {pipeline_mode = #tpu.pipeline_mode<synchronous>, transform_indices = @transform_3, window_bounds = array<i64: 1, 64>}, {pipeline_mode = #tpu.pipeline_mode<synchronous>, transform_indices = @transform_4, window_bounds = array<i64: 1, 64>}, {transform_indices = @transform_5, window_bounds = array<i64: 1, 8, 128>}, {transform_indices = @transform_6, window_bounds = array<i64: 1, 1, 128>}, {transform_indices = @transform_7, window_bounds = array<i64: 1, 1, 128>}]} {
    %c0 = arith.constant 0 : index
    %c0_0 = arith.constant 0 : index
    %c0_1 = arith.constant 0 : index
    %0 = vector.load %arg1[%c0, %c0_0, %c0_1] : memref<1x8x64xf32, #tpu.memory_space<vmem>>, vector<1x8x64xf32>
    %1 = vector.shape_cast %0 : vector<1x8x64xf32> to vector<8x64xf32>
    %cst = arith.constant 0.000000e+00 : f32
    %2 = vector.broadcast %cst : f32 to vector<24x64xf32>
    %c0_2 = arith.constant 0 : index
    %c0_3 = arith.constant 0 : index
    %3 = vector.load %arg9[%c0_2, %c0_3] : memref<24x64xf32, #tpu.memory_space<vmem>>, vector<24x64xf32>
    tpu.vector_store %arg9[%c0_2, %c0_3], %2 {strides = array<i32>} : memref<24x64xf32, #tpu.memory_space<vmem>>, vector<24x64xf32>,
    %c8 = arith.constant 8 : index
    %c0_4 = arith.constant 0 : index
    %4 = vector.load %arg9[%c8, %c0_4] : memref<24x64xf32, #tpu.memory_space<vmem>>, vector<8x64xf32>
    tpu.vector_store %arg9[%c8, %c0_4], %1 {strides = array<i32>} : memref<24x64xf32, #tpu.memory_space<vmem>>, vector<8x64xf32>,
    %cst_5 = arith.constant 0.000000e+00 : f32
    %5 = vector.broadcast %cst_5 : f32 to vector<8x128xf32>
    %c7 = arith.constant 7 : index
    %c0_6 = arith.constant 0 : index
    %6 = vector.load %arg9[%c7, %c0_6] : memref<24x64xf32, #tpu.memory_space<vmem>>, vector<8x64xf32>
    %7 = arith.truncf %6 : vector<8x64xf32> to vector<8x64xbf16>
    %c0_7 = arith.constant 0 : index
    %c0_8 = arith.constant 0 : index
    %c0_9 = arith.constant 0 : index
    %8 = vector.load %arg2[%c0_7, %c0_8, %c0_9] : memref<3x64x128xbf16, #tpu.memory_space<vmem>>, vector<1x64x128xbf16>
    %9 = vector.shape_cast %8 : vector<1x64x128xbf16> to vector<64x128xbf16>
    %cst_10 = arith.constant dense<0.000000e+00> : vector<8x128xf32>
    %10 = tpu.matmul %7, %9, %cst_10 {dimension_numbers = #tpu.dot_dimension_numbers<[1], [0], [0], [1], [0, 0, 1, 1], [], []>} : vector<8x64xbf16>, vector<64x128xbf16>, vector<8x128xf32> -> vector<8x128xf32>
    %11 = arith.addf %5, %10 : vector<8x128xf32>
    %c8_11 = arith.constant 8 : index
    %c0_12 = arith.constant 0 : index
    %12 = vector.load %arg9[%c8_11, %c0_12] : memref<24x64xf32, #tpu.memory_space<vmem>>, vector<8x64xf32>
    %13 = arith.truncf %12 : vector<8x64xf32> to vector<8x64xbf16>
    %c1 = arith.constant 1 : index
    %c0_13 = arith.constant 0 : index
    %c0_14 = arith.constant 0 : index
    %14 = vector.load %arg2[%c1, %c0_13, %c0_14] : memref<3x64x128xbf16, #tpu.memory_space<vmem>>, vector<1x64x128xbf16>
    %15 = vector.shape_cast %14 : vector<1x64x128xbf16> to vector<64x128xbf16>
    %cst_15 = arith.constant dense<0.000000e+00> : vector<8x128xf32>
    %16 = tpu.matmul %13, %15, %cst_15 {dimension_numbers = #tpu.dot_dimension_numbers<[1], [0], [0], [1], [0, 0, 1, 1], [], []>} : vector<8x64xbf16>, vector<64x128xbf16>, vector<8x128xf32> -> vector<8x128xf32>
    %17 = arith.addf %11, %16 : vector<8x128xf32>
    %c9 = arith.constant 9 : index
    %c0_16 = arith.constant 0 : index
    %18 = vector.load %arg9[%c9, %c0_16] : memref<24x64xf32, #tpu.memory_space<vmem>>, vector<8x64xf32>
    %19 = arith.truncf %18 : vector<8x64xf32> to vector<8x64xbf16>
    %c2 = arith.constant 2 : index
    %c0_17 = arith.constant 0 : index
    %c0_18 = arith.constant 0 : index
    %20 = vector.load %arg2[%c2, %c0_17, %c0_18] : memref<3x64x128xbf16, #tpu.memory_space<vmem>>, vector<1x64x128xbf16>
    %21 = vector.shape_cast %20 : vector<1x64x128xbf16> to vector<64x128xbf16>
    %cst_19 = arith.constant dense<0.000000e+00> : vector<8x128xf32>
    %22 = tpu.matmul %19, %21, %cst_19 {dimension_numbers = #tpu.dot_dimension_numbers<[1], [0], [0], [1], [0, 0, 1, 1], [], []>} : vector<8x64xbf16>, vector<64x128xbf16>, vector<8x128xf32> -> vector<8x128xf32>
    %23 = arith.addf %17, %22 : vector<8x128xf32>
    %c0_20 = arith.constant 0 : index
    %c0_21 = arith.constant 0 : index
    %24 = vector.load %arg3[%c0_20, %c0_21] : memref<1x128xf32, #tpu.memory_space<vmem>>, vector<1x128xf32>
    %25 = vector.shape_cast %24 : vector<1x128xf32> to vector<128xf32>
    %26 = vector.shape_cast %25 : vector<128xf32> to vector<1x128xf32>
    %27 = vector.broadcast %26 : vector<1x128xf32> to vector<8x128xf32>
    %28 = arith.addf %23, %27 : vector<8x128xf32>
    %29 = vector.shape_cast %28 : vector<8x128xf32> to vector<1x8x128xf32>
    %c0_22 = arith.constant 0 : index
    %c0_23 = arith.constant 0 : index
    %c0_24 = arith.constant 0 : index
    %30 = vector.load %arg6[%c0_22, %c0_23, %c0_24] : memref<1x8x128xf32, #tpu.memory_space<vmem>>, vector<1x8x128xf32>
    tpu.vector_store %arg6[%c0_22, %c0_23, %c0_24], %29 {strides = array<i32>} : memref<1x8x128xf32, #tpu.memory_space<vmem>>, vector<1x8x128xf32>,
    %cst_25 = arith.constant dense<0.000000e+00> : vector<128xf32>
    %31 = vector.multi_reduction <add>, %28, %cst_25 [0] : vector<8x128xf32> to vector<128xf32>
    %32 = vector.shape_cast %31 : vector<128xf32> to vector<1x128xf32>
    %33 = vector.shape_cast %32 : vector<1x128xf32> to vector<1x1x128xf32>
    %c0_26 = arith.constant 0 : index
    %c0_27 = arith.constant 0 : index
    %c0_28 = arith.constant 0 : index
    %34 = vector.load %arg7[%c0_26, %c0_27, %c0_28] : memref<1x1x128xf32, #tpu.memory_space<vmem>>, vector<1x1x128xf32>
    tpu.vector_store %arg7[%c0_26, %c0_27, %c0_28], %33 {strides = array<i32>} : memref<1x1x128xf32, #tpu.memory_space<vmem>>, vector<1x1x128xf32>,
    %35 = arith.mulf %28, %28 : vector<8x128xf32>
    %cst_29 = arith.constant dense<0.000000e+00> : vector<128xf32>
    %36 = vector.multi_reduction <add>, %35, %cst_29 [0] : vector<8x128xf32> to vector<128xf32>
    %37 = vector.shape_cast %36 : vector<128xf32> to vector<1x128xf32>
    %38 = vector.shape_cast %37 : vector<1x128xf32> to vector<1x1x128xf32>
    %c0_30 = arith.constant 0 : index
    %c0_31 = arith.constant 0 : index
    %c0_32 = arith.constant 0 : index
    %39 = vector.load %arg8[%c0_30, %c0_31, %c0_32] : memref<1x1x128xf32, #tpu.memory_space<vmem>>, vector<1x1x128xf32>
    tpu.vector_store %arg8[%c0_30, %c0_31, %c0_32], %38 {strides = array<i32>} : memref<1x1x128xf32, #tpu.memory_space<vmem>>, vector<1x1x128xf32>,
    return
  }
  func.func @transform_0(%arg0: i32) -> (i32, i32, i32) {
    %c0_i32 = arith.constant 0 : i32
    %c0_i32_0 = arith.constant 0 : i32
    %c0_i32_1 = arith.constant 0 : i32
    return %arg0, %c0_i32, %c0_i32_0 : i32, i32, i32
  }
  func.func @transform_1(%arg0: i32) -> (i32, i32, i32) {
    %c0_i32 = arith.constant 0 : i32
    %c0_i32_0 = arith.constant 0 : i32
    %c0_i32_1 = arith.constant 0 : i32
    %c0_i32_2 = arith.constant 0 : i32
    return %c0_i32, %c0_i32_0, %c0_i32_1 : i32, i32, i32
  }
  func.func @transform_2(%arg0: i32) -> (i32, i32) {
    %c0_i32 = arith.constant 0 : i32
    %c0_i32_0 = arith.constant 0 : i32
    %c0_i32_1 = arith.constant 0 : i32
    return %c0_i32, %c0_i32_0 : i32, i32
  }
  func.func @transform_3(%arg0: i32) -> (i32, i32) {
    %c0_i32 = arith.constant 0 : i32
    %c0_i32_0 = arith.constant 0 : i32
    %c0_i32_1 = arith.constant 0 : i32
    return %c0_i32, %c0_i32_0 : i32, i32
  }
  func.func @transform_4(%arg0: i32) -> (i32, i32) {
    %c0_i32 = arith.constant 0 : i32
    %c0_i32_0 = arith.constant 0 : i32
    %c0_i32_1 = arith.constant 0 : i32
    return %c0_i32, %c0_i32_0 : i32, i32
  }
  func.func @transform_5(%arg0: i32) -> (i32, i32, i32) {
    %c0_i32 = arith.constant 0 : i32
    %c0_i32_0 = arith.constant 0 : i32
    %c0_i32_1 = arith.constant 0 : i32
    return %arg0, %c0_i32, %c0_i32_0 : i32, i32, i32
  }
  func.func @transform_6(%arg0: i32) -> (i32, i32, i32) {
    %c0_i32 = arith.constant 0 : i32
    %c0_i32_0 = arith.constant 0 : i32
    %c0_i32_1 = arith.constant 0 : i32
    return %arg0, %c0_i32, %c0_i32_0 : i32, i32, i32
  }
  func.func @transform_7(%arg0: i32) -> (i32, i32, i32) {
    %c0_i32 = arith.constant 0 : i32
    %c0_i32_0 = arith.constant 0 : i32
    %c0_i32_1 = arith.constant 0 : i32
    return %arg0, %c0_i32, %c0_i32_0 : i32, i32, i32
  }
}

module attributes {stable_mosaic.version = 11 : i64} {
  func.func @_conv3x3_kernel(%arg0: i32, %arg1: memref<1x4x64xf32, #tpu.memory_space<vmem>>, %arg2: memref<3x64x128xbf16, #tpu.memory_space<vmem>>, %arg3: memref<1x128xf32, #tpu.memory_space<vmem>>, %arg4: memref<1x64xf32, #tpu.memory_space<vmem>>, %arg5: memref<1x64xf32, #tpu.memory_space<vmem>>, %arg6: memref<1x4x128xf32, #tpu.memory_space<vmem>>, %arg7: memref<1x1x128xf32, #tpu.memory_space<vmem>>, %arg8: memref<1x1x128xf32, #tpu.memory_space<vmem>>, %arg9: memref<20x64xf32, #tpu.memory_space<vmem>>) attributes {dimension_semantics = [#tpu.dimension_semantics<parallel>], iteration_bounds = array<i64: 2>, scalar_prefetch = 0 : i64, scratch_operands = 1 : i64, tpu.core_type = #tpu.core_type<tc>, window_params = [{transform_indices = @transform_0, window_bounds = array<i64: 1, 4, 64>}, {pipeline_mode = #tpu.pipeline_mode<synchronous>, transform_indices = @transform_1, window_bounds = array<i64: 3, 64, 128>}, {pipeline_mode = #tpu.pipeline_mode<synchronous>, transform_indices = @transform_2, window_bounds = array<i64: 1, 128>}, {pipeline_mode = #tpu.pipeline_mode<synchronous>, transform_indices = @transform_3, window_bounds = array<i64: 1, 64>}, {pipeline_mode = #tpu.pipeline_mode<synchronous>, transform_indices = @transform_4, window_bounds = array<i64: 1, 64>}, {transform_indices = @transform_5, window_bounds = array<i64: 1, 4, 128>}, {transform_indices = @transform_6, window_bounds = array<i64: 1, 1, 128>}, {transform_indices = @transform_7, window_bounds = array<i64: 1, 1, 128>}]} {
    %c0 = arith.constant 0 : index
    %c0_0 = arith.constant 0 : index
    %c0_1 = arith.constant 0 : index
    %0 = vector.load %arg1[%c0, %c0_0, %c0_1] : memref<1x4x64xf32, #tpu.memory_space<vmem>>, vector<1x4x64xf32>
    %1 = vector.shape_cast %0 : vector<1x4x64xf32> to vector<4x64xf32>
    %cst = arith.constant 0.000000e+00 : f32
    %2 = vector.broadcast %cst : f32 to vector<20x64xf32>
    %c0_2 = arith.constant 0 : index
    %c0_3 = arith.constant 0 : index
    %3 = vector.load %arg9[%c0_2, %c0_3] : memref<20x64xf32, #tpu.memory_space<vmem>>, vector<20x64xf32>
    tpu.vector_store %arg9[%c0_2, %c0_3], %2 {strides = array<i32>} : memref<20x64xf32, #tpu.memory_space<vmem>>, vector<20x64xf32>,
    %c8 = arith.constant 8 : index
    %c0_4 = arith.constant 0 : index
    %4 = vector.load %arg9[%c8, %c0_4] : memref<20x64xf32, #tpu.memory_space<vmem>>, vector<4x64xf32>
    tpu.vector_store %arg9[%c8, %c0_4], %1 {strides = array<i32>} : memref<20x64xf32, #tpu.memory_space<vmem>>, vector<4x64xf32>,
    %cst_5 = arith.constant 0.000000e+00 : f32
    %5 = vector.broadcast %cst_5 : f32 to vector<4x128xf32>
    %c7 = arith.constant 7 : index
    %c0_6 = arith.constant 0 : index
    %6 = vector.load %arg9[%c7, %c0_6] : memref<20x64xf32, #tpu.memory_space<vmem>>, vector<4x64xf32>
    %7 = arith.truncf %6 : vector<4x64xf32> to vector<4x64xbf16>
    %c0_7 = arith.constant 0 : index
    %c0_8 = arith.constant 0 : index
    %c0_9 = arith.constant 0 : index
    %8 = vector.load %arg2[%c0_7, %c0_8, %c0_9] : memref<3x64x128xbf16, #tpu.memory_space<vmem>>, vector<1x64x128xbf16>
    %9 = vector.shape_cast %8 : vector<1x64x128xbf16> to vector<64x128xbf16>
    %cst_10 = arith.constant dense<0.000000e+00> : vector<4x128xf32>
    %10 = tpu.matmul %7, %9, %cst_10 {dimension_numbers = #tpu.dot_dimension_numbers<[1], [0], [0], [1], [0, 0, 1, 1], [], []>} : vector<4x64xbf16>, vector<64x128xbf16>, vector<4x128xf32> -> vector<4x128xf32>
    %11 = arith.addf %5, %10 : vector<4x128xf32>
    %c8_11 = arith.constant 8 : index
    %c0_12 = arith.constant 0 : index
    %12 = vector.load %arg9[%c8_11, %c0_12] : memref<20x64xf32, #tpu.memory_space<vmem>>, vector<4x64xf32>
    %13 = arith.truncf %12 : vector<4x64xf32> to vector<4x64xbf16>
    %c1 = arith.constant 1 : index
    %c0_13 = arith.constant 0 : index
    %c0_14 = arith.constant 0 : index
    %14 = vector.load %arg2[%c1, %c0_13, %c0_14] : memref<3x64x128xbf16, #tpu.memory_space<vmem>>, vector<1x64x128xbf16>
    %15 = vector.shape_cast %14 : vector<1x64x128xbf16> to vector<64x128xbf16>
    %cst_15 = arith.constant dense<0.000000e+00> : vector<4x128xf32>
    %16 = tpu.matmul %13, %15, %cst_15 {dimension_numbers = #tpu.dot_dimension_numbers<[1], [0], [0], [1], [0, 0, 1, 1], [], []>} : vector<4x64xbf16>, vector<64x128xbf16>, vector<4x128xf32> -> vector<4x128xf32>
    %17 = arith.addf %11, %16 : vector<4x128xf32>
    %c9 = arith.constant 9 : index
    %c0_16 = arith.constant 0 : index
    %18 = vector.load %arg9[%c9, %c0_16] : memref<20x64xf32, #tpu.memory_space<vmem>>, vector<4x64xf32>
    %19 = arith.truncf %18 : vector<4x64xf32> to vector<4x64xbf16>
    %c2 = arith.constant 2 : index
    %c0_17 = arith.constant 0 : index
    %c0_18 = arith.constant 0 : index
    %20 = vector.load %arg2[%c2, %c0_17, %c0_18] : memref<3x64x128xbf16, #tpu.memory_space<vmem>>, vector<1x64x128xbf16>
    %21 = vector.shape_cast %20 : vector<1x64x128xbf16> to vector<64x128xbf16>
    %cst_19 = arith.constant dense<0.000000e+00> : vector<4x128xf32>
    %22 = tpu.matmul %19, %21, %cst_19 {dimension_numbers = #tpu.dot_dimension_numbers<[1], [0], [0], [1], [0, 0, 1, 1], [], []>} : vector<4x64xbf16>, vector<64x128xbf16>, vector<4x128xf32> -> vector<4x128xf32>
    %23 = arith.addf %17, %22 : vector<4x128xf32>
    %c0_20 = arith.constant 0 : index
    %c0_21 = arith.constant 0 : index
    %24 = vector.load %arg3[%c0_20, %c0_21] : memref<1x128xf32, #tpu.memory_space<vmem>>, vector<1x128xf32>
    %25 = vector.shape_cast %24 : vector<1x128xf32> to vector<128xf32>
    %26 = vector.shape_cast %25 : vector<128xf32> to vector<1x128xf32>
    %27 = vector.broadcast %26 : vector<1x128xf32> to vector<4x128xf32>
    %28 = arith.addf %23, %27 : vector<4x128xf32>
    %29 = vector.shape_cast %28 : vector<4x128xf32> to vector<1x4x128xf32>
    %c0_22 = arith.constant 0 : index
    %c0_23 = arith.constant 0 : index
    %c0_24 = arith.constant 0 : index
    %30 = vector.load %arg6[%c0_22, %c0_23, %c0_24] : memref<1x4x128xf32, #tpu.memory_space<vmem>>, vector<1x4x128xf32>
    tpu.vector_store %arg6[%c0_22, %c0_23, %c0_24], %29 {strides = array<i32>} : memref<1x4x128xf32, #tpu.memory_space<vmem>>, vector<1x4x128xf32>,
    %cst_25 = arith.constant dense<0.000000e+00> : vector<128xf32>
    %31 = vector.multi_reduction <add>, %28, %cst_25 [0] : vector<4x128xf32> to vector<128xf32>
    %32 = vector.shape_cast %31 : vector<128xf32> to vector<1x128xf32>
    %33 = vector.shape_cast %32 : vector<1x128xf32> to vector<1x1x128xf32>
    %c0_26 = arith.constant 0 : index
    %c0_27 = arith.constant 0 : index
    %c0_28 = arith.constant 0 : index
    %34 = vector.load %arg7[%c0_26, %c0_27, %c0_28] : memref<1x1x128xf32, #tpu.memory_space<vmem>>, vector<1x1x128xf32>
    tpu.vector_store %arg7[%c0_26, %c0_27, %c0_28], %33 {strides = array<i32>} : memref<1x1x128xf32, #tpu.memory_space<vmem>>, vector<1x1x128xf32>,
    %35 = arith.mulf %28, %28 : vector<4x128xf32>
    %cst_29 = arith.constant dense<0.000000e+00> : vector<128xf32>
    %36 = vector.multi_reduction <add>, %35, %cst_29 [0] : vector<4x128xf32> to vector<128xf32>
    %37 = vector.shape_cast %36 : vector<128xf32> to vector<1x128xf32>
    %38 = vector.shape_cast %37 : vector<1x128xf32> to vector<1x1x128xf32>
    %c0_30 = arith.constant 0 : index
    %c0_31 = arith.constant 0 : index
    %c0_32 = arith.constant 0 : index
    %39 = vector.load %arg8[%c0_30, %c0_31, %c0_32] : memref<1x1x128xf32, #tpu.memory_space<vmem>>, vector<1x1x128xf32>
    tpu.vector_store %arg8[%c0_30, %c0_31, %c0_32], %38 {strides = array<i32>} : memref<1x1x128xf32, #tpu.memory_space<vmem>>, vector<1x1x128xf32>,
    return
  }
  func.func @transform_0(%arg0: i32) -> (i32, i32, i32) {
    %c0_i32 = arith.constant 0 : i32
    %c0_i32_0 = arith.constant 0 : i32
    %c0_i32_1 = arith.constant 0 : i32
    return %arg0, %c0_i32, %c0_i32_0 : i32, i32, i32
  }
  func.func @transform_1(%arg0: i32) -> (i32, i32, i32) {
    %c0_i32 = arith.constant 0 : i32
    %c0_i32_0 = arith.constant 0 : i32
    %c0_i32_1 = arith.constant 0 : i32
    %c0_i32_2 = arith.constant 0 : i32
    return %c0_i32, %c0_i32_0, %c0_i32_1 : i32, i32, i32
  }
  func.func @transform_2(%arg0: i32) -> (i32, i32) {
    %c0_i32 = arith.constant 0 : i32
    %c0_i32_0 = arith.constant 0 : i32
    %c0_i32_1 = arith.constant 0 : i32
    return %c0_i32, %c0_i32_0 : i32, i32
  }
  func.func @transform_3(%arg0: i32) -> (i32, i32) {
    %c0_i32 = arith.constant 0 : i32
    %c0_i32_0 = arith.constant 0 : i32
    %c0_i32_1 = arith.constant 0 : i32
    return %c0_i32, %c0_i32_0 : i32, i32
  }
  func.func @transform_4(%arg0: i32) -> (i32, i32) {
    %c0_i32 = arith.constant 0 : i32
    %c0_i32_0 = arith.constant 0 : i32
    %c0_i32_1 = arith.constant 0 : i32
    return %c0_i32, %c0_i32_0 : i32, i32
  }
  func.func @transform_5(%arg0: i32) -> (i32, i32, i32) {
    %c0_i32 = arith.constant 0 : i32
    %c0_i32_0 = arith.constant 0 : i32
    %c0_i32_1 = arith.constant 0 : i32
    return %arg0, %c0_i32, %c0_i32_0 : i32, i32, i32
  }
  func.func @transform_6(%arg0: i32) -> (i32, i32, i32) {
    %c0_i32 = arith.constant 0 : i32
    %c0_i32_0 = arith.constant 0 : i32
    %c0_i32_1 = arith.constant 0 : i32
    return %arg0, %c0_i32, %c0_i32_0 : i32, i32, i32
  }
  func.func @transform_7(%arg0: i32) -> (i32, i32, i32) {
    %c0_i32 = arith.constant 0 : i32
    %c0_i32_0 = arith.constant 0 : i32
    %c0_i32_1 = arith.constant 0 : i32
    return %arg0, %c0_i32, %c0_i32_0 : i32, i32, i32
  }
}

module attributes {stable_mosaic.version = 11 : i64} {
  func.func @_bn_relu_kernel(%arg0: i32, %arg1: memref<1x4x128xf32, #tpu.memory_space<vmem>>, %arg2: memref<1x128xf32, #tpu.memory_space<vmem>>, %arg3: memref<1x128xf32, #tpu.memory_space<vmem>>, %arg4: memref<1x4x128xf32, #tpu.memory_space<vmem>>) attributes {dimension_semantics = [#tpu.dimension_semantics<parallel>], iteration_bounds = array<i64: 2>, scalar_prefetch = 0 : i64, scratch_operands = 0 : i64, tpu.core_type = #tpu.core_type<tc>, window_params = [{transform_indices = @transform_0, window_bounds = array<i64: 1, 4, 128>}, {pipeline_mode = #tpu.pipeline_mode<synchronous>, transform_indices = @transform_1, window_bounds = array<i64: 1, 128>}, {pipeline_mode = #tpu.pipeline_mode<synchronous>, transform_indices = @transform_2, window_bounds = array<i64: 1, 128>}, {transform_indices = @transform_3, window_bounds = array<i64: 1, 4, 128>}]} {
    %c0 = arith.constant 0 : index
    %c0_0 = arith.constant 0 : index
    %c0_1 = arith.constant 0 : index
    %0 = vector.load %arg1[%c0, %c0_0, %c0_1] : memref<1x4x128xf32, #tpu.memory_space<vmem>>, vector<1x4x128xf32>
    %c0_2 = arith.constant 0 : index
    %c0_3 = arith.constant 0 : index
    %1 = vector.load %arg2[%c0_2, %c0_3] : memref<1x128xf32, #tpu.memory_space<vmem>>, vector<1x128xf32>
    %2 = vector.shape_cast %1 : vector<1x128xf32> to vector<128xf32>
    %3 = vector.shape_cast %2 : vector<128xf32> to vector<1x1x128xf32>
    %4 = vector.broadcast %3 : vector<1x1x128xf32> to vector<1x4x128xf32>
    %5 = arith.mulf %0, %4 : vector<1x4x128xf32>
    %c0_4 = arith.constant 0 : index
    %c0_5 = arith.constant 0 : index
    %6 = vector.load %arg3[%c0_4, %c0_5] : memref<1x128xf32, #tpu.memory_space<vmem>>, vector<1x128xf32>
    %7 = vector.shape_cast %6 : vector<1x128xf32> to vector<128xf32>
    %8 = vector.shape_cast %7 : vector<128xf32> to vector<1x1x128xf32>
    %9 = vector.broadcast %8 : vector<1x1x128xf32> to vector<1x4x128xf32>
    %10 = arith.addf %5, %9 : vector<1x4x128xf32>
    %cst = arith.constant 0.000000e+00 : f32
    %11 = vector.broadcast %cst : f32 to vector<1x4x128xf32>
    %12 = arith.maximumf %10, %11 : vector<1x4x128xf32>
    %c0_6 = arith.constant 0 : index
    %c0_7 = arith.constant 0 : index
    %c0_8 = arith.constant 0 : index
    %13 = vector.load %arg4[%c0_6, %c0_7, %c0_8] : memref<1x4x128xf32, #tpu.memory_space<vmem>>, vector<1x4x128xf32>
    tpu.vector_store %arg4[%c0_6, %c0_7, %c0_8], %12 {strides = array<i32>} : memref<1x4x128xf32, #tpu.memory_space<vmem>>, vector<1x4x128xf32>,
    return
  }
  func.func @transform_0(%arg0: i32) -> (i32, i32, i32) {
    %c0_i32 = arith.constant 0 : i32
    %c0_i32_0 = arith.constant 0 : i32
    %c0_i32_1 = arith.constant 0 : i32
    return %arg0, %c0_i32, %c0_i32_0 : i32, i32, i32
  }
  func.func @transform_1(%arg0: i32) -> (i32, i32) {
    %c0_i32 = arith.constant 0 : i32
    %c0_i32_0 = arith.constant 0 : i32
    %c0_i32_1 = arith.constant 0 : i32
    return %c0_i32, %c0_i32_0 : i32, i32
  }
  func.func @transform_2(%arg0: i32) -> (i32, i32) {
    %c0_i32 = arith.constant 0 : i32
    %c0_i32_0 = arith.constant 0 : i32
    %c0_i32_1 = arith.constant 0 : i32
    return %c0_i32, %c0_i32_0 : i32, i32
  }
  func.func @transform_3(%arg0: i32) -> (i32, i32, i32) {
    %c0_i32 = arith.constant 0 : i32
    %c0_i32_0 = arith.constant 0 : i32
    %c0_i32_1 = arith.constant 0 : i32
    return %arg0, %c0_i32, %c0_i32_0 : i32, i32, i32
  }
}

module attributes {stable_mosaic.version = 11 : i64} {
  func.func @_conv3x3_kernel(%arg0: i32, %arg1: memref<1x4x128xf32, #tpu.memory_space<vmem>>, %arg2: memref<3x128x128xbf16, #tpu.memory_space<vmem>>, %arg3: memref<1x128xf32, #tpu.memory_space<vmem>>, %arg4: memref<1x128xf32, #tpu.memory_space<vmem>>, %arg5: memref<1x128xf32, #tpu.memory_space<vmem>>, %arg6: memref<1x4x128xf32, #tpu.memory_space<vmem>>, %arg7: memref<1x1x128xf32, #tpu.memory_space<vmem>>, %arg8: memref<1x1x128xf32, #tpu.memory_space<vmem>>, %arg9: memref<20x128xf32, #tpu.memory_space<vmem>>) attributes {dimension_semantics = [#tpu.dimension_semantics<parallel>], iteration_bounds = array<i64: 2>, scalar_prefetch = 0 : i64, scratch_operands = 1 : i64, tpu.core_type = #tpu.core_type<tc>, window_params = [{transform_indices = @transform_0, window_bounds = array<i64: 1, 4, 128>}, {pipeline_mode = #tpu.pipeline_mode<synchronous>, transform_indices = @transform_1, window_bounds = array<i64: 3, 128, 128>}, {pipeline_mode = #tpu.pipeline_mode<synchronous>, transform_indices = @transform_2, window_bounds = array<i64: 1, 128>}, {pipeline_mode = #tpu.pipeline_mode<synchronous>, transform_indices = @transform_3, window_bounds = array<i64: 1, 128>}, {pipeline_mode = #tpu.pipeline_mode<synchronous>, transform_indices = @transform_4, window_bounds = array<i64: 1, 128>}, {transform_indices = @transform_5, window_bounds = array<i64: 1, 4, 128>}, {transform_indices = @transform_6, window_bounds = array<i64: 1, 1, 128>}, {transform_indices = @transform_7, window_bounds = array<i64: 1, 1, 128>}]} {
    %c0 = arith.constant 0 : index
    %c0_0 = arith.constant 0 : index
    %c0_1 = arith.constant 0 : index
    %0 = vector.load %arg1[%c0, %c0_0, %c0_1] : memref<1x4x128xf32, #tpu.memory_space<vmem>>, vector<1x4x128xf32>
    %1 = vector.shape_cast %0 : vector<1x4x128xf32> to vector<4x128xf32>
    %c0_2 = arith.constant 0 : index
    %c0_3 = arith.constant 0 : index
    %2 = vector.load %arg4[%c0_2, %c0_3] : memref<1x128xf32, #tpu.memory_space<vmem>>, vector<1x128xf32>
    %3 = vector.shape_cast %2 : vector<1x128xf32> to vector<128xf32>
    %4 = vector.shape_cast %3 : vector<128xf32> to vector<1x128xf32>
    %5 = vector.broadcast %4 : vector<1x128xf32> to vector<4x128xf32>
    %6 = arith.mulf %1, %5 : vector<4x128xf32>
    %c0_4 = arith.constant 0 : index
    %c0_5 = arith.constant 0 : index
    %7 = vector.load %arg5[%c0_4, %c0_5] : memref<1x128xf32, #tpu.memory_space<vmem>>, vector<1x128xf32>
    %8 = vector.shape_cast %7 : vector<1x128xf32> to vector<128xf32>
    %9 = vector.shape_cast %8 : vector<128xf32> to vector<1x128xf32>
    %10 = vector.broadcast %9 : vector<1x128xf32> to vector<4x128xf32>
    %11 = arith.addf %6, %10 : vector<4x128xf32>
    %cst = arith.constant 0.000000e+00 : f32
    %12 = vector.broadcast %cst : f32 to vector<4x128xf32>
    %13 = arith.maximumf %11, %12 : vector<4x128xf32>
    %cst_6 = arith.constant 0.000000e+00 : f32
    %14 = vector.broadcast %cst_6 : f32 to vector<20x128xf32>
    %c0_7 = arith.constant 0 : index
    %c0_8 = arith.constant 0 : index
    %15 = vector.load %arg9[%c0_7, %c0_8] : memref<20x128xf32, #tpu.memory_space<vmem>>, vector<20x128xf32>
    tpu.vector_store %arg9[%c0_7, %c0_8], %14 {strides = array<i32>} : memref<20x128xf32, #tpu.memory_space<vmem>>, vector<20x128xf32>,
    %c8 = arith.constant 8 : index
    %c0_9 = arith.constant 0 : index
    %16 = vector.load %arg9[%c8, %c0_9] : memref<20x128xf32, #tpu.memory_space<vmem>>, vector<4x128xf32>
    tpu.vector_store %arg9[%c8, %c0_9], %13 {strides = array<i32>} : memref<20x128xf32, #tpu.memory_space<vmem>>, vector<4x128xf32>,
    %cst_10 = arith.constant 0.000000e+00 : f32
    %17 = vector.broadcast %cst_10 : f32 to vector<4x128xf32>
    %c7 = arith.constant 7 : index
    %c0_11 = arith.constant 0 : index
    %18 = vector.load %arg9[%c7, %c0_11] : memref<20x128xf32, #tpu.memory_space<vmem>>, vector<4x128xf32>
    %19 = arith.truncf %18 : vector<4x128xf32> to vector<4x128xbf16>
    %c0_12 = arith.constant 0 : index
    %c0_13 = arith.constant 0 : index
    %c0_14 = arith.constant 0 : index
    %20 = vector.load %arg2[%c0_12, %c0_13, %c0_14] : memref<3x128x128xbf16, #tpu.memory_space<vmem>>, vector<1x128x128xbf16>
    %21 = vector.shape_cast %20 : vector<1x128x128xbf16> to vector<128x128xbf16>
    %cst_15 = arith.constant dense<0.000000e+00> : vector<4x128xf32>
    %22 = tpu.matmul %19, %21, %cst_15 {dimension_numbers = #tpu.dot_dimension_numbers<[1], [0], [0], [1], [0, 0, 1, 1], [], []>} : vector<4x128xbf16>, vector<128x128xbf16>, vector<4x128xf32> -> vector<4x128xf32>
    %23 = arith.addf %17, %22 : vector<4x128xf32>
    %c8_16 = arith.constant 8 : index
    %c0_17 = arith.constant 0 : index
    %24 = vector.load %arg9[%c8_16, %c0_17] : memref<20x128xf32, #tpu.memory_space<vmem>>, vector<4x128xf32>
    %25 = arith.truncf %24 : vector<4x128xf32> to vector<4x128xbf16>
    %c1 = arith.constant 1 : index
    %c0_18 = arith.constant 0 : index
    %c0_19 = arith.constant 0 : index
    %26 = vector.load %arg2[%c1, %c0_18, %c0_19] : memref<3x128x128xbf16, #tpu.memory_space<vmem>>, vector<1x128x128xbf16>
    %27 = vector.shape_cast %26 : vector<1x128x128xbf16> to vector<128x128xbf16>
    %cst_20 = arith.constant dense<0.000000e+00> : vector<4x128xf32>
    %28 = tpu.matmul %25, %27, %cst_20 {dimension_numbers = #tpu.dot_dimension_numbers<[1], [0], [0], [1], [0, 0, 1, 1], [], []>} : vector<4x128xbf16>, vector<128x128xbf16>, vector<4x128xf32> -> vector<4x128xf32>
    %29 = arith.addf %23, %28 : vector<4x128xf32>
    %c9 = arith.constant 9 : index
    %c0_21 = arith.constant 0 : index
    %30 = vector.load %arg9[%c9, %c0_21] : memref<20x128xf32, #tpu.memory_space<vmem>>, vector<4x128xf32>
    %31 = arith.truncf %30 : vector<4x128xf32> to vector<4x128xbf16>
    %c2 = arith.constant 2 : index
    %c0_22 = arith.constant 0 : index
    %c0_23 = arith.constant 0 : index
    %32 = vector.load %arg2[%c2, %c0_22, %c0_23] : memref<3x128x128xbf16, #tpu.memory_space<vmem>>, vector<1x128x128xbf16>
    %33 = vector.shape_cast %32 : vector<1x128x128xbf16> to vector<128x128xbf16>
    %cst_24 = arith.constant dense<0.000000e+00> : vector<4x128xf32>
    %34 = tpu.matmul %31, %33, %cst_24 {dimension_numbers = #tpu.dot_dimension_numbers<[1], [0], [0], [1], [0, 0, 1, 1], [], []>} : vector<4x128xbf16>, vector<128x128xbf16>, vector<4x128xf32> -> vector<4x128xf32>
    %35 = arith.addf %29, %34 : vector<4x128xf32>
    %c0_25 = arith.constant 0 : index
    %c0_26 = arith.constant 0 : index
    %36 = vector.load %arg3[%c0_25, %c0_26] : memref<1x128xf32, #tpu.memory_space<vmem>>, vector<1x128xf32>
    %37 = vector.shape_cast %36 : vector<1x128xf32> to vector<128xf32>
    %38 = vector.shape_cast %37 : vector<128xf32> to vector<1x128xf32>
    %39 = vector.broadcast %38 : vector<1x128xf32> to vector<4x128xf32>
    %40 = arith.addf %35, %39 : vector<4x128xf32>
    %41 = vector.shape_cast %40 : vector<4x128xf32> to vector<1x4x128xf32>
    %c0_27 = arith.constant 0 : index
    %c0_28 = arith.constant 0 : index
    %c0_29 = arith.constant 0 : index
    %42 = vector.load %arg6[%c0_27, %c0_28, %c0_29] : memref<1x4x128xf32, #tpu.memory_space<vmem>>, vector<1x4x128xf32>
    tpu.vector_store %arg6[%c0_27, %c0_28, %c0_29], %41 {strides = array<i32>} : memref<1x4x128xf32, #tpu.memory_space<vmem>>, vector<1x4x128xf32>,
    %cst_30 = arith.constant dense<0.000000e+00> : vector<128xf32>
    %43 = vector.multi_reduction <add>, %40, %cst_30 [0] : vector<4x128xf32> to vector<128xf32>
    %44 = vector.shape_cast %43 : vector<128xf32> to vector<1x128xf32>
    %45 = vector.shape_cast %44 : vector<1x128xf32> to vector<1x1x128xf32>
    %c0_31 = arith.constant 0 : index
    %c0_32 = arith.constant 0 : index
    %c0_33 = arith.constant 0 : index
    %46 = vector.load %arg7[%c0_31, %c0_32, %c0_33] : memref<1x1x128xf32, #tpu.memory_space<vmem>>, vector<1x1x128xf32>
    tpu.vector_store %arg7[%c0_31, %c0_32, %c0_33], %45 {strides = array<i32>} : memref<1x1x128xf32, #tpu.memory_space<vmem>>, vector<1x1x128xf32>,
    %47 = arith.mulf %40, %40 : vector<4x128xf32>
    %cst_34 = arith.constant dense<0.000000e+00> : vector<128xf32>
    %48 = vector.multi_reduction <add>, %47, %cst_34 [0] : vector<4x128xf32> to vector<128xf32>
    %49 = vector.shape_cast %48 : vector<128xf32> to vector<1x128xf32>
    %50 = vector.shape_cast %49 : vector<1x128xf32> to vector<1x1x128xf32>
    %c0_35 = arith.constant 0 : index
    %c0_36 = arith.constant 0 : index
    %c0_37 = arith.constant 0 : index
    %51 = vector.load %arg8[%c0_35, %c0_36, %c0_37] : memref<1x1x128xf32, #tpu.memory_space<vmem>>, vector<1x1x128xf32>
    tpu.vector_store %arg8[%c0_35, %c0_36, %c0_37], %50 {strides = array<i32>} : memref<1x1x128xf32, #tpu.memory_space<vmem>>, vector<1x1x128xf32>,
    return
  }
  func.func @transform_0(%arg0: i32) -> (i32, i32, i32) {
    %c0_i32 = arith.constant 0 : i32
    %c0_i32_0 = arith.constant 0 : i32
    %c0_i32_1 = arith.constant 0 : i32
    return %arg0, %c0_i32, %c0_i32_0 : i32, i32, i32
  }
  func.func @transform_1(%arg0: i32) -> (i32, i32, i32) {
    %c0_i32 = arith.constant 0 : i32
    %c0_i32_0 = arith.constant 0 : i32
    %c0_i32_1 = arith.constant 0 : i32
    %c0_i32_2 = arith.constant 0 : i32
    return %c0_i32, %c0_i32_0, %c0_i32_1 : i32, i32, i32
  }
  func.func @transform_2(%arg0: i32) -> (i32, i32) {
    %c0_i32 = arith.constant 0 : i32
    %c0_i32_0 = arith.constant 0 : i32
    %c0_i32_1 = arith.constant 0 : i32
    return %c0_i32, %c0_i32_0 : i32, i32
  }
  func.func @transform_3(%arg0: i32) -> (i32, i32) {
    %c0_i32 = arith.constant 0 : i32
    %c0_i32_0 = arith.constant 0 : i32
    %c0_i32_1 = arith.constant 0 : i32
    return %c0_i32, %c0_i32_0 : i32, i32
  }
  func.func @transform_4(%arg0: i32) -> (i32, i32) {
    %c0_i32 = arith.constant 0 : i32
    %c0_i32_0 = arith.constant 0 : i32
    %c0_i32_1 = arith.constant 0 : i32
    return %c0_i32, %c0_i32_0 : i32, i32
  }
  func.func @transform_5(%arg0: i32) -> (i32, i32, i32) {
    %c0_i32 = arith.constant 0 : i32
    %c0_i32_0 = arith.constant 0 : i32
    %c0_i32_1 = arith.constant 0 : i32
    return %arg0, %c0_i32, %c0_i32_0 : i32, i32, i32
  }
  func.func @transform_6(%arg0: i32) -> (i32, i32, i32) {
    %c0_i32 = arith.constant 0 : i32
    %c0_i32_0 = arith.constant 0 : i32
    %c0_i32_1 = arith.constant 0 : i32
    return %arg0, %c0_i32, %c0_i32_0 : i32, i32, i32
  }
  func.func @transform_7(%arg0: i32) -> (i32, i32, i32) {
    %c0_i32 = arith.constant 0 : i32
    %c0_i32_0 = arith.constant 0 : i32
    %c0_i32_1 = arith.constant 0 : i32
    return %arg0, %c0_i32, %c0_i32_0 : i32, i32, i32
  }
}

module attributes {stable_mosaic.version = 11 : i64} {
  func.func @_conv3x3_kernel(%arg0: i32, %arg1: memref<1x8x384xf32, #tpu.memory_space<vmem>>, %arg2: memref<3x384x128xbf16, #tpu.memory_space<vmem>>, %arg3: memref<1x128xf32, #tpu.memory_space<vmem>>, %arg4: memref<1x384xf32, #tpu.memory_space<vmem>>, %arg5: memref<1x384xf32, #tpu.memory_space<vmem>>, %arg6: memref<1x8x128xf32, #tpu.memory_space<vmem>>, %arg7: memref<1x1x128xf32, #tpu.memory_space<vmem>>, %arg8: memref<1x1x128xf32, #tpu.memory_space<vmem>>, %arg9: memref<24x384xf32, #tpu.memory_space<vmem>>) attributes {dimension_semantics = [#tpu.dimension_semantics<parallel>], iteration_bounds = array<i64: 2>, scalar_prefetch = 0 : i64, scratch_operands = 1 : i64, tpu.core_type = #tpu.core_type<tc>, window_params = [{transform_indices = @transform_0, window_bounds = array<i64: 1, 8, 384>}, {pipeline_mode = #tpu.pipeline_mode<synchronous>, transform_indices = @transform_1, window_bounds = array<i64: 3, 384, 128>}, {pipeline_mode = #tpu.pipeline_mode<synchronous>, transform_indices = @transform_2, window_bounds = array<i64: 1, 128>}, {pipeline_mode = #tpu.pipeline_mode<synchronous>, transform_indices = @transform_3, window_bounds = array<i64: 1, 384>}, {pipeline_mode = #tpu.pipeline_mode<synchronous>, transform_indices = @transform_4, window_bounds = array<i64: 1, 384>}, {transform_indices = @transform_5, window_bounds = array<i64: 1, 8, 128>}, {transform_indices = @transform_6, window_bounds = array<i64: 1, 1, 128>}, {transform_indices = @transform_7, window_bounds = array<i64: 1, 1, 128>}]} {
    %c0 = arith.constant 0 : index
    %c0_0 = arith.constant 0 : index
    %c0_1 = arith.constant 0 : index
    %0 = vector.load %arg1[%c0, %c0_0, %c0_1] : memref<1x8x384xf32, #tpu.memory_space<vmem>>, vector<1x8x384xf32>
    %1 = vector.shape_cast %0 : vector<1x8x384xf32> to vector<8x384xf32>
    %cst = arith.constant 0.000000e+00 : f32
    %2 = vector.broadcast %cst : f32 to vector<24x384xf32>
    %c0_2 = arith.constant 0 : index
    %c0_3 = arith.constant 0 : index
    %3 = vector.load %arg9[%c0_2, %c0_3] : memref<24x384xf32, #tpu.memory_space<vmem>>, vector<24x384xf32>
    tpu.vector_store %arg9[%c0_2, %c0_3], %2 {strides = array<i32>} : memref<24x384xf32, #tpu.memory_space<vmem>>, vector<24x384xf32>,
    %c8 = arith.constant 8 : index
    %c0_4 = arith.constant 0 : index
    %4 = vector.load %arg9[%c8, %c0_4] : memref<24x384xf32, #tpu.memory_space<vmem>>, vector<8x384xf32>
    tpu.vector_store %arg9[%c8, %c0_4], %1 {strides = array<i32>} : memref<24x384xf32, #tpu.memory_space<vmem>>, vector<8x384xf32>,
    %cst_5 = arith.constant 0.000000e+00 : f32
    %5 = vector.broadcast %cst_5 : f32 to vector<8x128xf32>
    %c7 = arith.constant 7 : index
    %c0_6 = arith.constant 0 : index
    %6 = vector.load %arg9[%c7, %c0_6] : memref<24x384xf32, #tpu.memory_space<vmem>>, vector<8x384xf32>
    %7 = arith.truncf %6 : vector<8x384xf32> to vector<8x384xbf16>
    %c0_7 = arith.constant 0 : index
    %c0_8 = arith.constant 0 : index
    %c0_9 = arith.constant 0 : index
    %8 = vector.load %arg2[%c0_7, %c0_8, %c0_9] : memref<3x384x128xbf16, #tpu.memory_space<vmem>>, vector<1x384x128xbf16>
    %9 = vector.shape_cast %8 : vector<1x384x128xbf16> to vector<384x128xbf16>
    %cst_10 = arith.constant dense<0.000000e+00> : vector<8x128xf32>
    %10 = tpu.matmul %7, %9, %cst_10 {dimension_numbers = #tpu.dot_dimension_numbers<[1], [0], [0], [1], [0, 0, 1, 1], [], []>} : vector<8x384xbf16>, vector<384x128xbf16>, vector<8x128xf32> -> vector<8x128xf32>
    %11 = arith.addf %5, %10 : vector<8x128xf32>
    %c8_11 = arith.constant 8 : index
    %c0_12 = arith.constant 0 : index
    %12 = vector.load %arg9[%c8_11, %c0_12] : memref<24x384xf32, #tpu.memory_space<vmem>>, vector<8x384xf32>
    %13 = arith.truncf %12 : vector<8x384xf32> to vector<8x384xbf16>
    %c1 = arith.constant 1 : index
    %c0_13 = arith.constant 0 : index
    %c0_14 = arith.constant 0 : index
    %14 = vector.load %arg2[%c1, %c0_13, %c0_14] : memref<3x384x128xbf16, #tpu.memory_space<vmem>>, vector<1x384x128xbf16>
    %15 = vector.shape_cast %14 : vector<1x384x128xbf16> to vector<384x128xbf16>
    %cst_15 = arith.constant dense<0.000000e+00> : vector<8x128xf32>
    %16 = tpu.matmul %13, %15, %cst_15 {dimension_numbers = #tpu.dot_dimension_numbers<[1], [0], [0], [1], [0, 0, 1, 1], [], []>} : vector<8x384xbf16>, vector<384x128xbf16>, vector<8x128xf32> -> vector<8x128xf32>
    %17 = arith.addf %11, %16 : vector<8x128xf32>
    %c9 = arith.constant 9 : index
    %c0_16 = arith.constant 0 : index
    %18 = vector.load %arg9[%c9, %c0_16] : memref<24x384xf32, #tpu.memory_space<vmem>>, vector<8x384xf32>
    %19 = arith.truncf %18 : vector<8x384xf32> to vector<8x384xbf16>
    %c2 = arith.constant 2 : index
    %c0_17 = arith.constant 0 : index
    %c0_18 = arith.constant 0 : index
    %20 = vector.load %arg2[%c2, %c0_17, %c0_18] : memref<3x384x128xbf16, #tpu.memory_space<vmem>>, vector<1x384x128xbf16>
    %21 = vector.shape_cast %20 : vector<1x384x128xbf16> to vector<384x128xbf16>
    %cst_19 = arith.constant dense<0.000000e+00> : vector<8x128xf32>
    %22 = tpu.matmul %19, %21, %cst_19 {dimension_numbers = #tpu.dot_dimension_numbers<[1], [0], [0], [1], [0, 0, 1, 1], [], []>} : vector<8x384xbf16>, vector<384x128xbf16>, vector<8x128xf32> -> vector<8x128xf32>
    %23 = arith.addf %17, %22 : vector<8x128xf32>
    %c0_20 = arith.constant 0 : index
    %c0_21 = arith.constant 0 : index
    %24 = vector.load %arg3[%c0_20, %c0_21] : memref<1x128xf32, #tpu.memory_space<vmem>>, vector<1x128xf32>
    %25 = vector.shape_cast %24 : vector<1x128xf32> to vector<128xf32>
    %26 = vector.shape_cast %25 : vector<128xf32> to vector<1x128xf32>
    %27 = vector.broadcast %26 : vector<1x128xf32> to vector<8x128xf32>
    %28 = arith.addf %23, %27 : vector<8x128xf32>
    %29 = vector.shape_cast %28 : vector<8x128xf32> to vector<1x8x128xf32>
    %c0_22 = arith.constant 0 : index
    %c0_23 = arith.constant 0 : index
    %c0_24 = arith.constant 0 : index
    %30 = vector.load %arg6[%c0_22, %c0_23, %c0_24] : memref<1x8x128xf32, #tpu.memory_space<vmem>>, vector<1x8x128xf32>
    tpu.vector_store %arg6[%c0_22, %c0_23, %c0_24], %29 {strides = array<i32>} : memref<1x8x128xf32, #tpu.memory_space<vmem>>, vector<1x8x128xf32>,
    %cst_25 = arith.constant dense<0.000000e+00> : vector<128xf32>
    %31 = vector.multi_reduction <add>, %28, %cst_25 [0] : vector<8x128xf32> to vector<128xf32>
    %32 = vector.shape_cast %31 : vector<128xf32> to vector<1x128xf32>
    %33 = vector.shape_cast %32 : vector<1x128xf32> to vector<1x1x128xf32>
    %c0_26 = arith.constant 0 : index
    %c0_27 = arith.constant 0 : index
    %c0_28 = arith.constant 0 : index
    %34 = vector.load %arg7[%c0_26, %c0_27, %c0_28] : memref<1x1x128xf32, #tpu.memory_space<vmem>>, vector<1x1x128xf32>
    tpu.vector_store %arg7[%c0_26, %c0_27, %c0_28], %33 {strides = array<i32>} : memref<1x1x128xf32, #tpu.memory_space<vmem>>, vector<1x1x128xf32>,
    %35 = arith.mulf %28, %28 : vector<8x128xf32>
    %cst_29 = arith.constant dense<0.000000e+00> : vector<128xf32>
    %36 = vector.multi_reduction <add>, %35, %cst_29 [0] : vector<8x128xf32> to vector<128xf32>
    %37 = vector.shape_cast %36 : vector<128xf32> to vector<1x128xf32>
    %38 = vector.shape_cast %37 : vector<1x128xf32> to vector<1x1x128xf32>
    %c0_30 = arith.constant 0 : index
    %c0_31 = arith.constant 0 : index
    %c0_32 = arith.constant 0 : index
    %39 = vector.load %arg8[%c0_30, %c0_31, %c0_32] : memref<1x1x128xf32, #tpu.memory_space<vmem>>, vector<1x1x128xf32>
    tpu.vector_store %arg8[%c0_30, %c0_31, %c0_32], %38 {strides = array<i32>} : memref<1x1x128xf32, #tpu.memory_space<vmem>>, vector<1x1x128xf32>,
    return
  }
  func.func @transform_0(%arg0: i32) -> (i32, i32, i32) {
    %c0_i32 = arith.constant 0 : i32
    %c0_i32_0 = arith.constant 0 : i32
    %c0_i32_1 = arith.constant 0 : i32
    return %arg0, %c0_i32, %c0_i32_0 : i32, i32, i32
  }
  func.func @transform_1(%arg0: i32) -> (i32, i32, i32) {
    %c0_i32 = arith.constant 0 : i32
    %c0_i32_0 = arith.constant 0 : i32
    %c0_i32_1 = arith.constant 0 : i32
    %c0_i32_2 = arith.constant 0 : i32
    return %c0_i32, %c0_i32_0, %c0_i32_1 : i32, i32, i32
  }
  func.func @transform_2(%arg0: i32) -> (i32, i32) {
    %c0_i32 = arith.constant 0 : i32
    %c0_i32_0 = arith.constant 0 : i32
    %c0_i32_1 = arith.constant 0 : i32
    return %c0_i32, %c0_i32_0 : i32, i32
  }
  func.func @transform_3(%arg0: i32) -> (i32, i32) {
    %c0_i32 = arith.constant 0 : i32
    %c0_i32_0 = arith.constant 0 : i32
    %c0_i32_1 = arith.constant 0 : i32
    return %c0_i32, %c0_i32_0 : i32, i32
  }
  func.func @transform_4(%arg0: i32) -> (i32, i32) {
    %c0_i32 = arith.constant 0 : i32
    %c0_i32_0 = arith.constant 0 : i32
    %c0_i32_1 = arith.constant 0 : i32
    return %c0_i32, %c0_i32_0 : i32, i32
  }
  func.func @transform_5(%arg0: i32) -> (i32, i32, i32) {
    %c0_i32 = arith.constant 0 : i32
    %c0_i32_0 = arith.constant 0 : i32
    %c0_i32_1 = arith.constant 0 : i32
    return %arg0, %c0_i32, %c0_i32_0 : i32, i32, i32
  }
  func.func @transform_6(%arg0: i32) -> (i32, i32, i32) {
    %c0_i32 = arith.constant 0 : i32
    %c0_i32_0 = arith.constant 0 : i32
    %c0_i32_1 = arith.constant 0 : i32
    return %arg0, %c0_i32, %c0_i32_0 : i32, i32, i32
  }
  func.func @transform_7(%arg0: i32) -> (i32, i32, i32) {
    %c0_i32 = arith.constant 0 : i32
    %c0_i32_0 = arith.constant 0 : i32
    %c0_i32_1 = arith.constant 0 : i32
    return %arg0, %c0_i32, %c0_i32_0 : i32, i32, i32
  }
}

module attributes {stable_mosaic.version = 11 : i64} {
  func.func @_conv3x3_kernel(%arg0: i32, %arg1: memref<1x16x384xf32, #tpu.memory_space<vmem>>, %arg2: memref<3x384x128xbf16, #tpu.memory_space<vmem>>, %arg3: memref<1x128xf32, #tpu.memory_space<vmem>>, %arg4: memref<1x384xf32, #tpu.memory_space<vmem>>, %arg5: memref<1x384xf32, #tpu.memory_space<vmem>>, %arg6: memref<1x16x128xf32, #tpu.memory_space<vmem>>, %arg7: memref<1x1x128xf32, #tpu.memory_space<vmem>>, %arg8: memref<1x1x128xf32, #tpu.memory_space<vmem>>, %arg9: memref<32x384xf32, #tpu.memory_space<vmem>>) attributes {dimension_semantics = [#tpu.dimension_semantics<parallel>], iteration_bounds = array<i64: 2>, scalar_prefetch = 0 : i64, scratch_operands = 1 : i64, tpu.core_type = #tpu.core_type<tc>, window_params = [{transform_indices = @transform_0, window_bounds = array<i64: 1, 16, 384>}, {pipeline_mode = #tpu.pipeline_mode<synchronous>, transform_indices = @transform_1, window_bounds = array<i64: 3, 384, 128>}, {pipeline_mode = #tpu.pipeline_mode<synchronous>, transform_indices = @transform_2, window_bounds = array<i64: 1, 128>}, {pipeline_mode = #tpu.pipeline_mode<synchronous>, transform_indices = @transform_3, window_bounds = array<i64: 1, 384>}, {pipeline_mode = #tpu.pipeline_mode<synchronous>, transform_indices = @transform_4, window_bounds = array<i64: 1, 384>}, {transform_indices = @transform_5, window_bounds = array<i64: 1, 16, 128>}, {transform_indices = @transform_6, window_bounds = array<i64: 1, 1, 128>}, {transform_indices = @transform_7, window_bounds = array<i64: 1, 1, 128>}]} {
    %c0 = arith.constant 0 : index
    %c0_0 = arith.constant 0 : index
    %c0_1 = arith.constant 0 : index
    %0 = vector.load %arg1[%c0, %c0_0, %c0_1] : memref<1x16x384xf32, #tpu.memory_space<vmem>>, vector<1x16x384xf32>
    %1 = vector.shape_cast %0 : vector<1x16x384xf32> to vector<16x384xf32>
    %cst = arith.constant 0.000000e+00 : f32
    %2 = vector.broadcast %cst : f32 to vector<32x384xf32>
    %c0_2 = arith.constant 0 : index
    %c0_3 = arith.constant 0 : index
    %3 = vector.load %arg9[%c0_2, %c0_3] : memref<32x384xf32, #tpu.memory_space<vmem>>, vector<32x384xf32>
    tpu.vector_store %arg9[%c0_2, %c0_3], %2 {strides = array<i32>} : memref<32x384xf32, #tpu.memory_space<vmem>>, vector<32x384xf32>,
    %c8 = arith.constant 8 : index
    %c0_4 = arith.constant 0 : index
    %4 = vector.load %arg9[%c8, %c0_4] : memref<32x384xf32, #tpu.memory_space<vmem>>, vector<16x384xf32>
    tpu.vector_store %arg9[%c8, %c0_4], %1 {strides = array<i32>} : memref<32x384xf32, #tpu.memory_space<vmem>>, vector<16x384xf32>,
    %cst_5 = arith.constant 0.000000e+00 : f32
    %5 = vector.broadcast %cst_5 : f32 to vector<16x128xf32>
    %c7 = arith.constant 7 : index
    %c0_6 = arith.constant 0 : index
    %6 = vector.load %arg9[%c7, %c0_6] : memref<32x384xf32, #tpu.memory_space<vmem>>, vector<16x384xf32>
    %7 = arith.truncf %6 : vector<16x384xf32> to vector<16x384xbf16>
    %c0_7 = arith.constant 0 : index
    %c0_8 = arith.constant 0 : index
    %c0_9 = arith.constant 0 : index
    %8 = vector.load %arg2[%c0_7, %c0_8, %c0_9] : memref<3x384x128xbf16, #tpu.memory_space<vmem>>, vector<1x384x128xbf16>
    %9 = vector.shape_cast %8 : vector<1x384x128xbf16> to vector<384x128xbf16>
    %cst_10 = arith.constant dense<0.000000e+00> : vector<16x128xf32>
    %10 = tpu.matmul %7, %9, %cst_10 {dimension_numbers = #tpu.dot_dimension_numbers<[1], [0], [0], [1], [0, 0, 1, 1], [], []>} : vector<16x384xbf16>, vector<384x128xbf16>, vector<16x128xf32> -> vector<16x128xf32>
    %11 = arith.addf %5, %10 : vector<16x128xf32>
    %c8_11 = arith.constant 8 : index
    %c0_12 = arith.constant 0 : index
    %12 = vector.load %arg9[%c8_11, %c0_12] : memref<32x384xf32, #tpu.memory_space<vmem>>, vector<16x384xf32>
    %13 = arith.truncf %12 : vector<16x384xf32> to vector<16x384xbf16>
    %c1 = arith.constant 1 : index
    %c0_13 = arith.constant 0 : index
    %c0_14 = arith.constant 0 : index
    %14 = vector.load %arg2[%c1, %c0_13, %c0_14] : memref<3x384x128xbf16, #tpu.memory_space<vmem>>, vector<1x384x128xbf16>
    %15 = vector.shape_cast %14 : vector<1x384x128xbf16> to vector<384x128xbf16>
    %cst_15 = arith.constant dense<0.000000e+00> : vector<16x128xf32>
    %16 = tpu.matmul %13, %15, %cst_15 {dimension_numbers = #tpu.dot_dimension_numbers<[1], [0], [0], [1], [0, 0, 1, 1], [], []>} : vector<16x384xbf16>, vector<384x128xbf16>, vector<16x128xf32> -> vector<16x128xf32>
    %17 = arith.addf %11, %16 : vector<16x128xf32>
    %c9 = arith.constant 9 : index
    %c0_16 = arith.constant 0 : index
    %18 = vector.load %arg9[%c9, %c0_16] : memref<32x384xf32, #tpu.memory_space<vmem>>, vector<16x384xf32>
    %19 = arith.truncf %18 : vector<16x384xf32> to vector<16x384xbf16>
    %c2 = arith.constant 2 : index
    %c0_17 = arith.constant 0 : index
    %c0_18 = arith.constant 0 : index
    %20 = vector.load %arg2[%c2, %c0_17, %c0_18] : memref<3x384x128xbf16, #tpu.memory_space<vmem>>, vector<1x384x128xbf16>
    %21 = vector.shape_cast %20 : vector<1x384x128xbf16> to vector<384x128xbf16>
    %cst_19 = arith.constant dense<0.000000e+00> : vector<16x128xf32>
    %22 = tpu.matmul %19, %21, %cst_19 {dimension_numbers = #tpu.dot_dimension_numbers<[1], [0], [0], [1], [0, 0, 1, 1], [], []>} : vector<16x384xbf16>, vector<384x128xbf16>, vector<16x128xf32> -> vector<16x128xf32>
    %23 = arith.addf %17, %22 : vector<16x128xf32>
    %c0_20 = arith.constant 0 : index
    %c0_21 = arith.constant 0 : index
    %24 = vector.load %arg3[%c0_20, %c0_21] : memref<1x128xf32, #tpu.memory_space<vmem>>, vector<1x128xf32>
    %25 = vector.shape_cast %24 : vector<1x128xf32> to vector<128xf32>
    %26 = vector.shape_cast %25 : vector<128xf32> to vector<1x128xf32>
    %27 = vector.broadcast %26 : vector<1x128xf32> to vector<16x128xf32>
    %28 = arith.addf %23, %27 : vector<16x128xf32>
    %29 = vector.shape_cast %28 : vector<16x128xf32> to vector<1x16x128xf32>
    %c0_22 = arith.constant 0 : index
    %c0_23 = arith.constant 0 : index
    %c0_24 = arith.constant 0 : index
    %30 = vector.load %arg6[%c0_22, %c0_23, %c0_24] : memref<1x16x128xf32, #tpu.memory_space<vmem>>, vector<1x16x128xf32>
    tpu.vector_store %arg6[%c0_22, %c0_23, %c0_24], %29 {strides = array<i32>} : memref<1x16x128xf32, #tpu.memory_space<vmem>>, vector<1x16x128xf32>,
    %cst_25 = arith.constant dense<0.000000e+00> : vector<128xf32>
    %31 = vector.multi_reduction <add>, %28, %cst_25 [0] : vector<16x128xf32> to vector<128xf32>
    %32 = vector.shape_cast %31 : vector<128xf32> to vector<1x128xf32>
    %33 = vector.shape_cast %32 : vector<1x128xf32> to vector<1x1x128xf32>
    %c0_26 = arith.constant 0 : index
    %c0_27 = arith.constant 0 : index
    %c0_28 = arith.constant 0 : index
    %34 = vector.load %arg7[%c0_26, %c0_27, %c0_28] : memref<1x1x128xf32, #tpu.memory_space<vmem>>, vector<1x1x128xf32>
    tpu.vector_store %arg7[%c0_26, %c0_27, %c0_28], %33 {strides = array<i32>} : memref<1x1x128xf32, #tpu.memory_space<vmem>>, vector<1x1x128xf32>,
    %35 = arith.mulf %28, %28 : vector<16x128xf32>
    %cst_29 = arith.constant dense<0.000000e+00> : vector<128xf32>
    %36 = vector.multi_reduction <add>, %35, %cst_29 [0] : vector<16x128xf32> to vector<128xf32>
    %37 = vector.shape_cast %36 : vector<128xf32> to vector<1x128xf32>
    %38 = vector.shape_cast %37 : vector<1x128xf32> to vector<1x1x128xf32>
    %c0_30 = arith.constant 0 : index
    %c0_31 = arith.constant 0 : index
    %c0_32 = arith.constant 0 : index
    %39 = vector.load %arg8[%c0_30, %c0_31, %c0_32] : memref<1x1x128xf32, #tpu.memory_space<vmem>>, vector<1x1x128xf32>
    tpu.vector_store %arg8[%c0_30, %c0_31, %c0_32], %38 {strides = array<i32>} : memref<1x1x128xf32, #tpu.memory_space<vmem>>, vector<1x1x128xf32>,
    return
  }
  func.func @transform_0(%arg0: i32) -> (i32, i32, i32) {
    %c0_i32 = arith.constant 0 : i32
    %c0_i32_0 = arith.constant 0 : i32
    %c0_i32_1 = arith.constant 0 : i32
    return %arg0, %c0_i32, %c0_i32_0 : i32, i32, i32
  }
  func.func @transform_1(%arg0: i32) -> (i32, i32, i32) {
    %c0_i32 = arith.constant 0 : i32
    %c0_i32_0 = arith.constant 0 : i32
    %c0_i32_1 = arith.constant 0 : i32
    %c0_i32_2 = arith.constant 0 : i32
    return %c0_i32, %c0_i32_0, %c0_i32_1 : i32, i32, i32
  }
  func.func @transform_2(%arg0: i32) -> (i32, i32) {
    %c0_i32 = arith.constant 0 : i32
    %c0_i32_0 = arith.constant 0 : i32
    %c0_i32_1 = arith.constant 0 : i32
    return %c0_i32, %c0_i32_0 : i32, i32
  }
  func.func @transform_3(%arg0: i32) -> (i32, i32) {
    %c0_i32 = arith.constant 0 : i32
    %c0_i32_0 = arith.constant 0 : i32
    %c0_i32_1 = arith.constant 0 : i32
    return %c0_i32, %c0_i32_0 : i32, i32
  }
  func.func @transform_4(%arg0: i32) -> (i32, i32) {
    %c0_i32 = arith.constant 0 : i32
    %c0_i32_0 = arith.constant 0 : i32
    %c0_i32_1 = arith.constant 0 : i32
    return %c0_i32, %c0_i32_0 : i32, i32
  }
  func.func @transform_5(%arg0: i32) -> (i32, i32, i32) {
    %c0_i32 = arith.constant 0 : i32
    %c0_i32_0 = arith.constant 0 : i32
    %c0_i32_1 = arith.constant 0 : i32
    return %arg0, %c0_i32, %c0_i32_0 : i32, i32, i32
  }
  func.func @transform_6(%arg0: i32) -> (i32, i32, i32) {
    %c0_i32 = arith.constant 0 : i32
    %c0_i32_0 = arith.constant 0 : i32
    %c0_i32_1 = arith.constant 0 : i32
    return %arg0, %c0_i32, %c0_i32_0 : i32, i32, i32
  }
  func.func @transform_7(%arg0: i32) -> (i32, i32, i32) {
    %c0_i32 = arith.constant 0 : i32
    %c0_i32_0 = arith.constant 0 : i32
    %c0_i32_1 = arith.constant 0 : i32
    return %arg0, %c0_i32, %c0_i32_0 : i32, i32, i32
  }
}

module attributes {stable_mosaic.version = 11 : i64} {
  func.func @_conv1x1_kernel(%arg0: i32, %arg1: memref<1x16x128xf32, #tpu.memory_space<vmem>>, %arg2: memref<128x32xbf16, #tpu.memory_space<vmem>>, %arg3: memref<1x32xf32, #tpu.memory_space<vmem>>, %arg4: memref<1x128xf32, #tpu.memory_space<vmem>>, %arg5: memref<1x128xf32, #tpu.memory_space<vmem>>, %arg6: memref<1x16x32xf32, #tpu.memory_space<vmem>>) attributes {dimension_semantics = [#tpu.dimension_semantics<parallel>], iteration_bounds = array<i64: 2>, scalar_prefetch = 0 : i64, scratch_operands = 0 : i64, tpu.core_type = #tpu.core_type<tc>, window_params = [{transform_indices = @transform_0, window_bounds = array<i64: 1, 16, 128>}, {pipeline_mode = #tpu.pipeline_mode<synchronous>, transform_indices = @transform_1, window_bounds = array<i64: 128, 32>}, {pipeline_mode = #tpu.pipeline_mode<synchronous>, transform_indices = @transform_2, window_bounds = array<i64: 1, 32>}, {pipeline_mode = #tpu.pipeline_mode<synchronous>, transform_indices = @transform_3, window_bounds = array<i64: 1, 128>}, {pipeline_mode = #tpu.pipeline_mode<synchronous>, transform_indices = @transform_4, window_bounds = array<i64: 1, 128>}, {transform_indices = @transform_5, window_bounds = array<i64: 1, 16, 32>}]} {
    %c0 = arith.constant 0 : index
    %c0_0 = arith.constant 0 : index
    %c0_1 = arith.constant 0 : index
    %0 = vector.load %arg1[%c0, %c0_0, %c0_1] : memref<1x16x128xf32, #tpu.memory_space<vmem>>, vector<1x16x128xf32>
    %1 = vector.shape_cast %0 : vector<1x16x128xf32> to vector<16x128xf32>
    %c0_2 = arith.constant 0 : index
    %c0_3 = arith.constant 0 : index
    %2 = vector.load %arg4[%c0_2, %c0_3] : memref<1x128xf32, #tpu.memory_space<vmem>>, vector<1x128xf32>
    %3 = vector.shape_cast %2 : vector<1x128xf32> to vector<128xf32>
    %4 = vector.shape_cast %3 : vector<128xf32> to vector<1x128xf32>
    %5 = vector.broadcast %4 : vector<1x128xf32> to vector<16x128xf32>
    %6 = arith.mulf %1, %5 : vector<16x128xf32>
    %c0_4 = arith.constant 0 : index
    %c0_5 = arith.constant 0 : index
    %7 = vector.load %arg5[%c0_4, %c0_5] : memref<1x128xf32, #tpu.memory_space<vmem>>, vector<1x128xf32>
    %8 = vector.shape_cast %7 : vector<1x128xf32> to vector<128xf32>
    %9 = vector.shape_cast %8 : vector<128xf32> to vector<1x128xf32>
    %10 = vector.broadcast %9 : vector<1x128xf32> to vector<16x128xf32>
    %11 = arith.addf %6, %10 : vector<16x128xf32>
    %cst = arith.constant 0.000000e+00 : f32
    %12 = vector.broadcast %cst : f32 to vector<16x128xf32>
    %13 = arith.maximumf %11, %12 : vector<16x128xf32>
    %14 = arith.truncf %13 : vector<16x128xf32> to vector<16x128xbf16>
    %c0_6 = arith.constant 0 : index
    %c0_7 = arith.constant 0 : index
    %15 = vector.load %arg2[%c0_6, %c0_7] : memref<128x32xbf16, #tpu.memory_space<vmem>>, vector<128x32xbf16>
    %cst_8 = arith.constant dense<0.000000e+00> : vector<16x32xf32>
    %16 = tpu.matmul %14, %15, %cst_8 {dimension_numbers = #tpu.dot_dimension_numbers<[1], [0], [0], [1], [0, 0, 1, 1], [], []>} : vector<16x128xbf16>, vector<128x32xbf16>, vector<16x32xf32> -> vector<16x32xf32>
    %c0_9 = arith.constant 0 : index
    %c0_10 = arith.constant 0 : index
    %17 = vector.load %arg3[%c0_9, %c0_10] : memref<1x32xf32, #tpu.memory_space<vmem>>, vector<1x32xf32>
    %18 = vector.shape_cast %17 : vector<1x32xf32> to vector<32xf32>
    %19 = vector.shape_cast %18 : vector<32xf32> to vector<1x32xf32>
    %20 = vector.broadcast %19 : vector<1x32xf32> to vector<16x32xf32>
    %21 = arith.addf %16, %20 : vector<16x32xf32>
    %22 = vector.shape_cast %21 : vector<16x32xf32> to vector<1x16x32xf32>
    %c0_11 = arith.constant 0 : index
    %c0_12 = arith.constant 0 : index
    %c0_13 = arith.constant 0 : index
    %23 = vector.load %arg6[%c0_11, %c0_12, %c0_13] : memref<1x16x32xf32, #tpu.memory_space<vmem>>, vector<1x16x32xf32>
    tpu.vector_store %arg6[%c0_11, %c0_12, %c0_13], %22 {strides = array<i32>} : memref<1x16x32xf32, #tpu.memory_space<vmem>>, vector<1x16x32xf32>,
    return
  }
  func.func @transform_0(%arg0: i32) -> (i32, i32, i32) {
    %c0_i32 = arith.constant 0 : i32
    %c0_i32_0 = arith.constant 0 : i32
    %c0_i32_1 = arith.constant 0 : i32
    return %arg0, %c0_i32, %c0_i32_0 : i32, i32, i32
  }
  func.func @transform_1(%arg0: i32) -> (i32, i32) {
    %c0_i32 = arith.constant 0 : i32
    %c0_i32_0 = arith.constant 0 : i32
    %c0_i32_1 = arith.constant 0 : i32
    return %c0_i32, %c0_i32_0 : i32, i32
  }
  func.func @transform_2(%arg0: i32) -> (i32, i32) {
    %c0_i32 = arith.constant 0 : i32
    %c0_i32_0 = arith.constant 0 : i32
    %c0_i32_1 = arith.constant 0 : i32
    return %c0_i32, %c0_i32_0 : i32, i32
  }
  func.func @transform_3(%arg0: i32) -> (i32, i32) {
    %c0_i32 = arith.constant 0 : i32
    %c0_i32_0 = arith.constant 0 : i32
    %c0_i32_1 = arith.constant 0 : i32
    return %c0_i32, %c0_i32_0 : i32, i32
  }
  func.func @transform_4(%arg0: i32) -> (i32, i32) {
    %c0_i32 = arith.constant 0 : i32
    %c0_i32_0 = arith.constant 0 : i32
    %c0_i32_1 = arith.constant 0 : i32
    return %c0_i32, %c0_i32_0 : i32, i32
  }
  func.func @transform_5(%arg0: i32) -> (i32, i32, i32) {
    %c0_i32 = arith.constant 0 : i32
    %c0_i32_0 = arith.constant 0 : i32
    %c0_i32_1 = arith.constant 0 : i32
    return %arg0, %c0_i32, %c0_i32_0 : i32, i32, i32
  }
}

</mosaic_0001>

<bundles_post_ra>
// kernel: tile.323
= control target key start
LH: loop header
LB: loop body
LE: loop exit
PB: predicated region body
PF: predicated region fallthrough
CT: control target
= control target key end

     0   :  { %s22_s0 = inlined_call_operand.vmem [shape: f32[32], index: 0, kind: input, shape index: {}]   ;;  %s23_s1 = inlined_call_operand.vmem [shape: f32[4,32], index: 1, kind: output, shape index: {}]  }
   0x1   :  { %v4_v0 = vld [vmem:[%s22_s0] ss:$0 sm:$0xff] }
   0x2   :  { %5 = vst [vmem:[%s23_s1] sm:$0xf] %v4_v0 }

// kernel: tile.324
= control target key start
LH: loop header
LB: loop body
LE: loop exit
PB: predicated region body
PF: predicated region fallthrough
CT: control target
= control target key end

     0   :  { %vm7_vm0 = vcmask 261120   ;;  %s37_s8 = smov 32   ;;  %s38_s9 = smov 64   ;;  %vm13_vm1 = vcmask 1048320   ;;  %vm19_vm2 = vcmask 785920   ;;  %vm25_vm3 = vcmask 523520   ;;  %s55_s0 = inlined_call_operand.vmem [shape: f32[4,32], index: 0, kind: input, shape index: {}]   ;;  %s56_s1 = inlined_call_operand.vmem [shape: f32[1,128], index: 1, kind: output, shape index: {}]  }
   0x1   :  { %v4_v0 = vld [vmem:[%s55_s0] sm:$0xf]  ;;  %s36_s0 = smov 96  }
   0x2   :  { %5 = vst [vmem:[#allocation1] sm:$0xf] %v4_v0 }
   0x9   :  { %v10_v1 = vld [vmem:[#allocation1 + $0x3] sm:$0x1]   ;;  %v22_v2 = vld [vmem:[#allocation1 + $0x1] sm:$0x1]   ;;  %v6_v3 = vld [vmem:[#allocation1] sm:$0x1]  }
   0xa   :  { %11 = vrot.lane.b32.xlu0 %v10_v1, %s36_s0  ;;  %23 = vrot.lane.b32.xlu1 %v22_v2, %s37_s8  ;;  %v16_v4 = vld [vmem:[#allocation1 + $0x2] sm:$0x1]   ;;  %8 = vst.msk [vmem:[#allocation0] sm:$0x1] %vm7_vm0, %v6_v3  }
   0xe   :  { %17 = vrot.lane.b32.xlu0 %v16_v4, %s38_s9 }
  0x7c   :  { %v12_v5 = vpop.permute.xlu0 %11   ;;  %v24_v6 = vpop.permute.xlu1 %23  }
  0x7d   :  { %14 = vst.msk [vmem:[#allocation0] sm:$0x1] %vm13_vm1, %v12_v5  }
  0x80   :  { %v18_v7 = vpop.permute.xlu0 %17  }
  0x81   :  { %20 = vst.msk [vmem:[#allocation0] sm:$0x1] %vm19_vm2, %v18_v7  }
  0x82   :  { %26 = vst.msk [vmem:[#allocation0] sm:$0x1] %vm25_vm3, %v24_v6  }
  0x89   :  { %v30_v8 = vld [vmem:[#allocation0] sm:$0x1] }
  0x8a   :  { %32 = vst [vmem:[%s56_s1] sm:$0x1] %v30_v8 }

// kernel: tile.278
= control target key start
LH: loop header
LB: loop body
LE: loop exit
PB: predicated region body
PF: predicated region fallthrough
CT: control target
= control target key end

     0   :  { %s22_s0 = inlined_call_operand.vmem [shape: f32[16], index: 0, kind: input, shape index: {}]   ;;  %s23_s1 = inlined_call_operand.vmem [shape: f32[8,16], index: 1, kind: output, shape index: {}]  }
   0x1   :  { %v4_v0 = vld [vmem:[%s22_s0] ss:$0 sm:$0xff] }
   0x2   :  { %5 = vst [vmem:[%s23_s1] sm:$0xff] %v4_v0 }

// kernel: tile.279
= control target key start
LH: loop header
LB: loop body
LE: loop exit
PB: predicated region body
PF: predicated region fallthrough
CT: control target
= control target key end

     0   :  { %s67_s10 = smov 112   ;;  %s68_s11 = smov 80   ;;  %vm3_vm0 = vcmask 130048   ;;  %vm9_vm1 = vcmask 1048448   ;;  %vm15_vm2 = vcmask 917248   ;;  %vm21_vm3 = vcmask 786048   ;;  %s111_s0 = inlined_call_operand.vmem [shape: f32[8,16], index: 0, kind: input, shape index: {}]   ;;  %s112_s1 = inlined_call_operand.vmem [shape: f32[1,128], index: 1, kind: output, shape index: {}]  }
   0x1   :  { %v53_v0 = vld [vmem:[%s111_s0 + $0x7] sm:$0x1]   ;;  %v55_v1 = vld [vmem:[%s111_s0 + $0x5] sm:$0x1]   ;;  %v54_v2 = vld [vmem:[%s111_s0 + $0x6] sm:$0x1]  }
   0x2   :  { %7 = vrot.lane.b32.xlu0 %v53_v0, %s67_s10  ;;  %19 = vrot.lane.b32.xlu1 %v55_v1, %s68_s11  ;;  %v56_v3 = vld [vmem:[%s111_s0 + $0x4] sm:$0x1]   ;;  %v2_v4 = vld [vmem:[%s111_s0] sm:$0x1]   ;;  %s69_s18 = smov 96   ;;  %s70_s19 = smov 64  }
   0x3   :  { %4 = vst.msk [vmem:[#allocation0] sm:$0x1] %vm3_vm0, %v2_v4   ;;  %v57_v5 = vld [vmem:[%s111_s0 + $0x3] sm:$0x1]   ;;  %v58_v6 = vld [vmem:[%s111_s0 + $0x2] sm:$0x1]  }
   0x4   :  { %s71_s24 = smov 48   ;;  %s72_s25 = smov 32   ;;  %v59_v7 = vld [vmem:[%s111_s0 + $0x1] sm:$0x1]   ;;  %vm27_vm4 = vcmask 654848   ;;  %vm33_vm5 = vcmask 523648  }
   0x5   :  { %s73_s0 = smov 16   ;;  %vm39_vm6 = vcmask 392448   ;;  %vm45_vm7 = vcmask 261248  }
   0x6   :  { %13 = vrot.lane.b32.xlu0 %v54_v2, %s69_s18  ;;  %25 = vrot.lane.b32.xlu1 %v56_v3, %s70_s19 }
   0xa   :  { %31 = vrot.lane.b32.xlu0 %v57_v5, %s71_s24  ;;  %37 = vrot.lane.b32.xlu1 %v58_v6, %s72_s25 }
   0xe   :  { %43 = vrot.lane.b32.xlu0 %v59_v7, %s73_s0 }
  0x74   :  { %v8_v8 = vpop.permute.xlu0 %7   ;;  %v20_v9 = vpop.permute.xlu1 %19  }
  0x75   :  { %10 = vst.msk [vmem:[#allocation0] sm:$0x1] %vm9_vm1, %v8_v8  }
  0x78   :  { %v14_v10 = vpop.permute.xlu0 %13   ;;  %v26_v11 = vpop.permute.xlu1 %25  }
  0x79   :  { %16 = vst.msk [vmem:[#allocation0] sm:$0x1] %vm15_vm2, %v14_v10  }
  0x7a   :  { %22 = vst.msk [vmem:[#allocation0] sm:$0x1] %vm21_vm3, %v20_v9  }
  0x7b   :  { %28 = vst.msk [vmem:[#allocation0] sm:$0x1] %vm27_vm4, %v26_v11  }
  0x7c   :  { %v32_v12 = vpop.permute.xlu0 %31   ;;  %v38_v13 = vpop.permute.xlu1 %37  }
  0x7d   :  { %34 = vst.msk [vmem:[#allocation0] sm:$0x1] %vm33_vm5, %v32_v12  }
  0x7e   :  { %40 = vst.msk [vmem:[#allocation0] sm:$0x1] %vm39_vm6, %v38_v13  }
  0x80   :  { %v44_v14 = vpop.permute.xlu0 %43  }
  0x81   :  { %46 = vst.msk [vmem:[#allocation0] sm:$0x1] %vm45_vm7, %v44_v14  }
  0x88   :  { %v50_v15 = vld [vmem:[#allocation0] sm:$0x1] }
  0x89   :  { %52 = vst [vmem:[%s112_s1] sm:$0x1] %v50_v15 }

// kernel: tile.233
= control target key start
LH: loop header
LB: loop body
LE: loop exit
PB: predicated region body
PF: predicated region fallthrough
CT: control target
= control target key end

     0   :  { %s28_s0 = inlined_call_operand.vmem [shape: f32[8], index: 0, kind: input, shape index: {}]   ;;  %s29_s1 = inlined_call_operand.vmem [shape: f32[16,8], index: 1, kind: output, shape index: {}]  }
   0x1   :  { %v4_v0 = vld [vmem:[%s28_s0] ss:$0 sm:$0xff] }
   0x2   :  { %5 = vst [vmem:[%s29_s1] sm:$0xff] %v4_v0  ;;  %8 = vst [vmem:[%s29_s1 + $0x8] sm:$0xff] %v4_v0 }

// kernel: tile.234
= control target key start
LH: loop header
LB: loop body
LE: loop exit
PB: predicated region body
PF: predicated region fallthrough
CT: control target
= control target key end

     0   :  { %s131_s10 = smov 120   ;;  %s132_s11 = smov 104   ;;  %vm3_vm0 = vcmask 64512   ;;  %vm9_vm1 = vcmask 1048512   ;;  %vm15_vm2 = vcmask 982912   ;;  %vm21_vm3 = vcmask 917312   ;;  %s207_s0 = inlined_call_operand.vmem [shape: f32[16,8], index: 0, kind: input, shape index: {}]   ;;  %s208_s1 = inlined_call_operand.vmem [shape: f32[1,128], index: 1, kind: output, shape index: {}]  }
   0x1   :  { %v101_v0 = vld [vmem:[%s207_s0 + $0xf] sm:$0x1]   ;;  %v103_v1 = vld [vmem:[%s207_s0 + $0xd] sm:$0x1]   ;;  %v102_v2 = vld [vmem:[%s207_s0 + $0xe] sm:$0x1]  }
   0x2   :  { %7 = vrot.lane.b32.xlu0 %v101_v0, %s131_s10  ;;  %19 = vrot.lane.b32.xlu1 %v103_v1, %s132_s11  ;;  %v104_v3 = vld [vmem:[%s207_s0 + $0xc] sm:$0x1]   ;;  %s133_s16 = smov 112   ;;  %s134_s17 = smov 96   ;;  %v105_v4 = vld [vmem:[%s207_s0 + $0xb] sm:$0x1]  }
   0x3   :  { %v106_v5 = vld [vmem:[%s207_s0 + $0xa] sm:$0x1]   ;;  %v2_v6 = vld [vmem:[%s207_s0] sm:$0x1]   ;;  %s135_s24 = smov 88   ;;  %s136_s25 = smov 80  }
   0x4   :  { %4 = vst.msk [vmem:[#allocation0] sm:$0x1] %vm3_vm0, %v2_v6   ;;  %v107_v7 = vld [vmem:[%s207_s0 + $0x9] sm:$0x1]   ;;  %v108_v8 = vld [vmem:[%s207_s0 + $0x8] sm:$0x1]  }
   0x5   :  { %s137_s30 = smov 72   ;;  %s138_s2 = smov 64   ;;  %v109_v9 = vld [vmem:[%s207_s0 + $0x7] sm:$0x1]   ;;  %v110_v10 = vld [vmem:[%s207_s0 + $0x6] sm:$0x1]  }
   0x6   :  { %13 = vrot.lane.b32.xlu0 %v102_v2, %s133_s16  ;;  %25 = vrot.lane.b32.xlu1 %v104_v3, %s134_s17  ;;  %s139_s7 = smov 56   ;;  %s140_s8 = smov 48   ;;  %v111_v11 = vld [vmem:[%s207_s0 + $0x5] sm:$0x1]   ;;  %v112_v12 = vld [vmem:[%s207_s0 + $0x4] sm:$0x1]  }
   0x7   :  { %s141_s13 = smov 40   ;;  %s142_s14 = smov 32   ;;  %v113_v13 = vld [vmem:[%s207_s0 + $0x3] sm:$0x1]   ;;  %v114_v14 = vld [vmem:[%s207_s0 + $0x2] sm:$0x1]  }
   0x8   :  { %s143_s19 = smov 24   ;;  %s144_s20 = smov 16   ;;  %v115_v15 = vld [vmem:[%s207_s0 + $0x1] sm:$0x1]   ;;  %vm27_vm4 = vcmask 851712   ;;  %vm33_vm5 = vcmask 786112  }
   0x9   :  { %s145_s0 = smov 8   ;;  %vm39_vm6 = vcmask 720512   ;;  %vm45_vm7 = vcmask 654912   ;;  %vm51_vm8 = vcmask 589312   ;;  %vm57_vm9 = vcmask 523712  }
   0xa   :  { %31 = vrot.lane.b32.xlu0 %v105_v4, %s135_s24  ;;  %37 = vrot.lane.b32.xlu1 %v106_v5, %s136_s25  ;;  %vm63_vm10 = vcmask 458112   ;;  %vm69_vm11 = vcmask 392512   ;;  %vm75_vm12 = vcmask 326912   ;;  %vm81_vm13 = vcmask 261312  }
   0xb   :  { %vm87_vm14 = vcmask 195712   ;;  %vm93_vm15 = vcmask 130112  }
   0xe   :  { %43 = vrot.lane.b32.xlu0 %v107_v7, %s137_s30  ;;  %49 = vrot.lane.b32.xlu1 %v108_v8, %s138_s2 }
  0x12   :  { %55 = vrot.lane.b32.xlu0 %v109_v9, %s139_s7  ;;  %61 = vrot.lane.b32.xlu1 %v110_v10, %s140_s8 }
  0x16   :  { %67 = vrot.lane.b32.xlu0 %v111_v11, %s141_s13  ;;  %73 = vrot.lane.b32.xlu1 %v112_v12, %s142_s14 }
  0x1a   :  { %79 = vrot.lane.b32.xlu0 %v113_v13, %s143_s19  ;;  %85 = vrot.lane.b32.xlu1 %v114_v14, %s144_s20 }
  0x1e   :  { %91 = vrot.lane.b32.xlu0 %v115_v15, %s145_s0 }
  0x74   :  { %v8_v16 = vpop.permute.xlu0 %7   ;;  %v20_v17 = vpop.permute.xlu1 %19  }
  0x75   :  { %10 = vst.msk [vmem:[#allocation0] sm:$0x1] %vm9_vm1, %v8_v16  }
  0x78   :  { %v14_v18 = vpop.permute.xlu0 %13   ;;  %v26_v19 = vpop.permute.xlu1 %25  }
  0x79   :  { %16 = vst.msk [vmem:[#allocation0] sm:$0x1] %vm15_vm2, %v14_v18  }
  0x7a   :  { %22 = vst.msk [vmem:[#allocation0] sm:$0x1] %vm21_vm3, %v20_v17  }
  0x7b   :  { %28 = vst.msk [vmem:[#allocation0] sm:$0x1] %vm27_vm4, %v26_v19  }
  0x7c   :  { %v32_v20 = vpop.permute.xlu0 %31   ;;  %v38_v21 = vpop.permute.xlu1 %37  }
  0x7d   :  { %34 = vst.msk [vmem:[#allocation0] sm:$0x1] %vm33_vm5, %v32_v20  }
  0x7e   :  { %40 = vst.msk [vmem:[#allocation0] sm:$0x1] %vm39_vm6, %v38_v21  }
  0x80   :  { %v44_v22 = vpop.permute.xlu0 %43   ;;  %v50_v23 = vpop.permute.xlu1 %49  }
  0x81   :  { %46 = vst.msk [vmem:[#allocation0] sm:$0x1] %vm45_vm7, %v44_v22  }
  0x82   :  { %52 = vst.msk [vmem:[#allocation0] sm:$0x1] %vm51_vm8, %v50_v23  }
  0x84   :  { %v56_v24 = vpop.permute.xlu0 %55   ;;  %v62_v25 = vpop.permute.xlu1 %61  }
  0x85   :  { %58 = vst.msk [vmem:[#allocation0] sm:$0x1] %vm57_vm9, %v56_v24  }
  0x86   :  { %64 = vst.msk [vmem:[#allocation0] sm:$0x1] %vm63_vm10, %v62_v25  }
  0x88   :  { %v68_v26 = vpop.permute.xlu0 %67   ;;  %v74_v27 = vpop.permute.xlu1 %73  }
  0x89   :  { %70 = vst.msk [vmem:[#allocation0] sm:$0x1] %vm69_vm11, %v68_v26  }
  0x8a   :  { %76 = vst.msk [vmem:[#allocation0] sm:$0x1] %vm75_vm12, %v74_v27  }
  0x8c   :  { %v80_v28 = vpop.permute.xlu0 %79   ;;  %v86_v29 = vpop.permute.xlu1 %85  }
  0x8d   :  { %82 = vst.msk [vmem:[#allocation0] sm:$0x1] %vm81_vm13, %v80_v28  }
  0x8e   :  { %88 = vst.msk [vmem:[#allocation0] sm:$0x1] %vm87_vm14, %v86_v29  }
  0x90   :  { %v92_v30 = vpop.permute.xlu0 %91  }
  0x91   :  { %94 = vst.msk [vmem:[#allocation0] sm:$0x1] %vm93_vm15, %v92_v30  }
  0x98   :  { %v98_v31 = vld [vmem:[#allocation0] sm:$0x1] }
  0x99   :  { %100 = vst [vmem:[%s208_s1] sm:$0x1] %v98_v31 }

// kernel: tile.448
= control target key start
LH: loop header
LB: loop body
LE: loop exit
PB: predicated region body
PF: predicated region fallthrough
CT: control target
= control target key end

     0   :  { %s28_s0 = inlined_call_operand.vmem [shape: f32[2], index: 0, kind: input, shape index: {}]   ;;  %s29_s1 = inlined_call_operand.vmem [shape: f32[16,2], index: 1, kind: output, shape index: {}]  }
   0x1   :  { %v4_v0 = vld [vmem:[%s28_s0] ss:$0 sm:$0xff] }
   0x2   :  { %5 = vst [vmem:[%s29_s1] sm:$0xff] %v4_v0  ;;  %8 = vst [vmem:[%s29_s1 + $0x8] sm:$0xff] %v4_v0 }

// kernel: tile.449
= control target key start
LH: loop header
LB: loop body
LE: loop exit
PB: predicated region body
PF: predicated region fallthrough
CT: control target
= control target key end

     0   :  { %s131_s10 = smov 30   ;;  %s132_s11 = smov 26   ;;  %vm3_vm0 = vcmask 15360   ;;  %vm9_vm1 = vcmask 261360   ;;  %vm15_vm2 = vcmask 244960   ;;  %vm21_vm3 = vcmask 228560   ;;  %s207_s0 = inlined_call_operand.vmem [shape: f32[16,2], index: 0, kind: input, shape index: {}]   ;;  %s208_s1 = inlined_call_operand.vmem [shape: f32[1,32], index: 1, kind: output, shape index: {}]  }
   0x1   :  { %v101_v0 = vld [vmem:[%s207_s0 + $0xf] sm:$0x1]   ;;  %v103_v1 = vld [vmem:[%s207_s0 + $0xd] sm:$0x1]   ;;  %v102_v2 = vld [vmem:[%s207_s0 + $0xe] sm:$0x1]  }
   0x2   :  { %7 = vrot.lane.b32.xlu0 %v101_v0, %s131_s10  ;;  %19 = vrot.lane.b32.xlu1 %v103_v1, %s132_s11  ;;  %v104_v3 = vld [vmem:[%s207_s0 + $0xc] sm:$0x1]   ;;  %s133_s16 = smov 28   ;;  %s134_s17 = smov 24   ;;  %v105_v4 = vld [vmem:[%s207_s0 + $0xb] sm:$0x1]  }
   0x3   :  { %v106_v5 = vld [vmem:[%s207_s0 + $0xa] sm:$0x1]   ;;  %v2_v6 = vld [vmem:[%s207_s0] sm:$0x1]   ;;  %s135_s24 = smov 22   ;;  %s136_s25 = smov 20  }
   0x4   :  { %4 = vst.msk [vmem:[#allocation0] sm:$0x1] %vm3_vm0, %v2_v6   ;;  %v107_v7 = vld [vmem:[%s207_s0 + $0x9] sm:$0x1]   ;;  %v108_v8 = vld [vmem:[%s207_s0 + $0x8] sm:$0x1]  }
   0x5   :  { %s137_s30 = smov 18   ;;  %s138_s2 = smov 16   ;;  %v109_v9 = vld [vmem:[%s207_s0 + $0x7] sm:$0x1]   ;;  %v110_v10 = vld [vmem:[%s207_s0 + $0x6] sm:$0x1]  }
   0x6   :  { %13 = vrot.lane.b32.xlu0 %v102_v2, %s133_s16  ;;  %25 = vrot.lane.b32.xlu1 %v104_v3, %s134_s17  ;;  %s139_s7 = smov 14   ;;  %s140_s8 = smov 12   ;;  %v111_v11 = vld [vmem:[%s207_s0 + $0x5] sm:$0x1]   ;;  %v112_v12 = vld [vmem:[%s207_s0 + $0x4] sm:$0x1]  }
   0x7   :  { %s141_s13 = smov 10   ;;  %s142_s14 = smov 8   ;;  %v113_v13 = vld [vmem:[%s207_s0 + $0x3] sm:$0x1]   ;;  %v114_v14 = vld [vmem:[%s207_s0 + $0x2] sm:$0x1]  }
   0x8   :  { %s143_s19 = smov 6   ;;  %s144_s20 = smov 4   ;;  %v115_v15 = vld [vmem:[%s207_s0 + $0x1] sm:$0x1]   ;;  %vm27_vm4 = vcmask 212160   ;;  %vm33_vm5 = vcmask 195760  }
   0x9   :  { %s145_s0 = smov 2   ;;  %vm39_vm6 = vcmask 179360   ;;  %vm45_vm7 = vcmask 162960   ;;  %vm51_vm8 = vcmask 146560   ;;  %vm57_vm9 = vcmask 130160  }
   0xa   :  { %31 = vrot.lane.b32.xlu0 %v105_v4, %s135_s24  ;;  %37 = vrot.lane.b32.xlu1 %v106_v5, %s136_s25  ;;  %vm63_vm10 = vcmask 113760   ;;  %vm69_vm11 = vcmask 97360   ;;  %vm75_vm12 = vcmask 80960   ;;  %vm81_vm13 = vcmask 64560  }
   0xb   :  { %vm87_vm14 = vcmask 48160   ;;  %vm93_vm15 = vcmask 31760  }
   0xe   :  { %43 = vrot.lane.b32.xlu0 %v107_v7, %s137_s30  ;;  %49 = vrot.lane.b32.xlu1 %v108_v8, %s138_s2 }
  0x12   :  { %55 = vrot.lane.b32.xlu0 %v109_v9, %s139_s7  ;;  %61 = vrot.lane.b32.xlu1 %v110_v10, %s140_s8 }
  0x16   :  { %67 = vrot.lane.b32.xlu0 %v111_v11, %s141_s13  ;;  %73 = vrot.lane.b32.xlu1 %v112_v12, %s142_s14 }
  0x1a   :  { %79 = vrot.lane.b32.xlu0 %v113_v13, %s143_s19  ;;  %85 = vrot.lane.b32.xlu1 %v114_v14, %s144_s20 }
  0x1e   :  { %91 = vrot.lane.b32.xlu0 %v115_v15, %s145_s0 }
  0x74   :  { %v8_v16 = vpop.permute.xlu0 %7   ;;  %v20_v17 = vpop.permute.xlu1 %19  }
  0x75   :  { %10 = vst.msk [vmem:[#allocation0] sm:$0x1] %vm9_vm1, %v8_v16  }
  0x78   :  { %v14_v18 = vpop.permute.xlu0 %13   ;;  %v26_v19 = vpop.permute.xlu1 %25  }
  0x79   :  { %16 = vst.msk [vmem:[#allocation0] sm:$0x1] %vm15_vm2, %v14_v18  }
  0x7a   :  { %22 = vst.msk [vmem:[#allocation0] sm:$0x1] %vm21_vm3, %v20_v17  }
  0x7b   :  { %28 = vst.msk [vmem:[#allocation0] sm:$0x1] %vm27_vm4, %v26_v19  }
  0x7c   :  { %v32_v20 = vpop.permute.xlu0 %31   ;;  %v38_v21 = vpop.permute.xlu1 %37  }
  0x7d   :  { %34 = vst.msk [vmem:[#allocation0] sm:$0x1] %vm33_vm5, %v32_v20  }
  0x7e   :  { %40 = vst.msk [vmem:[#allocation0] sm:$0x1] %vm39_vm6, %v38_v21  }
  0x80   :  { %v44_v22 = vpop.permute.xlu0 %43   ;;  %v50_v23 = vpop.permute.xlu1 %49  }
  0x81   :  { %46 = vst.msk [vmem:[#allocation0] sm:$0x1] %vm45_vm7, %v44_v22  }
  0x82   :  { %52 = vst.msk [vmem:[#allocation0] sm:$0x1] %vm51_vm8, %v50_v23  }
  0x84   :  { %v56_v24 = vpop.permute.xlu0 %55   ;;  %v62_v25 = vpop.permute.xlu1 %61  }
  0x85   :  { %58 = vst.msk [vmem:[#allocation0] sm:$0x1] %vm57_vm9, %v56_v24  }
  0x86   :  { %64 = vst.msk [vmem:[#allocation0] sm:$0x1] %vm63_vm10, %v62_v25  }
  0x88   :  { %v68_v26 = vpop.permute.xlu0 %67   ;;  %v74_v27 = vpop.permute.xlu1 %73  }
  0x89   :  { %70 = vst.msk [vmem:[#allocation0] sm:$0x1] %vm69_vm11, %v68_v26  }
  0x8a   :  { %76 = vst.msk [vmem:[#allocation0] sm:$0x1] %vm75_vm12, %v74_v27  }
  0x8c   :  { %v80_v28 = vpop.permute.xlu0 %79   ;;  %v86_v29 = vpop.permute.xlu1 %85  }
  0x8d   :  { %82 = vst.msk [vmem:[#allocation0] sm:$0x1] %vm81_vm13, %v80_v28  }
  0x8e   :  { %88 = vst.msk [vmem:[#allocation0] sm:$0x1] %vm87_vm14, %v86_v29  }
  0x90   :  { %v92_v30 = vpop.permute.xlu0 %91  }
  0x91   :  { %94 = vst.msk [vmem:[#allocation0] sm:$0x1] %vm93_vm15, %v92_v30  }
  0x98   :  { %v98_v31 = vld [vmem:[#allocation0] sm:$0x1] }
  0x99   :  { %100 = vst [vmem:[%s208_s1] sm:$0x1] %v98_v31 }

// kernel: unet_forward.20
= control target key start
LH: loop header
LB: loop body
LE: loop exit
PB: predicated region body
PF: predicated region fallthrough
CT: control target
= control target key end

     0   :  { %s806_s24 = smov 0   ;;  %s880_s0 = inlined_call_operand.vmem [shape: f32[2,16,48], index: 0, kind: input, shape index: {}]   ;;  %s881_s1 = inlined_call_operand.vmem [shape: bf16[3,48,128], index: 1, kind: input, shape index: {}]   ;;  %s882_s2 = inlined_call_operand.vmem [shape: f32[1,128], index: 2, kind: input, shape index: {}]   ;;  %s883_s3 = inlined_call_operand.vmem [shape: f32[1,48], index: 3, kind: input, shape index: {}]   ;;  %s884_s4 = inlined_call_operand.vmem [shape: f32[1,48], index: 4, kind: input, shape index: {}]   ;;  %s885_s5 = inlined_call_operand.vmem [shape: f32[2,16,128], index: 5, kind: output, shape index: {0}]   ;;  %s886_s6 = inlined_call_operand.vmem [shape: f32[2,1,128], index: 6, kind: output, shape index: {1}]   ;;  %s887_s7 = inlined_call_operand.vmem [shape: f32[2,1,128], index: 7, kind: output, shape index: {2}]  }
   0x1 LB: > { %s657_s3 = sadd.s32 4294967295, %s762_s24   ;;  %p661_p0 = scmp.ge.s32.totalorder %s762_s24, 1  ;;  %s762_s24 = sphi %s806_s24, %s18_s24  }
   0x2   : > { %p242_p1 = scmp.lt.s32.totalorder %s762_s24, 3 }
   0x4   : > { %p243_p2 = pnand %p661_p0, %p242_p1 }
   0x5   : > { %v747_v0 = vld [vmem:[%s881_s1 + $0x18] sm:$0xff] (!%p243_p2)   ;;  %v764_v1 = vmov (!%p243_p2), 0.0   ;;  %v748_v2 = vld [vmem:[%s881_s1] sm:$0xff] (!%p243_p2)   ;;  %vm765_vm0 = vmmov (!%p243_p2), 0   ;;  %p280_p3 = scmp.lt.s32.totalorder (!%p243_p2), %s657_s3, 1  ;;  %v750_v4 = vld [vmem:[%s881_s1 + $0x8] sm:$0xff] (!%p243_p2)  }
   0x6   : > { %246 = sbr.rel (%p243_p2) target bundleno = 274 (0x112), region = 40  ;;  %707 = vmatprep.subr.bf16.mxu0 (!%p243_p2), %v764_v1  ;;  %717 = vmatprep.subr.bf16.mxu1 (!%p243_p2), %v764_v1  ;;  %v749_v3 = vld [vmem:[%s881_s1 + $0x20] sm:$0xff] (!%p243_p2)   ;;  %vm299_vm1 = vcmask (!%p243_p2), 392192   ;;  %v751_v5 = vld [vmem:[%s881_s1 + $0x28] sm:$0xff] (!%p243_p2)   ;;  %v752_v6 = vld [vmem:[%s881_s1 + $0x10] sm:$0xff] (!%p243_p2)  }
   0x7   : > { %708 = vmatpush3.bf16.msra.mxu0 (!%p243_p2), %v747_v0  ;;  %713 = vmatprep.mubr.msk.bf16.mxu0 (!%p243_p2), %vm765_vm0, %v764_v1  ;;  %300 = vst.msk [vmem:[#allocation2] sm:$0xff] (!%p243_p2), %vm299_vm1, %v764_v1  ;;  %301 = vst.msk [vmem:[#allocation2 + $0x8] sm:$0xff] (!%p243_p2), %vm299_vm1, %v764_v1  ;;  %v753_v9 = vld [vmem:[%s881_s1 + $0x30] sm:$0xff] (!%p243_p2)   ;;  %v754_v16 = vld [vmem:[%s881_s1 + $0x38] sm:$0xff] (!%p243_p2)  }
   0x8   : > { %718 = vmatpush3.bf16.msra.mxu1 (!%p243_p2), %v748_v2  ;;  %709 = vmatprep.subr.bf16.mxu0 (!%p243_p2), %v764_v1  ;;  %302 = vst.msk [vmem:[#allocation2 + $0x10] sm:$0xff] (!%p243_p2), %vm299_vm1, %v764_v1  ;;  %303 = vst.msk [vmem:[#allocation2 + $0x18] sm:$0xff] (!%p243_p2), %vm299_vm1, %v764_v1  ;;  %v755_v17 = vld [vmem:[%s881_s1 + $0x40] sm:$0xff] (!%p243_p2)  }
   0x9   : > { %719 = vmatprep.subr.bf16.mxu1 (!%p243_p2), %v764_v1  ;;  %723 = vmatprep.mubr.msk.bf16.mxu1 (!%p243_p2), %vm765_vm0, %v764_v1  ;;  %v690_v32 = vld [vmem:[%s882_s2] ss:$0 sm:$0xff] (!%p243_p2) }
   0xb   : > { %710 = vmatpush3.bf16.msra.mxu0 (!%p243_p2), %v749_v3 }
   0xc   : > { %720 = vmatpush3.bf16.msra.mxu1 (!%p243_p2), %v750_v4  ;;  %711 = vmatprep.subr.bf16.mxu0 (!%p243_p2), %v764_v1 }
   0xd   : > { %s889_s3 = smov (!%p280_p3, %s657_s3), 1  ;;  %721 = vmatprep.subr.bf16.mxu1 %v764_v1 }
   0xe   : > { %s693_s11 = sshll.u32 %s889_s3, 4  ;;  %s292_s30 = scalar_lea.vmem %s886_s6, %s889_s3 }
   0xf   : > { %s284_s16 = scalar_lea.vmem %s880_s0, %s693_s11  ;;  %712 = vmatpush3.bf16.msra.mxu0 %v751_v5  ;;  %s289_s27 = scalar_lea.vmem %s885_s5, %s693_s11 }
  0x10   : > { %v297_v7 = vld [vmem:[%s284_s16] sm:$0xff]  ;;  %v298_v8 = vld [vmem:[%s284_s16 + $0x8] sm:$0xff]  ;;  %722 = vmatpush3.bf16.msra.mxu1 %v752_v6  ;;  %727 = vmatprep.subr.bf16.mxu0 %v764_v1  ;;  %s295_s10 = scalar_lea.vmem %s887_s7, %s889_s3 }
  0x11   : > { %304 = vst.msk [vmem:[#allocation2 + $0x8] sm:$0xff] %vm299_vm1, %v297_v7  ;;  %305 = vst.msk [vmem:[#allocation2 + $0x10] sm:$0xff] %vm299_vm1, %v298_v8 }
  0x18   : > { %v315_v10 = vld [vmem:[#allocation2 + $0x8] sm:$0xff]  ;;  %v316_v11 = vld [vmem:[#allocation2 + $0x10] sm:$0xff] }
  0x19   : > { %v306_v12 = vld [vmem:[#allocation2 + $0x7] sm:$0xff]  ;;  %v317_v13 = vpack.c.bf16 %v316_v11, %v315_v10  ;;  %v307_v14 = vld [vmem:[#allocation2 + $0xf] sm:$0xff] }
  0x1a   : > { %v308_v15 = vpack.c.bf16 %v307_v14, %v306_v12  ;;  %v449_v18 = vld [vmem:[#allocation2 + $0x9] sm:$0xff]  ;;  %v450_v19 = vld [vmem:[#allocation2 + $0x11] sm:$0xff] }
  0x1b   : > { %714 = vmatmul.mubr.msk.bf16.vlgmr.msra.gmra.mrb[0].mxu0 %vm299_vm1, %v317_v13  ;;  %v451_v20 = vpack.c.bf16 %v450_v19, %v449_v18 }
  0x1c   : > { %724 = vmatmul.mubr.msk.bf16.vlgmr.msra.gmra.mrb[0].mxu1 %vm299_vm1, %v308_v15  ;;  %728 = vmatpush3.bf16.msra.mxu0 %v753_v9 }
  0x1d   : > { %729 = vmatprep.subr.bf16.mxu0 %v764_v1  ;;  %733 = vmatprep.mubr.msk.bf16.mxu0 %vm765_vm0, %v764_v1 }
  0x20   : > { %730 = vmatpush3.bf16.msra.mxu0 %v754_v16 }
  0x21   : > { %731 = vmatprep.subr.bf16.mxu0 %v764_v1 }
  0x24   : > { %732 = vmatpush3.bf16.msra.mxu0 %v755_v17 }
  0x27   : > { %734 = vmatmul.mubr.msk.bf16.vlgmr.msra.gmra.mrb[4].mxu0 %vm299_vm1, %v451_v20 }
  0xee   : > { %v380_v21 = vpop.f32.mrb[0].mxu0 }
  0xef   : > { %v442_v22 = vpop.f32.mrb[0].mxu1  ;;  %v715_v23 = vpop.f32.mrb[1].mxu0 }
  0xf0   : > { %v443_v24 = vadd.f32 %v442_v22, %v380_v21  ;;  %v725_v25 = vpop.f32.mrb[1].mxu1  ;;  %v383_v26 = vpop.f32.mrb[2].mxu0 }
  0xf1   : > { %v445_v27 = vpop.f32.mrb[2].mxu1  ;;  %v716_v28 = vpop.f32.mrb[3].mxu0 }
  0xf2   : > { %v446_v29 = vadd.f32 %v445_v27, %v383_v26  ;;  %v726_v30 = vpop.f32.mrb[3].mxu1 }
  0xfa   : > { %v514_v31 = vpop.f32.mrb[4].mxu0 }
  0xfb   : > { %v521_v33 = vadd.f32 %v514_v31, %v443_v24  ;;  %v735_v34 = vpop.f32.mrb[5].mxu0 }
  0xfc   : > { %v517_v35 = vpop.f32.mrb[6].mxu0 }
  0xfd   : > { %v530_v36 = vadd.f32 %v690_v32, %v521_v33  ;;  %v522_v37 = vadd.f32 %v517_v35, %v446_v29  ;;  %v736_v38 = vpop.f32.mrb[7].mxu0 }
  0xff   : > { %532 = vst [vmem:[%s289_s27] sm:$0xff] %v530_v36  ;;  %v531_v39 = vadd.f32 %v690_v32, %v522_v37  ;;  %v542_v40 = vmul.f32 %v530_v36, %v530_v36 }
 0x101   : > { %533 = vst [vmem:[%s289_s27 + $0x8] sm:$0xff] %v531_v39  ;;  %v534_v41 = vadd.f32 %v531_v39, %v530_v36  ;;  %v543_v42 = vmul.f32 %v531_v39, %v531_v39 }
 0x103   : > { %v535_v43 = vrot.slane %v534_v41, 4  ;;  %v544_v44 = vadd.f32 %v543_v42, %v542_v40 }
 0x105   : > { %v536_v45 = vadd.f32 %v535_v43, %v534_v41  ;;  %v545_v46 = vrot.slane %v544_v44, 4 }
 0x107   : > { %v537_v47 = vrot.slane %v536_v45, 2  ;;  %v546_v48 = vadd.f32 %v545_v46, %v544_v44 }
 0x109   : > { %v538_v49 = vadd.f32 %v537_v47, %v536_v45  ;;  %v547_v50 = vrot.slane %v546_v48, 2 }
 0x10b   : > { %v539_v51 = vrot.slane %v538_v49, 1  ;;  %v548_v52 = vadd.f32 %v547_v50, %v546_v48 }
 0x10d   : > { %v540_v53 = vadd.f32 %v539_v51, %v538_v49  ;;  %v549_v54 = vrot.slane %v548_v52, 1 }
 0x10f   : > { %541 = vst [vmem:[%s292_s30] sm:$0x1] %v540_v53  ;;  %v550_v55 = vadd.f32 %v549_v54, %v548_v52 }
 0x111   : > { %551 = vst [vmem:[%s295_s10] sm:$0x1] %v550_v55 }
 0x112 PF: > { %s18_s24 = sadd.s32 1, %s762_s24  }
 0x113   : > { %p15_p4 = scmp.ge.s32.totalorder %s18_s24, 4  }
 0x115   :  { %17 = sbr.rel (!%p15_p4) target bundleno = 1 (0x1), region = 96 }

// kernel: unet_forward.21
= control target key start
LH: loop header
LB: loop body
LE: loop exit
PB: predicated region body
PF: predicated region fallthrough
CT: control target
= control target key end

     0   :  { %s1030_s24 = smov 0   ;;  %s1175_s0 = inlined_call_operand.vmem [shape: f32[2,16,128], index: 0, kind: input, shape index: {}]   ;;  %s1176_s1 = inlined_call_operand.vmem [shape: bf16[3,128,128], index: 1, kind: input, shape index: {}]   ;;  %s1177_s2 = inlined_call_operand.vmem [shape: f32[1,128], index: 2, kind: input, shape index: {}]   ;;  %s1178_s3 = inlined_call_operand.vmem [shape: f32[1,128], index: 3, kind: input, shape index: {}]   ;;  %s1179_s4 = inlined_call_operand.vmem [shape: f32[1,128], index: 4, kind: input, shape index: {}]   ;;  %s1180_s5 = inlined_call_operand.vmem [shape: f32[2,16,128], index: 5, kind: output, shape index: {0}]   ;;  %s1181_s6 = inlined_call_operand.vmem [shape: f32[2,1,128], index: 6, kind: output, shape index: {1}]   ;;  %s1182_s7 = inlined_call_operand.vmem [shape: f32[2,1,128], index: 7, kind: output, shape index: {2}]  }
   0x1 LB: > { %s787_s25 = sadd.s32 4294967295, %s986_s24   ;;  %p791_p0 = scmp.ge.s32.totalorder %s986_s24, 1  ;;  %s986_s24 = sphi %s1030_s24, %s18_s24  }
   0x2   : > { %p242_p1 = scmp.lt.s32.totalorder %s986_s24, 3 }
   0x4   : > { %p243_p2 = pnand %p791_p0, %p242_p1 }
   0x5   : > { %v956_v0 = vld [vmem:[%s1176_s1 + $0x40] sm:$0xff] (!%p243_p2)   ;;  %v988_v1 = vmov (!%p243_p2), 0.0   ;;  %v958_v3 = vld [vmem:[%s1176_s1 + $0x48] sm:$0xff] (!%p243_p2)   ;;  %vm989_vm0 = vmmov (!%p243_p2), 0   ;;  %p280_p3 = scmp.lt.s32.totalorder (!%p243_p2), %s787_s25, 1  ;;  %v960_v5 = vld [vmem:[%s1176_s1 + $0x50] sm:$0xff] (!%p243_p2)  }
   0x6   : > { %246 = sbr.rel (%p243_p2) target bundleno = 305 (0x131), region = 40  ;;  %886 = vmatprep.subr.bf16.mxu0 (!%p243_p2), %v988_v1  ;;  %319 = vst [vmem:[#allocation2] sm:$0xff] (!%p243_p2), %v988_v1  ;;  %322 = vst [vmem:[#allocation2 + $0x18] sm:$0xff] (!%p243_p2), %v988_v1  ;;  %906 = vmatprep.subr.bf16.mxu1 (!%p243_p2), %v988_v1  ;;  %v957_v2 = vld [vmem:[%s1176_s1] sm:$0xff] (!%p243_p2)   ;;  %v959_v4 = vld [vmem:[%s1176_s1 + $0x8] sm:$0xff] (!%p243_p2)  }
   0x7   : > { %887 = vmatpush3.bf16.msra.mxu0 (!%p243_p2), %v956_v0  ;;  %902 = vmatprep.mubr.msk.bf16.mxu0 (!%p243_p2), %vm989_vm0, %v988_v1  ;;  %v961_v6 = vld [vmem:[%s1176_s1 + $0x10] sm:$0xff] (!%p243_p2)   ;;  %v962_v7 = vld [vmem:[%s1176_s1 + $0x58] sm:$0xff] (!%p243_p2)   ;;  %v964_v9 = vld [vmem:[%s1176_s1 + $0x60] sm:$0xff] (!%p243_p2)  }
   0x8   : > { %907 = vmatpush3.bf16.msra.mxu1 (!%p243_p2), %v957_v2  ;;  %888 = vmatprep.subr.bf16.mxu0 (!%p243_p2), %v988_v1  ;;  %v963_v8 = vld [vmem:[%s1176_s1 + $0x18] sm:$0xff] (!%p243_p2)   ;;  %v965_v10 = vld [vmem:[%s1176_s1 + $0x20] sm:$0xff] (!%p243_p2)   ;;  %v966_v17 = vld [vmem:[%s1176_s1 + $0x68] sm:$0xff] (!%p243_p2)  }
   0x9   : > { %908 = vmatprep.subr.bf16.mxu1 (!%p243_p2), %v988_v1  ;;  %922 = vmatprep.mubr.msk.bf16.mxu1 (!%p243_p2), %vm989_vm0, %v988_v1  ;;  %v796_v13 = vld [vmem:[%s1178_s3] ss:$0 sm:$0xff] (!%p243_p2)  ;;  %v967_v18 = vld [vmem:[%s1176_s1 + $0x28] sm:$0xff] (!%p243_p2)   ;;  %v968_v21 = vld [vmem:[%s1176_s1 + $0x70] sm:$0xff] (!%p243_p2)  }
   0xa   : > { %v797_v16 = vld [vmem:[%s1179_s4] ss:$0 sm:$0xff] (!%p243_p2)  ;;  %v969_v24 = vld [vmem:[%s1176_s1 + $0x30] sm:$0xff] (!%p243_p2)   ;;  %v970_v25 = vld [vmem:[%s1176_s1 + $0x78] sm:$0xff] (!%p243_p2)  }
   0xb   : > { %889 = vmatpush3.bf16.msra.mxu0 (!%p243_p2), %v958_v3  ;;  %v971_v26 = vld [vmem:[%s1176_s1 + $0x38] sm:$0xff] (!%p243_p2)   ;;  %v972_v30 = vld [vmem:[%s1176_s1 + $0x80] sm:$0xff] (!%p243_p2)   ;;  %v973_v32 = vld [vmem:[%s1176_s1 + $0x88] sm:$0xff] (!%p243_p2)  }
   0xc   : > { %909 = vmatpush3.bf16.msra.mxu1 (!%p243_p2), %v959_v4  ;;  %890 = vmatprep.subr.bf16.mxu0 (!%p243_p2), %v988_v1  ;;  %v974_v33 = vld [vmem:[%s1176_s1 + $0x90] sm:$0xff] (!%p243_p2)   ;;  %v975_v34 = vld [vmem:[%s1176_s1 + $0x98] sm:$0xff] (!%p243_p2)   ;;  %v976_v35 = vld [vmem:[%s1176_s1 + $0xa0] sm:$0xff] (!%p243_p2)  }
   0xd   : > { %s1184_s25 = smov (!%p280_p3, %s787_s25), 1  ;;  %910 = vmatprep.subr.bf16.mxu1 %v988_v1  ;;  %v977_v36 = vld [vmem:[%s1176_s1 + $0xa8] sm:$0xff]   ;;  %v978_v37 = vld [vmem:[%s1176_s1 + $0xb0] sm:$0xff]   ;;  %v979_v38 = vld [vmem:[%s1176_s1 + $0xb8] sm:$0xff]  }
   0xe   : > { %s857_s17 = sshll.u32 %s1184_s25, 4  ;;  %v854_v53 = vld [vmem:[%s1177_s2] ss:$0 sm:$0xff]  ;;  %s292_s27 = scalar_lea.vmem %s1181_s6, %s1184_s25 }
   0xf   : > { %891 = vmatpush3.bf16.msra.mxu0 %v960_v5  ;;  %s284_s22 = scalar_lea.vmem %s1175_s0, %s857_s17  ;;  %s289_s23 = scalar_lea.vmem %s1180_s5, %s857_s17 }
  0x10   : > { %911 = vmatpush3.bf16.msra.mxu1 %v961_v6  ;;  %892 = vmatprep.subr.bf16.mxu0 %v988_v1  ;;  %v297_v11 = vld [vmem:[%s284_s22] sm:$0xff]  ;;  %v298_v12 = vld [vmem:[%s284_s22 + $0x8] sm:$0xff]  ;;  %s295_s30 = scalar_lea.vmem %s1182_s7, %s1184_s25 }
  0x11   : > { %912 = vmatprep.subr.bf16.mxu1 %v988_v1  ;;  %v306_v14 = vmul.f32 %v796_v13, %v297_v11  ;;  %v307_v15 = vmul.f32 %v796_v13, %v298_v12 }
  0x13   : > { %893 = vmatpush3.bf16.msra.mxu0 %v962_v7  ;;  %v315_v19 = vadd.f32 %v797_v16, %v306_v14  ;;  %v316_v20 = vadd.f32 %v797_v16, %v307_v15 }
  0x14   : > { %913 = vmatpush3.bf16.msra.mxu1 %v963_v8  ;;  %894 = vmatprep.subr.bf16.mxu0 %v988_v1 }
  0x15   : > { %914 = vmatprep.subr.bf16.mxu1 %v988_v1  ;;  %v317_v22 = vmax.f32 %v315_v19, 0.0  ;;  %v318_v23 = vmax.f32 %v316_v20, 0.0 }
  0x17   : > { %895 = vmatpush3.bf16.msra.mxu0 %v964_v9  ;;  %323 = vst [vmem:[#allocation2 + $0x8] sm:$0xff] %v317_v22  ;;  %324 = vst [vmem:[#allocation2 + $0x10] sm:$0xff] %v318_v23  ;;  %v346_v27 = vpack.c.bf16 %v318_v23, %v317_v22 }
  0x18   : > { %915 = vmatpush3.bf16.msra.mxu1 %v965_v10  ;;  %896 = vmatprep.subr.bf16.mxu0 %v988_v1 }
  0x19   : > { %916 = vmatprep.subr.bf16.mxu1 %v988_v1 }
  0x1b   : > { %897 = vmatpush3.bf16.msra.mxu0 %v966_v17 }
  0x1c   : > { %917 = vmatpush3.bf16.msra.mxu1 %v967_v18  ;;  %898 = vmatprep.subr.bf16.mxu0 %v988_v1 }
  0x1d   : > { %918 = vmatprep.subr.bf16.mxu1 %v988_v1 }
  0x1e   : > { %v325_v28 = vld [vmem:[#allocation2 + $0x7] sm:$0xff]  ;;  %v326_v29 = vld [vmem:[#allocation2 + $0xf] sm:$0xff] }
  0x1f   : > { %899 = vmatpush3.bf16.msra.mxu0 %v968_v21  ;;  %v327_v31 = vpack.c.bf16 %v326_v29, %v325_v28  ;;  %v542_v39 = vld [vmem:[#allocation2 + $0x9] sm:$0xff]  ;;  %v543_v40 = vld [vmem:[#allocation2 + $0x11] sm:$0xff] }
  0x20   : > { %919 = vmatpush3.bf16.msra.mxu1 %v969_v24  ;;  %900 = vmatprep.subr.bf16.mxu0 %v988_v1  ;;  %v544_v41 = vpack.c.bf16 %v543_v40, %v542_v39 }
  0x21   : > { %920 = vmatprep.subr.bf16.mxu1 %v988_v1 }
  0x23   : > { %901 = vmatpush3.bf16.msra.mxu0 %v970_v25 }
  0x24   : > { %921 = vmatpush3.bf16.msra.mxu1 %v971_v26  ;;  %926 = vmatprep.subr.bf16.mxu0 %v988_v1 }
  0x26   : > { %903 = vmatmul.mubr.bf16.vlgmr.msra.gmra.mrb[0].mxu0 %v346_v27 }
  0x27   : > { %923 = vmatmul.mubr.bf16.vlgmr.msra.gmra.mrb[0].mxu1 %v327_v31  ;;  %927 = vmatpush3.bf16.msra.mxu0 %v972_v30 }
  0x28   : > { %928 = vmatprep.subr.bf16.mxu0 %v988_v1  ;;  %942 = vmatprep.mubr.msk.bf16.mxu0 %vm989_vm0, %v988_v1 }
  0x2b   : > { %929 = vmatpush3.bf16.msra.mxu0 %v973_v32 }
  0x2c   : > { %930 = vmatprep.subr.bf16.mxu0 %v988_v1 }
  0x2f   : > { %931 = vmatpush3.bf16.msra.mxu0 %v974_v33 }
  0x30   : > { %932 = vmatprep.subr.bf16.mxu0 %v988_v1 }
  0x33   : > { %933 = vmatpush3.bf16.msra.mxu0 %v975_v34 }
  0x34   : > { %934 = vmatprep.subr.bf16.mxu0 %v988_v1 }
  0x37   : > { %935 = vmatpush3.bf16.msra.mxu0 %v976_v35 }
  0x38   : > { %936 = vmatprep.subr.bf16.mxu0 %v988_v1 }
  0x3b   : > { %937 = vmatpush3.bf16.msra.mxu0 %v977_v36 }
  0x3c   : > { %938 = vmatprep.subr.bf16.mxu0 %v988_v1 }
  0x3f   : > { %939 = vmatpush3.bf16.msra.mxu0 %v978_v37 }
  0x40   : > { %940 = vmatprep.subr.bf16.mxu0 %v988_v1 }
  0x43   : > { %941 = vmatpush3.bf16.msra.mxu0 %v979_v38 }
  0x46   : > { %943 = vmatmul.mubr.bf16.vlgmr.msra.gmra.mrb[4].mxu0 %v544_v41 }
  0xf9   : > { %v446_v42 = vpop.f32.mrb[0].mxu0 }
  0xfa   : > { %v535_v43 = vpop.f32.mrb[0].mxu1  ;;  %v904_v44 = vpop.f32.mrb[1].mxu0 }
  0xfb   : > { %v536_v45 = vadd.f32 %v535_v43, %v446_v42  ;;  %v924_v46 = vpop.f32.mrb[1].mxu1  ;;  %v449_v47 = vpop.f32.mrb[2].mxu0 }
  0xfc   : > { %v538_v48 = vpop.f32.mrb[2].mxu1  ;;  %v905_v49 = vpop.f32.mrb[3].mxu0 }
  0xfd   : > { %v539_v50 = vadd.f32 %v538_v48, %v449_v47  ;;  %v925_v51 = vpop.f32.mrb[3].mxu1 }
 0x119   : > { %v644_v52 = vpop.f32.mrb[4].mxu0 }
 0x11a   : > { %v651_v54 = vadd.f32 %v644_v52, %v536_v45  ;;  %v944_v55 = vpop.f32.mrb[5].mxu0 }
 0x11b   : > { %v647_v56 = vpop.f32.mrb[6].mxu0 }
 0x11c   : > { %v660_v57 = vadd.f32 %v854_v53, %v651_v54  ;;  %v652_v58 = vadd.f32 %v647_v56, %v539_v50  ;;  %v945_v59 = vpop.f32.mrb[7].mxu0 }
 0x11e   : > { %662 = vst [vmem:[%s289_s23] sm:$0xff] %v660_v57  ;;  %v661_v60 = vadd.f32 %v854_v53, %v652_v58  ;;  %v672_v61 = vmul.f32 %v660_v57, %v660_v57 }
 0x120   : > { %663 = vst [vmem:[%s289_s23 + $0x8] sm:$0xff] %v661_v60  ;;  %v664_v62 = vadd.f32 %v661_v60, %v660_v57  ;;  %v673_v63 = vmul.f32 %v661_v60, %v661_v60 }
 0x122   : > { %v665_v0 = vrot.slane %v664_v62, 4  ;;  %v674_v1 = vadd.f32 %v673_v63, %v672_v61 }
 0x124   : > { %v666_v2 = vadd.f32 %v665_v0, %v664_v62  ;;  %v675_v3 = vrot.slane %v674_v1, 4 }
 0x126   : > { %v667_v4 = vrot.slane %v666_v2, 2  ;;  %v676_v5 = vadd.f32 %v675_v3, %v674_v1 }
 0x128   : > { %v668_v6 = vadd.f32 %v667_v4, %v666_v2  ;;  %v677_v7 = vrot.slane %v676_v5, 2 }
 0x12a   : > { %v669_v8 = vrot.slane %v668_v6, 1  ;;  %v678_v9 = vadd.f32 %v677_v7, %v676_v5 }
 0x12c   : > { %v670_v10 = vadd.f32 %v669_v8, %v668_v6  ;;  %v679_v11 = vrot.slane %v678_v9, 1 }
 0x12e   : > { %671 = vst [vmem:[%s292_s27] sm:$0x1] %v670_v10  ;;  %v680_v12 = vadd.f32 %v679_v11, %v678_v9 }
 0x130   : > { %681 = vst [vmem:[%s295_s30] sm:$0x1] %v680_v12 }
 0x131 PF: > { %s18_s24 = sadd.s32 1, %s986_s24  }
 0x132   : > { %p15_p4 = scmp.ge.s32.totalorder %s18_s24, 4  }
 0x134   :  { %17 = sbr.rel (!%p15_p4) target bundleno = 1 (0x1), region = 96 }

// kernel: unet_forward.23
= control target key start
LH: loop header
LB: loop body
LE: loop exit
PB: predicated region body
PF: predicated region fallthrough
CT: control target
= control target key end

     0   :  { %s301_s12 = smov 0   ;;  %s318_s0 = inlined_call_operand.vmem [shape: f32[2,16,128], index: 0, kind: input, shape index: {}]   ;;  %s319_s1 = inlined_call_operand.vmem [shape: f32[1,128], index: 1, kind: input, shape index: {}]   ;;  %s320_s2 = inlined_call_operand.vmem [shape: f32[1,128], index: 2, kind: input, shape index: {}]   ;;  %s321_s3 = inlined_call_operand.vmem [shape: f32[2,16,128], index: 3, kind: output, shape index: {}]  }
   0x1 LB: > { %s250_s13 = sadd.s32 4294967295, %s279_s12   ;;  %p254_p0 = scmp.ge.s32.totalorder %s279_s12, 1  ;;  %s279_s12 = sphi %s301_s12, %s13_s12  }
   0x2   : > { %p137_p1 = scmp.lt.s32.totalorder %s279_s12, 3 }
   0x4   : > { %p138_p2 = pnand %p254_p0, %p137_p1 }
   0x5   : > { %p161_p3 = scmp.lt.s32.totalorder (!%p138_p2), %s250_s13, 1  ;;  %v259_v0 = vld [vmem:[%s319_s1] ss:$0 sm:$0xff] (!%p138_p2) }
   0x6   : > { %141 = sbr.rel (%p138_p2) target bundleno = 24 (0x18), region = 32  ;;  %v260_v3 = vld [vmem:[%s320_s2] ss:$0 sm:$0xff] (!%p138_p2) }
   0xd   : > { %s323_s13 = smov (!%p161_p3, %s250_s13), 1 }
   0xe   : > { %s263_s14 = sshll.u32 %s323_s13, 4 }
   0xf   : > { %s165_s19 = scalar_lea.vmem %s318_s0, %s263_s14  ;;  %s170_s24 = scalar_lea.vmem %s321_s3, %s263_s14 }
  0x10   : > { %v171_v1 = vld [vmem:[%s165_s19] sm:$0xff]  ;;  %v172_v2 = vld [vmem:[%s165_s19 + $0x8] sm:$0xff] }
  0x11   : > { %v180_v4 = vmul.f32 %v259_v0, %v171_v1  ;;  %v181_v5 = vmul.f32 %v259_v0, %v172_v2 }
  0x13   : > { %v189_v6 = vadd.f32 %v260_v3, %v180_v4  ;;  %v190_v7 = vadd.f32 %v260_v3, %v181_v5 }
  0x15   : > { %v191_v8 = vmax.f32 %v189_v6, 0.0  ;;  %v192_v9 = vmax.f32 %v190_v7, 0.0 }
  0x17   : > { %193 = vst [vmem:[%s170_s24] sm:$0xff] %v191_v8  ;;  %194 = vst [vmem:[%s170_s24 + $0x8] sm:$0xff] %v192_v9 }
  0x18 PF: > { %s13_s12 = sadd.s32 1, %s279_s12  }
  0x19   : > { %p10_p4 = scmp.ge.s32.totalorder %s13_s12, 4  }
  0x1b   :  { %12 = sbr.rel (!%p10_p4) target bundleno = 1 (0x1), region = 62 }

// kernel: unet_forward.27
= control target key start
LH: loop header
LB: loop body
LE: loop exit
PB: predicated region body
PF: predicated region fallthrough
CT: control target
= control target key end

     0   :  { %s261_s12 = smov 0   ;;  %s297_s0 = inlined_call_operand.vmem [shape: f32[2,8,128], index: 0, kind: input, shape index: {}]   ;;  %s298_s1 = inlined_call_operand.vmem [shape: f32[1,128], index: 1, kind: input, shape index: {}]   ;;  %s299_s2 = inlined_call_operand.vmem [shape: f32[1,128], index: 2, kind: input, shape index: {}]   ;;  %s300_s3 = inlined_call_operand.vmem [shape: f32[2,8,128], index: 3, kind: output, shape index: {}]  }
   0x1 LB: > { %s238_s13 = sadd.s32 4294967295, %s263_s12   ;;  %p242_p0 = scmp.ge.s32.totalorder %s263_s12, 1  ;;  %s263_s12 = sphi %s261_s12, %s13_s12  }
   0x2   : > { %p136_p1 = scmp.lt.s32.totalorder %s263_s12, 3 }
   0x4   : > { %p137_p2 = pnand %p242_p0, %p136_p1 }
   0x5   : > { %p158_p3 = scmp.lt.s32.totalorder (!%p137_p2), %s238_s13, 1  ;;  %v245_v0 = vld [vmem:[%s298_s1] ss:$0 sm:$0xff] (!%p137_p2) }
   0x6   : > { %140 = sbr.rel (%p137_p2) target bundleno = 24 (0x18), region = 32  ;;  %v246_v2 = vld [vmem:[%s299_s2] ss:$0 sm:$0xff] (!%p137_p2) }
   0xd   : > { %s302_s13 = smov (!%p158_p3, %s238_s13), 1 }
   0xe   : > { %s243_s14 = sshll.u32 %s302_s13, 3 }
   0xf   : > { %s161_s19 = scalar_lea.vmem %s297_s0, %s243_s14  ;;  %s165_s24 = scalar_lea.vmem %s300_s3, %s243_s14 }
  0x10   : > { %v166_v1 = vld [vmem:[%s161_s19] sm:$0xff] }
  0x11   : > { %v174_v3 = vmul.f32 %v245_v0, %v166_v1 }
  0x13   : > { %v182_v4 = vadd.f32 %v246_v2, %v174_v3 }
  0x15   : > { %v183_v5 = vmax.f32 %v182_v4, 0.0 }
  0x17   : > { %184 = vst [vmem:[%s165_s24] sm:$0xff] %v183_v5 }
  0x18 PF: > { %s13_s12 = sadd.s32 1, %s263_s12  }
  0x19   : > { %p10_p4 = scmp.ge.s32.totalorder %s13_s12, 4  }
  0x1b   :  { %12 = sbr.rel (!%p10_p4) target bundleno = 1 (0x1), region = 62 }

// kernel: unet_forward.25
= control target key start
LH: loop header
LB: loop body
LE: loop exit
PB: predicated region body
PF: predicated region fallthrough
CT: control target
= control target key end

     0   :  { %s1001_s24 = smov 0   ;;  %s1146_s0 = inlined_call_operand.vmem [shape: f32[2,8,128], index: 0, kind: input, shape index: {}]   ;;  %s1147_s1 = inlined_call_operand.vmem [shape: bf16[3,128,128], index: 1, kind: input, shape index: {}]   ;;  %s1148_s2 = inlined_call_operand.vmem [shape: f32[1,128], index: 2, kind: input, shape index: {}]   ;;  %s1149_s3 = inlined_call_operand.vmem [shape: f32[1,128], index: 3, kind: input, shape index: {}]   ;;  %s1150_s4 = inlined_call_operand.vmem [shape: f32[1,128], index: 4, kind: input, shape index: {}]   ;;  %s1151_s5 = inlined_call_operand.vmem [shape: f32[2,8,128], index: 5, kind: output, shape index: {0}]   ;;  %s1152_s6 = inlined_call_operand.vmem [shape: f32[2,1,128], index: 6, kind: output, shape index: {1}]   ;;  %s1153_s7 = inlined_call_operand.vmem [shape: f32[2,1,128], index: 7, kind: output, shape index: {2}]  }
   0x1 LB: > { %s762_s25 = sadd.s32 4294967295, %s957_s24   ;;  %p766_p0 = scmp.ge.s32.totalorder %s957_s24, 1  ;;  %s957_s24 = sphi %s1001_s24, %s18_s24  }
   0x2   : > { %p241_p1 = scmp.lt.s32.totalorder %s957_s24, 3 }
   0x4   : > { %p242_p2 = pnand %p766_p0, %p241_p1 }
   0x5   : > { %v927_v0 = vld [vmem:[%s1147_s1 + $0x40] sm:$0xff] (!%p242_p2)   ;;  %v959_v1 = vmov (!%p242_p2), 0.0   ;;  %v929_v3 = vld [vmem:[%s1147_s1 + $0x48] sm:$0xff] (!%p242_p2)   ;;  %vm960_vm0 = vmmov (!%p242_p2), 0   ;;  %p277_p3 = scmp.lt.s32.totalorder (!%p242_p2), %s762_s25, 1  ;;  %v931_v5 = vld [vmem:[%s1147_s1 + $0x50] sm:$0xff] (!%p242_p2)  }
   0x6   : > { %245 = sbr.rel (%p242_p2) target bundleno = 301 (0x12d), region = 40  ;;  %857 = vmatprep.subr.bf16.mxu0 (!%p242_p2), %v959_v1  ;;  %310 = vst [vmem:[#allocation2] sm:$0xff] (!%p242_p2), %v959_v1  ;;  %312 = vst [vmem:[#allocation2 + $0x10] sm:$0xff] (!%p242_p2), %v959_v1  ;;  %877 = vmatprep.subr.bf16.mxu1 (!%p242_p2), %v959_v1  ;;  %v928_v2 = vld [vmem:[%s1147_s1] sm:$0xff] (!%p242_p2)   ;;  %v930_v4 = vld [vmem:[%s1147_s1 + $0x8] sm:$0xff] (!%p242_p2)  }
   0x7   : > { %858 = vmatpush3.bf16.msra.mxu0 (!%p242_p2), %v927_v0  ;;  %873 = vmatprep.mubr.msk.bf16.mxu0 (!%p242_p2), %vm960_vm0, %v959_v1  ;;  %v932_v6 = vld [vmem:[%s1147_s1 + $0x10] sm:$0xff] (!%p242_p2)   ;;  %v933_v7 = vld [vmem:[%s1147_s1 + $0x58] sm:$0xff] (!%p242_p2)   ;;  %v935_v9 = vld [vmem:[%s1147_s1 + $0x60] sm:$0xff] (!%p242_p2)  }
   0x8   : > { %878 = vmatpush3.bf16.msra.mxu1 (!%p242_p2), %v928_v2  ;;  %859 = vmatprep.subr.bf16.mxu0 (!%p242_p2), %v959_v1  ;;  %v934_v8 = vld [vmem:[%s1147_s1 + $0x18] sm:$0xff] (!%p242_p2)   ;;  %v936_v10 = vld [vmem:[%s1147_s1 + $0x20] sm:$0xff] (!%p242_p2)   ;;  %v937_v15 = vld [vmem:[%s1147_s1 + $0x68] sm:$0xff] (!%p242_p2)  }
   0x9   : > { %879 = vmatprep.subr.bf16.mxu1 (!%p242_p2), %v959_v1  ;;  %893 = vmatprep.mubr.msk.bf16.mxu1 (!%p242_p2), %vm960_vm0, %v959_v1  ;;  %v769_v12 = vld [vmem:[%s1149_s3] ss:$0 sm:$0xff] (!%p242_p2)  ;;  %v938_v16 = vld [vmem:[%s1147_s1 + $0x28] sm:$0xff] (!%p242_p2)   ;;  %v939_v19 = vld [vmem:[%s1147_s1 + $0x70] sm:$0xff] (!%p242_p2)  }
   0xa   : > { %v770_v13 = vld [vmem:[%s1150_s4] ss:$0 sm:$0xff] (!%p242_p2)  ;;  %v940_v20 = vld [vmem:[%s1147_s1 + $0x30] sm:$0xff] (!%p242_p2)   ;;  %v941_v21 = vld [vmem:[%s1147_s1 + $0x78] sm:$0xff] (!%p242_p2)  }
   0xb   : > { %860 = vmatpush3.bf16.msra.mxu0 (!%p242_p2), %v929_v3  ;;  %v942_v22 = vld [vmem:[%s1147_s1 + $0x38] sm:$0xff] (!%p242_p2)   ;;  %v943_v25 = vld [vmem:[%s1147_s1 + $0x80] sm:$0xff] (!%p242_p2)   ;;  %v944_v27 = vld [vmem:[%s1147_s1 + $0x88] sm:$0xff] (!%p242_p2)  }
   0xc   : > { %880 = vmatpush3.bf16.msra.mxu1 (!%p242_p2), %v930_v4  ;;  %861 = vmatprep.subr.bf16.mxu0 (!%p242_p2), %v959_v1  ;;  %v945_v28 = vld [vmem:[%s1147_s1 + $0x90] sm:$0xff] (!%p242_p2)   ;;  %v946_v29 = vld [vmem:[%s1147_s1 + $0x98] sm:$0xff] (!%p242_p2)   ;;  %v947_v30 = vld [vmem:[%s1147_s1 + $0xa0] sm:$0xff] (!%p242_p2)  }
   0xd   : > { %s1155_s25 = smov (!%p277_p3, %s762_s25), 1  ;;  %881 = vmatprep.subr.bf16.mxu1 %v959_v1  ;;  %v948_v31 = vld [vmem:[%s1147_s1 + $0xa8] sm:$0xff]   ;;  %v949_v32 = vld [vmem:[%s1147_s1 + $0xb0] sm:$0xff]   ;;  %v950_v33 = vld [vmem:[%s1147_s1 + $0xb8] sm:$0xff]  }
   0xe   : > { %s767_s17 = sshll.u32 %s1155_s25, 3  ;;  %v827_v46 = vld [vmem:[%s1148_s2] ss:$0 sm:$0xff]  ;;  %s287_s28 = scalar_lea.vmem %s1152_s6, %s1155_s25 }
   0xf   : > { %862 = vmatpush3.bf16.msra.mxu0 %v931_v5  ;;  %s280_s22 = scalar_lea.vmem %s1146_s0, %s767_s17  ;;  %s284_s23 = scalar_lea.vmem %s1151_s5, %s767_s17 }
  0x10   : > { %882 = vmatpush3.bf16.msra.mxu1 %v932_v6  ;;  %863 = vmatprep.subr.bf16.mxu0 %v959_v1  ;;  %v292_v11 = vld [vmem:[%s280_s22] sm:$0xff]  ;;  %s290_s30 = scalar_lea.vmem %s1153_s7, %s1155_s25 }
  0x11   : > { %883 = vmatprep.subr.bf16.mxu1 %v959_v1  ;;  %v300_v14 = vmul.f32 %v769_v12, %v292_v11 }
  0x13   : > { %864 = vmatpush3.bf16.msra.mxu0 %v933_v7  ;;  %v308_v17 = vadd.f32 %v770_v13, %v300_v14 }
  0x14   : > { %884 = vmatpush3.bf16.msra.mxu1 %v934_v8  ;;  %865 = vmatprep.subr.bf16.mxu0 %v959_v1 }
  0x15   : > { %885 = vmatprep.subr.bf16.mxu1 %v959_v1  ;;  %v309_v18 = vmax.f32 %v308_v17, 0.0 }
  0x17   : > { %866 = vmatpush3.bf16.msra.mxu0 %v935_v9  ;;  %313 = vst [vmem:[#allocation2 + $0x8] sm:$0xff] %v309_v18  ;;  %v333_v23 = vpack.c.bf16 %v309_v18, %v309_v18 }
  0x18   : > { %886 = vmatpush3.bf16.msra.mxu1 %v936_v10  ;;  %867 = vmatprep.subr.bf16.mxu0 %v959_v1 }
  0x19   : > { %887 = vmatprep.subr.bf16.mxu1 %v959_v1 }
  0x1b   : > { %868 = vmatpush3.bf16.msra.mxu0 %v937_v15 }
  0x1c   : > { %888 = vmatpush3.bf16.msra.mxu1 %v938_v16  ;;  %869 = vmatprep.subr.bf16.mxu0 %v959_v1 }
  0x1d   : > { %889 = vmatprep.subr.bf16.mxu1 %v959_v1 }
  0x1e   : > { %v314_v24 = vld [vmem:[#allocation2 + $0x7] sm:$0xff] }
  0x1f   : > { %870 = vmatpush3.bf16.msra.mxu0 %v939_v19  ;;  %v315_v26 = vpack.c.bf16 %v314_v24, %v314_v24  ;;  %v527_v34 = vld [vmem:[#allocation2 + $0x9] sm:$0xff] }
  0x20   : > { %890 = vmatpush3.bf16.msra.mxu1 %v940_v20  ;;  %871 = vmatprep.subr.bf16.mxu0 %v959_v1  ;;  %v528_v35 = vpack.c.bf16 %v527_v34, %v527_v34 }
  0x21   : > { %891 = vmatprep.subr.bf16.mxu1 %v959_v1 }
  0x23   : > { %872 = vmatpush3.bf16.msra.mxu0 %v941_v21 }
  0x24   : > { %892 = vmatpush3.bf16.msra.mxu1 %v942_v22  ;;  %897 = vmatprep.subr.bf16.mxu0 %v959_v1 }
  0x26   : > { %874 = vmatmul.mubr.bf16.vlgmr.msra.gmra.mrb[0].mxu0 %v333_v23 }
  0x27   : > { %894 = vmatmul.mubr.bf16.vlgmr.msra.gmra.mrb[0].mxu1 %v315_v26  ;;  %898 = vmatpush3.bf16.msra.mxu0 %v943_v25 }
  0x28   : > { %899 = vmatprep.subr.bf16.mxu0 %v959_v1  ;;  %913 = vmatprep.mubr.msk.bf16.mxu0 %vm960_vm0, %v959_v1 }
  0x2b   : > { %900 = vmatpush3.bf16.msra.mxu0 %v944_v27 }
  0x2c   : > { %901 = vmatprep.subr.bf16.mxu0 %v959_v1 }
  0x2f   : > { %902 = vmatpush3.bf16.msra.mxu0 %v945_v28 }
  0x30   : > { %903 = vmatprep.subr.bf16.mxu0 %v959_v1 }
  0x33   : > { %904 = vmatpush3.bf16.msra.mxu0 %v946_v29 }
  0x34   : > { %905 = vmatprep.subr.bf16.mxu0 %v959_v1 }
  0x37   : > { %906 = vmatpush3.bf16.msra.mxu0 %v947_v30 }
  0x38   : > { %907 = vmatprep.subr.bf16.mxu0 %v959_v1 }
  0x3b   : > { %908 = vmatpush3.bf16.msra.mxu0 %v948_v31 }
  0x3c   : > { %909 = vmatprep.subr.bf16.mxu0 %v959_v1 }
  0x3f   : > { %910 = vmatpush3.bf16.msra.mxu0 %v949_v32 }
  0x40   : > { %911 = vmatprep.subr.bf16.mxu0 %v959_v1 }
  0x43   : > { %912 = vmatpush3.bf16.msra.mxu0 %v950_v33 }
  0x46   : > { %914 = vmatmul.mubr.bf16.vlgmr.msra.gmra.mrb[4].mxu0 %v528_v35 }
  0xf9   : > { %v433_v36 = vpop.f32.mrb[0].mxu0 }
  0xfa   : > { %v875_v37 = vpop.f32.mrb[1].mxu0  ;;  %v521_v38 = vpop.f32.mrb[0].mxu1 }
  0xfb   : > { %v522_v39 = vadd.f32 %v521_v38, %v433_v36  ;;  %v436_v40 = vpop.f32.mrb[2].mxu0  ;;  %v895_v41 = vpop.f32.mrb[1].mxu1 }
  0xfc   : > { %v876_v42 = vpop.f32.mrb[3].mxu0  ;;  %v524_v43 = vpop.f32.mrb[2].mxu1 }
  0xfd   : > { %v896_v44 = vpop.f32.mrb[3].mxu1 }
 0x119   : > { %v628_v45 = vpop.f32.mrb[4].mxu0 }
 0x11a   : > { %v634_v47 = vadd.f32 %v628_v45, %v522_v39  ;;  %v915_v48 = vpop.f32.mrb[5].mxu0 }
 0x11b   : > { %v631_v49 = vpop.f32.mrb[6].mxu0 }
 0x11c   : > { %v642_v50 = vadd.f32 %v827_v46, %v634_v47  ;;  %v916_v51 = vpop.f32.mrb[7].mxu0 }
 0x11e   : > { %643 = vst [vmem:[%s284_s23] sm:$0xff] %v642_v50  ;;  %v644_v52 = vrot.slane %v642_v50, 4  ;;  %v651_v53 = vmul.f32 %v642_v50, %v642_v50 }
 0x120   : > { %v645_v54 = vadd.f32 %v644_v52, %v642_v50  ;;  %v652_v55 = vrot.slane %v651_v53, 4 }
 0x122   : > { %v646_v56 = vrot.slane %v645_v54, 2  ;;  %v653_v57 = vadd.f32 %v652_v55, %v651_v53 }
 0x124   : > { %v647_v58 = vadd.f32 %v646_v56, %v645_v54  ;;  %v654_v59 = vrot.slane %v653_v57, 2 }
 0x126   : > { %v648_v60 = vrot.slane %v647_v58, 1  ;;  %v655_v61 = vadd.f32 %v654_v59, %v653_v57 }
 0x128   : > { %v649_v62 = vadd.f32 %v648_v60, %v647_v58  ;;  %v656_v63 = vrot.slane %v655_v61, 1 }
 0x12a   : > { %650 = vst [vmem:[%s287_s28] sm:$0x1] %v649_v62  ;;  %v657_v0 = vadd.f32 %v656_v63, %v655_v61 }
 0x12c   : > { %658 = vst [vmem:[%s290_s30] sm:$0x1] %v657_v0 }
 0x12d PF: > { %s18_s24 = sadd.s32 1, %s957_s24  }
 0x12e   : > { %p15_p4 = scmp.ge.s32.totalorder %s18_s24, 4  }
 0x130   :  { %17 = sbr.rel (!%p15_p4) target bundleno = 1 (0x1), region = 96 }

// kernel: unet_forward.24
= control target key start
LH: loop header
LB: loop body
LE: loop exit
PB: predicated region body
PF: predicated region fallthrough
CT: control target
= control target key end

     0   :  { %s823_s24 = smov 0   ;;  %s904_s0 = inlined_call_operand.vmem [shape: f32[2,8,64], index: 0, kind: input, shape index: {}]   ;;  %s905_s1 = inlined_call_operand.vmem [shape: bf16[3,64,128], index: 1, kind: input, shape index: {}]   ;;  %s906_s2 = inlined_call_operand.vmem [shape: f32[1,128], index: 2, kind: input, shape index: {}]   ;;  %s907_s3 = inlined_call_operand.vmem [shape: f32[1,64], index: 3, kind: input, shape index: {}]   ;;  %s908_s4 = inlined_call_operand.vmem [shape: f32[1,64], index: 4, kind: input, shape index: {}]   ;;  %s909_s5 = inlined_call_operand.vmem [shape: f32[2,8,128], index: 5, kind: output, shape index: {0}]   ;;  %s910_s6 = inlined_call_operand.vmem [shape: f32[2,1,128], index: 6, kind: output, shape index: {1}]   ;;  %s911_s7 = inlined_call_operand.vmem [shape: f32[2,1,128], index: 7, kind: output, shape index: {2}]  }
   0x1 LB: > { %s659_s3 = sadd.s32 4294967295, %s779_s24   ;;  %p663_p0 = scmp.ge.s32.totalorder %s779_s24, 1  ;;  %s779_s24 = sphi %s823_s24, %s18_s24  }
   0x2   : > { %p241_p1 = scmp.lt.s32.totalorder %s779_s24, 3 }
   0x4   : > { %p242_p2 = pnand %p663_p0, %p241_p1 }
   0x5   : > { %v761_v0 = vld [vmem:[%s905_s1 + $0x20] sm:$0xff] (!%p242_p2)   ;;  %v781_v1 = vmov (!%p242_p2), 0.0   ;;  %v763_v3 = vld [vmem:[%s905_s1 + $0x28] sm:$0xff] (!%p242_p2)   ;;  %vm782_vm0 = vmmov (!%p242_p2), 0   ;;  %p277_p3 = scmp.lt.s32.totalorder (!%p242_p2), %s659_s3, 1  ;;  %vm293_vm1 = vcmask (!%p242_p2), 523264  }
   0x6   : > { %245 = sbr.rel (%p242_p2) target bundleno = 274 (0x112), region = 40  ;;  %715 = vmatprep.subr.bf16.mxu0 (!%p242_p2), %v781_v1  ;;  %727 = vmatprep.subr.bf16.mxu1 (!%p242_p2), %v781_v1  ;;  %v762_v2 = vld [vmem:[%s905_s1] sm:$0xff] (!%p242_p2)   ;;  %v764_v4 = vld [vmem:[%s905_s1 + $0x8] sm:$0xff] (!%p242_p2)   ;;  %294 = vst.msk [vmem:[#allocation2] sm:$0xff] (!%p242_p2), %vm293_vm1, %v781_v1  ;;  %295 = vst.msk [vmem:[#allocation2 + $0x8] sm:$0xff] (!%p242_p2), %vm293_vm1, %v781_v1 }
   0x7   : > { %716 = vmatpush3.bf16.msra.mxu0 (!%p242_p2), %v761_v0  ;;  %723 = vmatprep.mubr.msk.bf16.mxu0 (!%p242_p2), %vm782_vm0, %v781_v1  ;;  %296 = vst.msk [vmem:[#allocation2 + $0x10] sm:$0xff] (!%p242_p2), %vm293_vm1, %v781_v1  ;;  %v765_v5 = vld [vmem:[%s905_s1 + $0x30] sm:$0xff] (!%p242_p2)   ;;  %v767_v8 = vld [vmem:[%s905_s1 + $0x38] sm:$0xff] (!%p242_p2)   ;;  %v769_v12 = vld [vmem:[%s905_s1 + $0x40] sm:$0xff] (!%p242_p2)  }
   0x8   : > { %728 = vmatpush3.bf16.msra.mxu1 (!%p242_p2), %v762_v2  ;;  %717 = vmatprep.subr.bf16.mxu0 (!%p242_p2), %v781_v1  ;;  %v766_v6 = vld [vmem:[%s905_s1 + $0x10] sm:$0xff] (!%p242_p2)   ;;  %v768_v9 = vld [vmem:[%s905_s1 + $0x18] sm:$0xff] (!%p242_p2)   ;;  %v770_v15 = vld [vmem:[%s905_s1 + $0x48] sm:$0xff] (!%p242_p2)  }
   0x9   : > { %729 = vmatprep.subr.bf16.mxu1 (!%p242_p2), %v781_v1  ;;  %735 = vmatprep.mubr.msk.bf16.mxu1 (!%p242_p2), %vm782_vm0, %v781_v1  ;;  %v771_v16 = vld [vmem:[%s905_s1 + $0x50] sm:$0xff] (!%p242_p2)   ;;  %v772_v17 = vld [vmem:[%s905_s1 + $0x58] sm:$0xff] (!%p242_p2)   ;;  %v697_v30 = vld [vmem:[%s906_s2] ss:$0 sm:$0xff] (!%p242_p2) }
   0xb   : > { %718 = vmatpush3.bf16.msra.mxu0 (!%p242_p2), %v763_v3 }
   0xc   : > { %730 = vmatpush3.bf16.msra.mxu1 (!%p242_p2), %v764_v4  ;;  %719 = vmatprep.subr.bf16.mxu0 (!%p242_p2), %v781_v1 }
   0xd   : > { %s913_s3 = smov (!%p277_p3, %s659_s3), 1  ;;  %731 = vmatprep.subr.bf16.mxu1 %v781_v1 }
   0xe   : > { %s664_s11 = sshll.u32 %s913_s3, 3  ;;  %s287_s14 = scalar_lea.vmem %s910_s6, %s913_s3 }
   0xf   : > { %s280_s16 = scalar_lea.vmem %s904_s0, %s664_s11  ;;  %720 = vmatpush3.bf16.msra.mxu0 %v765_v5  ;;  %s284_s10 = scalar_lea.vmem %s909_s5, %s664_s11 }
  0x10   : > { %v292_v7 = vld [vmem:[%s280_s16] sm:$0xff]  ;;  %732 = vmatpush3.bf16.msra.mxu1 %v766_v6  ;;  %721 = vmatprep.subr.bf16.mxu0 %v781_v1  ;;  %s290_s16 = scalar_lea.vmem %s911_s7, %s913_s3 }
  0x11   : > { %297 = vst.msk [vmem:[#allocation2 + $0x8] sm:$0xff] %vm293_vm1, %v292_v7  ;;  %733 = vmatprep.subr.bf16.mxu1 %v781_v1 }
  0x13   : > { %722 = vmatpush3.bf16.msra.mxu0 %v767_v8 }
  0x14   : > { %734 = vmatpush3.bf16.msra.mxu1 %v768_v9  ;;  %739 = vmatprep.subr.bf16.mxu0 %v781_v1 }
  0x18   : > { %v308_v10 = vld [vmem:[#allocation2 + $0x8] sm:$0xff] }
  0x19   : > { %v298_v11 = vld [vmem:[#allocation2 + $0x7] sm:$0xff]  ;;  %v309_v13 = vpack.c.bf16 %v308_v10, %v308_v10 }
  0x1a   : > { %v299_v14 = vpack.c.bf16 %v298_v11, %v298_v11  ;;  %v453_v18 = vld [vmem:[#allocation2 + $0x9] sm:$0xff] }
  0x1b   : > { %724 = vmatmul.mubr.msk.bf16.vlgmr.msra.gmra.mrb[0].mxu0 %vm293_vm1, %v309_v13  ;;  %v454_v19 = vpack.c.bf16 %v453_v18, %v453_v18 }
  0x1c   : > { %736 = vmatmul.mubr.msk.bf16.vlgmr.msra.gmra.mrb[0].mxu1 %vm293_vm1, %v299_v14  ;;  %740 = vmatpush3.bf16.msra.mxu0 %v769_v12 }
  0x1d   : > { %747 = vmatprep.mubr.msk.bf16.mxu0 %vm782_vm0, %v781_v1  ;;  %741 = vmatprep.subr.bf16.mxu0 %v781_v1 }
  0x20   : > { %742 = vmatpush3.bf16.msra.mxu0 %v770_v15 }
  0x21   : > { %743 = vmatprep.subr.bf16.mxu0 %v781_v1 }
  0x24   : > { %744 = vmatpush3.bf16.msra.mxu0 %v771_v16 }
  0x25   : > { %745 = vmatprep.subr.bf16.mxu0 %v781_v1 }
  0x28   : > { %746 = vmatpush3.bf16.msra.mxu0 %v772_v17 }
  0x2b   : > { %748 = vmatmul.mubr.msk.bf16.vlgmr.msra.gmra.mrb[4].mxu0 %vm293_vm1, %v454_v19 }
  0xee   : > { %v380_v20 = vpop.f32.mrb[0].mxu0 }
  0xef   : > { %v447_v21 = vpop.f32.mrb[0].mxu1  ;;  %v725_v22 = vpop.f32.mrb[1].mxu0 }
  0xf0   : > { %v448_v23 = vadd.f32 %v447_v21, %v380_v20  ;;  %v737_v24 = vpop.f32.mrb[1].mxu1  ;;  %v383_v25 = vpop.f32.mrb[2].mxu0 }
  0xf1   : > { %v450_v26 = vpop.f32.mrb[2].mxu1  ;;  %v726_v27 = vpop.f32.mrb[3].mxu0 }
  0xf2   : > { %v738_v28 = vpop.f32.mrb[3].mxu1 }
  0xfe   : > { %v525_v29 = vpop.f32.mrb[4].mxu0 }
  0xff   : > { %v531_v31 = vadd.f32 %v525_v29, %v448_v23  ;;  %v749_v32 = vpop.f32.mrb[5].mxu0 }
 0x100   : > { %v528_v33 = vpop.f32.mrb[6].mxu0 }
 0x101   : > { %v539_v34 = vadd.f32 %v697_v30, %v531_v31  ;;  %v750_v35 = vpop.f32.mrb[7].mxu0 }
 0x103   : > { %540 = vst [vmem:[%s284_s10] sm:$0xff] %v539_v34  ;;  %v541_v36 = vrot.slane %v539_v34, 4  ;;  %v548_v37 = vmul.f32 %v539_v34, %v539_v34 }
 0x105   : > { %v542_v38 = vadd.f32 %v541_v36, %v539_v34  ;;  %v549_v39 = vrot.slane %v548_v37, 4 }
 0x107   : > { %v543_v40 = vrot.slane %v542_v38, 2  ;;  %v550_v41 = vadd.f32 %v549_v39, %v548_v37 }
 0x109   : > { %v544_v42 = vadd.f32 %v543_v40, %v542_v38  ;;  %v551_v43 = vrot.slane %v550_v41, 2 }
 0x10b   : > { %v545_v44 = vrot.slane %v544_v42, 1  ;;  %v552_v45 = vadd.f32 %v551_v43, %v550_v41 }
 0x10d   : > { %v546_v46 = vadd.f32 %v545_v44, %v544_v42  ;;  %v553_v47 = vrot.slane %v552_v45, 1 }
 0x10f   : > { %547 = vst [vmem:[%s287_s14] sm:$0x1] %v546_v46  ;;  %v554_v48 = vadd.f32 %v553_v47, %v552_v45 }
 0x111   : > { %555 = vst [vmem:[%s290_s16] sm:$0x1] %v554_v48 }
 0x112 PF: > { %s18_s24 = sadd.s32 1, %s779_s24  }
 0x113   : > { %p15_p4 = scmp.ge.s32.totalorder %s18_s24, 4  }
 0x115   :  { %17 = sbr.rel (!%p15_p4) target bundleno = 1 (0x1), region = 96 }

// kernel: unet_forward.31
= control target key start
LH: loop header
LB: loop body
LE: loop exit
PB: predicated region body
PF: predicated region fallthrough
CT: control target
= control target key end

     0   :  { %s261_s12 = smov 0   ;;  %s297_s0 = inlined_call_operand.vmem [shape: f32[2,4,128], index: 0, kind: input, shape index: {}]   ;;  %s298_s1 = inlined_call_operand.vmem [shape: f32[1,128], index: 1, kind: input, shape index: {}]   ;;  %s299_s2 = inlined_call_operand.vmem [shape: f32[1,128], index: 2, kind: input, shape index: {}]   ;;  %s300_s3 = inlined_call_operand.vmem [shape: f32[2,4,128], index: 3, kind: output, shape index: {}]  }
   0x1 LB: > { %s238_s13 = sadd.s32 4294967295, %s263_s12   ;;  %p242_p0 = scmp.ge.s32.totalorder %s263_s12, 1  ;;  %s263_s12 = sphi %s261_s12, %s13_s12  }
   0x2   : > { %p136_p1 = scmp.lt.s32.totalorder %s263_s12, 3 }
   0x4   : > { %p137_p2 = pnand %p242_p0, %p136_p1 }
   0x5   : > { %p158_p3 = scmp.lt.s32.totalorder (!%p137_p2), %s238_s13, 1  ;;  %v245_v0 = vld [vmem:[%s298_s1] ss:$0 sm:$0xff] (!%p137_p2) }
   0x6   : > { %140 = sbr.rel (%p137_p2) target bundleno = 24 (0x18), region = 32  ;;  %v246_v2 = vld [vmem:[%s299_s2] ss:$0 sm:$0xff] (!%p137_p2) }
   0xd   : > { %s302_s13 = smov (!%p158_p3, %s238_s13), 1 }
   0xe   : > { %s243_s14 = sshll.u32 %s302_s13, 2 }
   0xf   : > { %s161_s19 = scalar_lea.vmem %s297_s0, %s243_s14  ;;  %s165_s24 = scalar_lea.vmem %s300_s3, %s243_s14 }
  0x10   : > { %v166_v1 = vld [vmem:[%s161_s19] sm:$0xf] }
  0x11   : > { %v174_v3 = vmul.f32 %v245_v0, %v166_v1 }
  0x13   : > { %v182_v4 = vadd.f32 %v246_v2, %v174_v3 }
  0x15   : > { %v183_v5 = vmax.f32 %v182_v4, 0.0 }
  0x17   : > { %184 = vst [vmem:[%s165_s24] sm:$0xf] %v183_v5 }
  0x18 PF: > { %s13_s12 = sadd.s32 1, %s263_s12  }
  0x19   : > { %p10_p4 = scmp.ge.s32.totalorder %s13_s12, 4  }
  0x1b   :  { %12 = sbr.rel (!%p10_p4) target bundleno = 1 (0x1), region = 62 }

// kernel: unet_forward.28
= control target key start
LH: loop header
LB: loop body
LE: loop exit
PB: predicated region body
PF: predicated region fallthrough
CT: control target
= control target key end

     0   :  { %s827_s24 = smov 0   ;;  %s906_s0 = inlined_call_operand.vmem [shape: f32[2,4,64], index: 0, kind: input, shape index: {}]   ;;  %s907_s1 = inlined_call_operand.vmem [shape: bf16[3,64,128], index: 1, kind: input, shape index: {}]   ;;  %s908_s2 = inlined_call_operand.vmem [shape: f32[1,128], index: 2, kind: input, shape index: {}]   ;;  %s909_s3 = inlined_call_operand.vmem [shape: f32[1,64], index: 3, kind: input, shape index: {}]   ;;  %s910_s4 = inlined_call_operand.vmem [shape: f32[1,64], index: 4, kind: input, shape index: {}]   ;;  %s911_s5 = inlined_call_operand.vmem [shape: f32[2,4,128], index: 5, kind: output, shape index: {0}]   ;;  %s912_s6 = inlined_call_operand.vmem [shape: f32[2,1,128], index: 6, kind: output, shape index: {1}]   ;;  %s913_s7 = inlined_call_operand.vmem [shape: f32[2,1,128], index: 7, kind: output, shape index: {2}]  }
   0x1 LB: > { %s663_s3 = sadd.s32 4294967295, %s783_s24   ;;  %p667_p0 = scmp.ge.s32.totalorder %s783_s24, 1  ;;  %s783_s24 = sphi %s827_s24, %s18_s24  }
   0x2   : > { %p241_p1 = scmp.lt.s32.totalorder %s783_s24, 3 }
   0x4   : > { %p242_p2 = pnand %p667_p0, %p241_p1 }
   0x5   : > { %v765_v0 = vld [vmem:[%s907_s1 + $0x20] sm:$0xff] (!%p242_p2)   ;;  %v785_v1 = vmov (!%p242_p2), 0.0   ;;  %v767_v3 = vld [vmem:[%s907_s1 + $0x28] sm:$0xff] (!%p242_p2)   ;;  %vm786_vm0 = vmmov (!%p242_p2), 0   ;;  %p277_p3 = scmp.lt.s32.totalorder (!%p242_p2), %s663_s3, 1  ;;  %vm293_vm1 = vcmask (!%p242_p2), 523264  }
   0x6   : > { %245 = sbr.rel (%p242_p2) target bundleno = 275 (0x113), region = 40  ;;  %719 = vmatprep.subr.bf16.mxu0 (!%p242_p2), %v785_v1  ;;  %731 = vmatprep.subr.bf16.mxu1 (!%p242_p2), %v785_v1  ;;  %v766_v2 = vld [vmem:[%s907_s1] sm:$0xff] (!%p242_p2)   ;;  %v768_v4 = vld [vmem:[%s907_s1 + $0x8] sm:$0xff] (!%p242_p2)   ;;  %294 = vst.msk [vmem:[#allocation2] sm:$0xff] (!%p242_p2), %vm293_vm1, %v785_v1  ;;  %295 = vst.msk [vmem:[#allocation2 + $0x8] sm:$0xff] (!%p242_p2), %vm293_vm1, %v785_v1  ;;  %vm296_vm2 = vcmask (!%p242_p2), 519168  }
   0x7   : > { %720 = vmatpush3.bf16.msra.mxu0 (!%p242_p2), %v765_v0  ;;  %727 = vmatprep.mubr.msk.bf16.mxu0 (!%p242_p2), %vm786_vm0, %v785_v1  ;;  %v769_v5 = vld [vmem:[%s907_s1 + $0x30] sm:$0xff] (!%p242_p2)   ;;  %v771_v8 = vld [vmem:[%s907_s1 + $0x38] sm:$0xff] (!%p242_p2)   ;;  %v773_v12 = vld [vmem:[%s907_s1 + $0x40] sm:$0xff] (!%p242_p2)   ;;  %vm542_vm3 = vcmask (!%p242_p2), 1043456  }
   0x8   : > { %732 = vmatpush3.bf16.msra.mxu1 (!%p242_p2), %v766_v2  ;;  %721 = vmatprep.subr.bf16.mxu0 (!%p242_p2), %v785_v1  ;;  %v770_v6 = vld [vmem:[%s907_s1 + $0x10] sm:$0xff] (!%p242_p2)   ;;  %v772_v9 = vld [vmem:[%s907_s1 + $0x18] sm:$0xff] (!%p242_p2)   ;;  %v774_v15 = vld [vmem:[%s907_s1 + $0x48] sm:$0xff] (!%p242_p2)  }
   0x9   : > { %733 = vmatprep.subr.bf16.mxu1 (!%p242_p2), %v785_v1  ;;  %739 = vmatprep.mubr.msk.bf16.mxu1 (!%p242_p2), %vm786_vm0, %v785_v1  ;;  %v775_v16 = vld [vmem:[%s907_s1 + $0x50] sm:$0xff] (!%p242_p2)   ;;  %v776_v17 = vld [vmem:[%s907_s1 + $0x58] sm:$0xff] (!%p242_p2)   ;;  %v701_v30 = vld [vmem:[%s908_s2] ss:$0 sm:$0xff] (!%p242_p2) }
   0xb   : > { %722 = vmatpush3.bf16.msra.mxu0 (!%p242_p2), %v767_v3 }
   0xc   : > { %734 = vmatpush3.bf16.msra.mxu1 (!%p242_p2), %v768_v4  ;;  %723 = vmatprep.subr.bf16.mxu0 (!%p242_p2), %v785_v1 }
   0xd   : > { %s915_s3 = smov (!%p277_p3, %s663_s3), 1  ;;  %735 = vmatprep.subr.bf16.mxu1 %v785_v1 }
   0xe   : > { %s668_s11 = sshll.u32 %s915_s3, 2  ;;  %s287_s13 = scalar_lea.vmem %s912_s6, %s915_s3 }
   0xf   : > { %s280_s16 = scalar_lea.vmem %s906_s0, %s668_s11  ;;  %724 = vmatpush3.bf16.msra.mxu0 %v769_v5  ;;  %s284_s10 = scalar_lea.vmem %s911_s5, %s668_s11 }
  0x10   : > { %v292_v7 = vld [vmem:[%s280_s16] sm:$0xf]  ;;  %736 = vmatpush3.bf16.msra.mxu1 %v770_v6  ;;  %725 = vmatprep.subr.bf16.mxu0 %v785_v1  ;;  %s290_s16 = scalar_lea.vmem %s913_s7, %s915_s3 }
  0x11   : > { %298 = vst.msk [vmem:[#allocation2 + $0x8] sm:$0xf] %vm296_vm2, %v292_v7  ;;  %737 = vmatprep.subr.bf16.mxu1 %v785_v1 }
  0x13   : > { %726 = vmatpush3.bf16.msra.mxu0 %v771_v8 }
  0x14   : > { %738 = vmatpush3.bf16.msra.mxu1 %v772_v9  ;;  %743 = vmatprep.subr.bf16.mxu0 %v785_v1 }
  0x18   : > { %v309_v10 = vld [vmem:[#allocation2 + $0x8] sm:$0xf] }
  0x19   : > { %v299_v11 = vld [vmem:[#allocation2 + $0x7] sm:$0xf]  ;;  %v310_v13 = vpack.c.bf16 %v309_v10, %v309_v10 }
  0x1a   : > { %v300_v14 = vpack.c.bf16 %v299_v11, %v299_v11  ;;  %v454_v18 = vld [vmem:[#allocation2 + $0x9] sm:$0xf] }
  0x1b   : > { %728 = vmatmul.mubr.msk.bf16.vlgmr.msra.gmra.mrb[0].mxu0 %vm293_vm1, %v310_v13  ;;  %v455_v19 = vpack.c.bf16 %v454_v18, %v454_v18 }
  0x1c   : > { %740 = vmatmul.mubr.msk.bf16.vlgmr.msra.gmra.mrb[0].mxu1 %vm293_vm1, %v300_v14  ;;  %744 = vmatpush3.bf16.msra.mxu0 %v773_v12 }
  0x1d   : > { %751 = vmatprep.mubr.msk.bf16.mxu0 %vm786_vm0, %v785_v1  ;;  %745 = vmatprep.subr.bf16.mxu0 %v785_v1 }
  0x20   : > { %746 = vmatpush3.bf16.msra.mxu0 %v774_v15 }
  0x21   : > { %747 = vmatprep.subr.bf16.mxu0 %v785_v1 }
  0x24   : > { %748 = vmatpush3.bf16.msra.mxu0 %v775_v16 }
  0x25   : > { %749 = vmatprep.subr.bf16.mxu0 %v785_v1 }
  0x28   : > { %750 = vmatpush3.bf16.msra.mxu0 %v776_v17 }
  0x2b   : > { %752 = vmatmul.mubr.msk.bf16.vlgmr.msra.gmra.mrb[4].mxu0 %vm293_vm1, %v455_v19 }
  0xee   : > { %v381_v20 = vpop.f32.mrb[0].mxu0 }
  0xef   : > { %v448_v21 = vpop.f32.mrb[0].mxu1  ;;  %v729_v22 = vpop.f32.mrb[1].mxu0 }
  0xf0   : > { %v449_v23 = vadd.f32 %v448_v21, %v381_v20  ;;  %v741_v24 = vpop.f32.mrb[1].mxu1  ;;  %v384_v25 = vpop.f32.mrb[2].mxu0 }
  0xf1   : > { %v451_v26 = vpop.f32.mrb[2].mxu1  ;;  %v730_v27 = vpop.f32.mrb[3].mxu0 }
  0xf2   : > { %v742_v28 = vpop.f32.mrb[3].mxu1 }
  0xfe   : > { %v526_v29 = vpop.f32.mrb[4].mxu0 }
  0xff   : > { %v532_v31 = vadd.f32 %v526_v29, %v449_v23  ;;  %v753_v32 = vpop.f32.mrb[5].mxu0 }
 0x100   : > { %v529_v33 = vpop.f32.mrb[6].mxu0 }
 0x101   : > { %v540_v34 = vadd.f32 %v701_v30, %v532_v31  ;;  %v754_v35 = vpop.f32.mrb[7].mxu0 }
 0x103   : > { %541 = vst [vmem:[%s284_s10] sm:$0xf] %v540_v34  ;;  %v543_v36 = vsel %vm542_vm3, %v540_v34, 0.0  ;;  %v551_v37 = vmul.f32 %v540_v34, %v540_v34 }
 0x104   : > { %v544_v38 = vrot.slane %v543_v36, 4 }
 0x105   : > { %v552_v39 = vsel %vm542_vm3, %v551_v37, 0.0 }
 0x106   : > { %v545_v40 = vadd.f32 %v544_v38, %v543_v36  ;;  %v553_v41 = vrot.slane %v552_v39, 4 }
 0x108   : > { %v546_v42 = vrot.slane %v545_v40, 2  ;;  %v554_v43 = vadd.f32 %v553_v41, %v552_v39 }
 0x10a   : > { %v547_v44 = vadd.f32 %v546_v42, %v545_v40  ;;  %v555_v45 = vrot.slane %v554_v43, 2 }
 0x10c   : > { %v548_v46 = vrot.slane %v547_v44, 1  ;;  %v556_v47 = vadd.f32 %v555_v45, %v554_v43 }
 0x10e   : > { %v549_v48 = vadd.f32 %v548_v46, %v547_v44  ;;  %v557_v49 = vrot.slane %v556_v47, 1 }
 0x110   : > { %550 = vst [vmem:[%s287_s13] sm:$0x1] %v549_v48  ;;  %v558_v50 = vadd.f32 %v557_v49, %v556_v47 }
 0x112   : > { %559 = vst [vmem:[%s290_s16] sm:$0x1] %v558_v50 }
 0x113 PF: > { %s18_s24 = sadd.s32 1, %s783_s24  }
 0x114   : > { %p15_p4 = scmp.ge.s32.totalorder %s18_s24, 4  }
 0x116   :  { %17 = sbr.rel (!%p15_p4) target bundleno = 1 (0x1), region = 96 }

// kernel: unet_forward.29
= control target key start
LH: loop header
LB: loop body
LE: loop exit
PB: predicated region body
PF: predicated region fallthrough
CT: control target
= control target key end

     0   :  { %s1004_s24 = smov 0   ;;  %s1149_s0 = inlined_call_operand.vmem [shape: f32[2,4,128], index: 0, kind: input, shape index: {}]   ;;  %s1150_s1 = inlined_call_operand.vmem [shape: bf16[3,128,128], index: 1, kind: input, shape index: {}]   ;;  %s1151_s2 = inlined_call_operand.vmem [shape: f32[1,128], index: 2, kind: input, shape index: {}]   ;;  %s1152_s3 = inlined_call_operand.vmem [shape: f32[1,128], index: 3, kind: input, shape index: {}]   ;;  %s1153_s4 = inlined_call_operand.vmem [shape: f32[1,128], index: 4, kind: input, shape index: {}]   ;;  %s1154_s5 = inlined_call_operand.vmem [shape: f32[2,4,128], index: 5, kind: output, shape index: {0}]   ;;  %s1155_s6 = inlined_call_operand.vmem [shape: f32[2,1,128], index: 6, kind: output, shape index: {1}]   ;;  %s1156_s7 = inlined_call_operand.vmem [shape: f32[2,1,128], index: 7, kind: output, shape index: {2}]  }
   0x1 LB: > { %s765_s25 = sadd.s32 4294967295, %s960_s24   ;;  %p769_p0 = scmp.ge.s32.totalorder %s960_s24, 1  ;;  %s960_s24 = sphi %s1004_s24, %s18_s24  }
   0x2   : > { %p241_p1 = scmp.lt.s32.totalorder %s960_s24, 3 }
   0x4   : > { %p242_p2 = pnand %p769_p0, %p241_p1 }
   0x5   : > { %v930_v0 = vld [vmem:[%s1150_s1 + $0x40] sm:$0xff] (!%p242_p2)   ;;  %v962_v1 = vmov (!%p242_p2), 0.0   ;;  %v932_v3 = vld [vmem:[%s1150_s1 + $0x48] sm:$0xff] (!%p242_p2)   ;;  %vm963_vm0 = vmmov (!%p242_p2), 0   ;;  %p277_p3 = scmp.lt.s32.totalorder (!%p242_p2), %s765_s25, 1  ;;  %v934_v5 = vld [vmem:[%s1150_s1 + $0x50] sm:$0xff] (!%p242_p2)  }
   0x6   : > { %245 = sbr.rel (%p242_p2) target bundleno = 302 (0x12e), region = 40  ;;  %860 = vmatprep.subr.bf16.mxu0 (!%p242_p2), %v962_v1  ;;  %310 = vst [vmem:[#allocation2] sm:$0xff] (!%p242_p2), %v962_v1  ;;  %311 = vst [vmem:[#allocation2 + $0x8] sm:$0xff] (!%p242_p2), %v962_v1  ;;  %880 = vmatprep.subr.bf16.mxu1 (!%p242_p2), %v962_v1  ;;  %v931_v2 = vld [vmem:[%s1150_s1] sm:$0xff] (!%p242_p2)   ;;  %v933_v4 = vld [vmem:[%s1150_s1 + $0x8] sm:$0xff] (!%p242_p2)   ;;  %vm644_vm1 = vcmask (!%p242_p2), 1043456  }
   0x7   : > { %861 = vmatpush3.bf16.msra.mxu0 (!%p242_p2), %v930_v0  ;;  %876 = vmatprep.mubr.msk.bf16.mxu0 (!%p242_p2), %vm963_vm0, %v962_v1  ;;  %v935_v6 = vld [vmem:[%s1150_s1 + $0x10] sm:$0xff] (!%p242_p2)   ;;  %v936_v7 = vld [vmem:[%s1150_s1 + $0x58] sm:$0xff] (!%p242_p2)   ;;  %v938_v9 = vld [vmem:[%s1150_s1 + $0x60] sm:$0xff] (!%p242_p2)  }
   0x8   : > { %881 = vmatpush3.bf16.msra.mxu1 (!%p242_p2), %v931_v2  ;;  %862 = vmatprep.subr.bf16.mxu0 (!%p242_p2), %v962_v1  ;;  %v937_v8 = vld [vmem:[%s1150_s1 + $0x18] sm:$0xff] (!%p242_p2)   ;;  %v939_v10 = vld [vmem:[%s1150_s1 + $0x20] sm:$0xff] (!%p242_p2)   ;;  %v940_v15 = vld [vmem:[%s1150_s1 + $0x68] sm:$0xff] (!%p242_p2)  }
   0x9   : > { %882 = vmatprep.subr.bf16.mxu1 (!%p242_p2), %v962_v1  ;;  %896 = vmatprep.mubr.msk.bf16.mxu1 (!%p242_p2), %vm963_vm0, %v962_v1  ;;  %v772_v12 = vld [vmem:[%s1152_s3] ss:$0 sm:$0xff] (!%p242_p2)  ;;  %v941_v16 = vld [vmem:[%s1150_s1 + $0x28] sm:$0xff] (!%p242_p2)   ;;  %v942_v19 = vld [vmem:[%s1150_s1 + $0x70] sm:$0xff] (!%p242_p2)  }
   0xa   : > { %v773_v13 = vld [vmem:[%s1153_s4] ss:$0 sm:$0xff] (!%p242_p2)  ;;  %v943_v20 = vld [vmem:[%s1150_s1 + $0x30] sm:$0xff] (!%p242_p2)   ;;  %v944_v21 = vld [vmem:[%s1150_s1 + $0x78] sm:$0xff] (!%p242_p2)  }
   0xb   : > { %863 = vmatpush3.bf16.msra.mxu0 (!%p242_p2), %v932_v3  ;;  %v945_v22 = vld [vmem:[%s1150_s1 + $0x38] sm:$0xff] (!%p242_p2)   ;;  %v946_v25 = vld [vmem:[%s1150_s1 + $0x80] sm:$0xff] (!%p242_p2)   ;;  %v947_v28 = vld [vmem:[%s1150_s1 + $0x88] sm:$0xff] (!%p242_p2)  }
   0xc   : > { %883 = vmatpush3.bf16.msra.mxu1 (!%p242_p2), %v933_v4  ;;  %864 = vmatprep.subr.bf16.mxu0 (!%p242_p2), %v962_v1  ;;  %v948_v29 = vld [vmem:[%s1150_s1 + $0x90] sm:$0xff] (!%p242_p2)   ;;  %v949_v30 = vld [vmem:[%s1150_s1 + $0x98] sm:$0xff] (!%p242_p2)   ;;  %v950_v31 = vld [vmem:[%s1150_s1 + $0xa0] sm:$0xff] (!%p242_p2)  }
   0xd   : > { %s1158_s25 = smov (!%p277_p3, %s765_s25), 1  ;;  %884 = vmatprep.subr.bf16.mxu1 %v962_v1  ;;  %v951_v32 = vld [vmem:[%s1150_s1 + $0xa8] sm:$0xff]   ;;  %v952_v33 = vld [vmem:[%s1150_s1 + $0xb0] sm:$0xff]   ;;  %v953_v34 = vld [vmem:[%s1150_s1 + $0xb8] sm:$0xff]  }
   0xe   : > { %s770_s17 = sshll.u32 %s1158_s25, 2  ;;  %v830_v47 = vld [vmem:[%s1151_s2] ss:$0 sm:$0xff]  ;;  %s287_s27 = scalar_lea.vmem %s1155_s6, %s1158_s25 }
   0xf   : > { %865 = vmatpush3.bf16.msra.mxu0 %v934_v5  ;;  %s280_s22 = scalar_lea.vmem %s1149_s0, %s770_s17  ;;  %s284_s23 = scalar_lea.vmem %s1154_s5, %s770_s17 }
  0x10   : > { %885 = vmatpush3.bf16.msra.mxu1 %v935_v6  ;;  %866 = vmatprep.subr.bf16.mxu0 %v962_v1  ;;  %v292_v11 = vld [vmem:[%s280_s22] sm:$0xf]  ;;  %s290_s30 = scalar_lea.vmem %s1156_s7, %s1158_s25 }
  0x11   : > { %886 = vmatprep.subr.bf16.mxu1 %v962_v1  ;;  %v300_v14 = vmul.f32 %v772_v12, %v292_v11 }
  0x13   : > { %867 = vmatpush3.bf16.msra.mxu0 %v936_v7  ;;  %v308_v17 = vadd.f32 %v773_v13, %v300_v14 }
  0x14   : > { %887 = vmatpush3.bf16.msra.mxu1 %v937_v8  ;;  %868 = vmatprep.subr.bf16.mxu0 %v962_v1 }
  0x15   : > { %888 = vmatprep.subr.bf16.mxu1 %v962_v1  ;;  %v309_v18 = vmax.f32 %v308_v17, 0.0 }
  0x17   : > { %869 = vmatpush3.bf16.msra.mxu0 %v938_v9  ;;  %313 = vst [vmem:[#allocation2 + $0x8] sm:$0xf] %v309_v18 }
  0x18   : > { %889 = vmatpush3.bf16.msra.mxu1 %v939_v10  ;;  %870 = vmatprep.subr.bf16.mxu0 %v962_v1 }
  0x19   : > { %890 = vmatprep.subr.bf16.mxu1 %v962_v1 }
  0x1b   : > { %871 = vmatpush3.bf16.msra.mxu0 %v940_v15 }
  0x1c   : > { %891 = vmatpush3.bf16.msra.mxu1 %v941_v16  ;;  %872 = vmatprep.subr.bf16.mxu0 %v962_v1 }
  0x1d   : > { %892 = vmatprep.subr.bf16.mxu1 %v962_v1 }
  0x1e   : > { %v332_v23 = vld [vmem:[#allocation2 + $0x8] sm:$0xf] }
  0x1f   : > { %873 = vmatpush3.bf16.msra.mxu0 %v942_v19  ;;  %v314_v24 = vld [vmem:[#allocation2 + $0x7] sm:$0xf]  ;;  %v333_v26 = vpack.c.bf16 %v332_v23, %v332_v23 }
  0x20   : > { %893 = vmatpush3.bf16.msra.mxu1 %v943_v20  ;;  %874 = vmatprep.subr.bf16.mxu0 %v962_v1  ;;  %v315_v27 = vpack.c.bf16 %v314_v24, %v314_v24  ;;  %v527_v35 = vld [vmem:[#allocation2 + $0x9] sm:$0xf] }
  0x21   : > { %894 = vmatprep.subr.bf16.mxu1 %v962_v1  ;;  %v528_v36 = vpack.c.bf16 %v527_v35, %v527_v35 }
  0x23   : > { %875 = vmatpush3.bf16.msra.mxu0 %v944_v21 }
  0x24   : > { %895 = vmatpush3.bf16.msra.mxu1 %v945_v22  ;;  %900 = vmatprep.subr.bf16.mxu0 %v962_v1 }
  0x26   : > { %877 = vmatmul.mubr.bf16.vlgmr.msra.gmra.mrb[0].mxu0 %v333_v26 }
  0x27   : > { %897 = vmatmul.mubr.bf16.vlgmr.msra.gmra.mrb[0].mxu1 %v315_v27  ;;  %901 = vmatpush3.bf16.msra.mxu0 %v946_v25 }
  0x28   : > { %902 = vmatprep.subr.bf16.mxu0 %v962_v1  ;;  %916 = vmatprep.mubr.msk.bf16.mxu0 %vm963_vm0, %v962_v1 }
  0x2b   : > { %903 = vmatpush3.bf16.msra.mxu0 %v947_v28 }
  0x2c   : > { %904 = vmatprep.subr.bf16.mxu0 %v962_v1 }
  0x2f   : > { %905 = vmatpush3.bf16.msra.mxu0 %v948_v29 }
  0x30   : > { %906 = vmatprep.subr.bf16.mxu0 %v962_v1 }
  0x33   : > { %907 = vmatpush3.bf16.msra.mxu0 %v949_v30 }
  0x34   : > { %908 = vmatprep.subr.bf16.mxu0 %v962_v1 }
  0x37   : > { %909 = vmatpush3.bf16.msra.mxu0 %v950_v31 }
  0x38   : > { %910 = vmatprep.subr.bf16.mxu0 %v962_v1 }
  0x3b   : > { %911 = vmatpush3.bf16.msra.mxu0 %v951_v32 }
  0x3c   : > { %912 = vmatprep.subr.bf16.mxu0 %v962_v1 }
  0x3f   : > { %913 = vmatpush3.bf16.msra.mxu0 %v952_v33 }
  0x40   : > { %914 = vmatprep.subr.bf16.mxu0 %v962_v1 }
  0x43   : > { %915 = vmatpush3.bf16.msra.mxu0 %v953_v34 }
  0x46   : > { %917 = vmatmul.mubr.bf16.vlgmr.msra.gmra.mrb[4].mxu0 %v528_v36 }
  0xf9   : > { %v433_v37 = vpop.f32.mrb[0].mxu0 }
  0xfa   : > { %v878_v38 = vpop.f32.mrb[1].mxu0  ;;  %v521_v39 = vpop.f32.mrb[0].mxu1 }
  0xfb   : > { %v522_v40 = vadd.f32 %v521_v39, %v433_v37  ;;  %v436_v41 = vpop.f32.mrb[2].mxu0  ;;  %v898_v42 = vpop.f32.mrb[1].mxu1 }
  0xfc   : > { %v879_v43 = vpop.f32.mrb[3].mxu0  ;;  %v524_v44 = vpop.f32.mrb[2].mxu1 }
  0xfd   : > { %v899_v45 = vpop.f32.mrb[3].mxu1 }
 0x119   : > { %v628_v46 = vpop.f32.mrb[4].mxu0 }
 0x11a   : > { %v634_v48 = vadd.f32 %v628_v46, %v522_v40  ;;  %v918_v49 = vpop.f32.mrb[5].mxu0 }
 0x11b   : > { %v631_v50 = vpop.f32.mrb[6].mxu0 }
 0x11c   : > { %v642_v51 = vadd.f32 %v830_v47, %v634_v48  ;;  %v919_v52 = vpop.f32.mrb[7].mxu0 }
 0x11e   : > { %643 = vst [vmem:[%s284_s23] sm:$0xf] %v642_v51  ;;  %v645_v53 = vsel %vm644_vm1, %v642_v51, 0.0  ;;  %v653_v54 = vmul.f32 %v642_v51, %v642_v51 }
 0x11f   : > { %v646_v55 = vrot.slane %v645_v53, 4 }
 0x120   : > { %v654_v56 = vsel %vm644_vm1, %v653_v54, 0.0 }
 0x121   : > { %v647_v57 = vadd.f32 %v646_v55, %v645_v53  ;;  %v655_v58 = vrot.slane %v654_v56, 4 }
 0x123   : > { %v648_v59 = vrot.slane %v647_v57, 2  ;;  %v656_v60 = vadd.f32 %v655_v58, %v654_v56 }
 0x125   : > { %v649_v61 = vadd.f32 %v648_v59, %v647_v57  ;;  %v657_v62 = vrot.slane %v656_v60, 2 }
 0x127   : > { %v650_v63 = vrot.slane %v649_v61, 1  ;;  %v658_v0 = vadd.f32 %v657_v62, %v656_v60 }
 0x129   : > { %v651_v1 = vadd.f32 %v650_v63, %v649_v61  ;;  %v659_v2 = vrot.slane %v658_v0, 1 }
 0x12b   : > { %652 = vst [vmem:[%s287_s27] sm:$0x1] %v651_v1  ;;  %v660_v3 = vadd.f32 %v659_v2, %v658_v0 }
 0x12d   : > { %661 = vst [vmem:[%s290_s30] sm:$0x1] %v660_v3 }
 0x12e PF: > { %s18_s24 = sadd.s32 1, %s960_s24  }
 0x12f   : > { %p15_p4 = scmp.ge.s32.totalorder %s18_s24, 4  }
 0x131   :  { %17 = sbr.rel (!%p15_p4) target bundleno = 1 (0x1), region = 96 }

// kernel: unet_forward.32
= control target key start
LH: loop header
LB: loop body
LE: loop exit
PB: predicated region body
PF: predicated region fallthrough
CT: control target
= control target key end

     0   :  { %s1795_s24 = smov 0   ;;  %s2083_s0 = inlined_call_operand.vmem [shape: f32[2,8,384], index: 0, kind: input, shape index: {}]   ;;  %s2084_s1 = inlined_call_operand.vmem [shape: bf16[3,384,128], index: 1, kind: input, shape index: {}]   ;;  %s2085_s2 = inlined_call_operand.vmem [shape: f32[1,128], index: 2, kind: input, shape index: {}]   ;;  %s2086_s3 = inlined_call_operand.vmem [shape: f32[1,384], index: 3, kind: input, shape index: {}]   ;;  %s2087_s4 = inlined_call_operand.vmem [shape: f32[1,384], index: 4, kind: input, shape index: {}]   ;;  %s2088_s5 = inlined_call_operand.vmem [shape: f32[2,8,128], index: 5, kind: output, shape index: {0}]   ;;  %s2089_s6 = inlined_call_operand.vmem [shape: f32[2,1,128], index: 6, kind: output, shape index: {1}]   ;;  %s2090_s7 = inlined_call_operand.vmem [shape: f32[2,1,128], index: 7, kind: output, shape index: {2}]  }
   0x1 LB: > { %s1331_s3 = sadd.s32 4294967295, %s1751_s24   ;;  %p1335_p0 = scmp.ge.s32.totalorder %s1751_s24, 1  ;;  %s1751_s24 = sphi %s1795_s24, %s18_s24  }
   0x2   : > { %p242_p1 = scmp.lt.s32.totalorder %s1751_s24, 3 }
   0x4   : > { %p243_p2 = pnand %p1335_p0, %p242_p1 }
   0x5   : > { %v1673_v0 = vld [vmem:[%s2084_s1 + $0x100] sm:$0xff] (!%p243_p2)   ;;  %v1753_v1 = vmov (!%p243_p2), 0.0   ;;  %v1676_v4 = vld [vmem:[%s2084_s1 + $0x108] sm:$0xff] (!%p243_p2)   ;;  %vm1754_vm0 = vmmov (!%p243_p2), 0   ;;  %v1679_v7 = vld [vmem:[%s2084_s1 + $0x110] sm:$0xff] (!%p243_p2)   ;;  %p279_p3 = scmp.lt.s32.totalorder (!%p243_p2), %s1331_s3, 1 }
   0x6   : > { %246 = sbr.rel (%p243_p2) target bundleno = 338 (0x152), region = 40  ;;  %1602 = vmatprep.subr.bf16.mxu1 (!%p243_p2), %v1753_v1  ;;  %298 = vst [vmem:[#allocation2] sm:$0xff] (!%p243_p2), %v1753_v1  ;;  %299 = vst [vmem:[#allocation2 + $0x8] sm:$0xff] (!%p243_p2), %v1753_v1  ;;  %v1674_v2 = vld [vmem:[%s2084_s1 + $0xc0] sm:$0xff] (!%p243_p2)   ;;  %1509 = vmatprep.subr.bf16.mxu0 (!%p243_p2), %v1673_v0  ;;  %v1677_v5 = vld [vmem:[%s2084_s1 + $0xc8] sm:$0xff] (!%p243_p2)  }
   0x7   : > { %300 = vst [vmem:[#allocation2 + $0x10] sm:$0xff] (!%p243_p2), %v1753_v1  ;;  %304 = vst [vmem:[#allocation2 + $0x30] sm:$0xff] (!%p243_p2), %v1753_v1  ;;  %v1675_v3 = vld [vmem:[%s2084_s1 + $0x140] sm:$0xff] (!%p243_p2)   ;;  %1510 = vmatpush3.bf16.msra.mxu0 (!%p243_p2), %v1674_v2  ;;  %1618 = vmatprep.mubr.msk.bf16.mxu1 (!%p243_p2), %vm1754_vm0, %v1753_v1  ;;  %v1678_v6 = vld [vmem:[%s2084_s1 + $0x148] sm:$0xff] (!%p243_p2)  }
   0x8   : > { %305 = vst [vmem:[#allocation2 + $0x38] sm:$0xff] (!%p243_p2), %v1753_v1  ;;  %306 = vst [vmem:[#allocation2 + $0x40] sm:$0xff] (!%p243_p2), %v1753_v1  ;;  %1603 = vmatpush3.bf16.msra.mxu1 (!%p243_p2), %v1675_v3  ;;  %1511 = vmatprep.subr.bf16.mxu0 (!%p243_p2), %v1676_v4  ;;  %v1680_v8 = vld [vmem:[%s2084_s1 + $0xd0] sm:$0xff] (!%p243_p2)   ;;  %v1682_v10 = vld [vmem:[%s2084_s1 + $0x118] sm:$0xff] (!%p243_p2)  }
   0x9   : > { %1604 = vmatprep.subr.bf16.mxu1 (!%p243_p2), %v1753_v1  ;;  %v1681_v9 = vld [vmem:[%s2084_s1 + $0x150] sm:$0xff] (!%p243_p2)   ;;  %v1683_v11 = vld [vmem:[%s2084_s1 + $0xd8] sm:$0xff] (!%p243_p2)   ;;  %v1685_v13 = vld [vmem:[%s2084_s1 + $0x120] sm:$0xff] (!%p243_p2)  }
   0xa   : > { %v1684_v12 = vld [vmem:[%s2084_s1 + $0x158] sm:$0xff] (!%p243_p2)   ;;  %v1686_v14 = vld [vmem:[%s2084_s1 + $0xe0] sm:$0xff] (!%p243_p2)   ;;  %v1688_v16 = vld [vmem:[%s2084_s1 + $0x128] sm:$0xff] (!%p243_p2)  }
   0xb   : > { %1512 = vmatpush3.bf16.msra.mxu0 (!%p243_p2), %v1677_v5  ;;  %v1687_v15 = vld [vmem:[%s2084_s1 + $0x160] sm:$0xff] (!%p243_p2)   ;;  %v1689_v17 = vld [vmem:[%s2084_s1 + $0xe8] sm:$0xff] (!%p243_p2)   ;;  %v1691_v19 = vld [vmem:[%s2084_s1 + $0x130] sm:$0xff] (!%p243_p2)  }
   0xc   : > { %1605 = vmatpush3.bf16.msra.mxu1 (!%p243_p2), %v1678_v6  ;;  %1513 = vmatprep.subr.bf16.mxu0 (!%p243_p2), %v1679_v7  ;;  %v1690_v18 = vld [vmem:[%s2084_s1 + $0x168] sm:$0xff] (!%p243_p2)   ;;  %v1692_v20 = vld [vmem:[%s2084_s1 + $0xf0] sm:$0xff] (!%p243_p2)   ;;  %v1694_v22 = vld [vmem:[%s2084_s1 + $0x138] sm:$0xff] (!%p243_p2)  }
   0xd   : > { %1606 = vmatprep.subr.bf16.mxu1 %v1753_v1  ;;  %s2092_s3 = smov (!%p279_p3, %s1331_s3), 1  ;;  %v1693_v21 = vld [vmem:[%s2084_s1 + $0x170] sm:$0xff]   ;;  %v1695_v27 = vld [vmem:[%s2084_s1 + $0xf8] sm:$0xff]   ;;  %v1697_v29 = vld [vmem:[%s2084_s1 + $0x40] sm:$0xff]  }
   0xe   : > { %s1662_s10 = smul.u32 24, %s2092_s3  ;;  %v1696_v28 = vld [vmem:[%s2084_s1 + $0x178] sm:$0xff]   ;;  %v1698_v31 = vld [vmem:[%s2084_s1] sm:$0xff]   ;;  %v1700_v34 = vld [vmem:[%s2084_s1 + $0x48] sm:$0xff]   ;;  %s1337_s11 = sshll.u32 %s2092_s3, 3 }
   0xf   : > { %1514 = vmatpush3.bf16.msra.mxu0 %v1680_v8  ;;  %v1699_v33 = vld [vmem:[%s2084_s1 + $0x80] sm:$0xff]   ;;  %v1701_v35 = vld [vmem:[%s2084_s1 + $0x8] sm:$0xff]   ;;  %v1703_v37 = vld [vmem:[%s2084_s1 + $0x50] sm:$0xff]   ;;  %s287_s16 = scalar_lea.vmem %s2088_s5, %s1337_s11  ;;  %s290_s19 = scalar_lea.vmem %s2089_s6, %s2092_s3 }
  0x10   : > { %1607 = vmatpush3.bf16.msra.mxu1 %v1681_v9  ;;  %1515 = vmatprep.subr.bf16.mxu0 %v1682_v10  ;;  %s283_s21 = scalar_lea.vmem %s2083_s0, %s1662_s10  ;;  %v1702_v36 = vld [vmem:[%s2084_s1 + $0x88] sm:$0xff]   ;;  %v1704_v38 = vld [vmem:[%s2084_s1 + $0x10] sm:$0xff]   ;;  %v1706_v40 = vld [vmem:[%s2084_s1 + $0x58] sm:$0xff]   ;;  %s293_s22 = scalar_lea.vmem %s2090_s7, %s2092_s3 }
  0x11   : > { %1608 = vmatprep.subr.bf16.mxu1 %v1753_v1  ;;  %v296_v23 = vld [vmem:[%s283_s21 + $0x8] sm:$0xff]  ;;  %v295_v24 = vld [vmem:[%s283_s21] sm:$0xff]  ;;  %v297_v26 = vld [vmem:[%s283_s21 + $0x10] sm:$0xff] }
  0x12   : > { %308 = vst [vmem:[#allocation2 + $0x20] sm:$0xff] %v296_v23  ;;  %v371_v25 = vpack.c.bf16 %v296_v23, %v296_v23  ;;  %307 = vst [vmem:[#allocation2 + $0x18] sm:$0xff] %v295_v24  ;;  %v370_v30 = vpack.c.bf16 %v295_v24, %v295_v24  ;;  %v372_v32 = vpack.c.bf16 %v297_v26, %v297_v26  ;;  %v1705_v39 = vld [vmem:[%s2084_s1 + $0x90] sm:$0xff]   ;;  %v1707_v41 = vld [vmem:[%s2084_s1 + $0x18] sm:$0xff]  }
  0x13   : > { %1516 = vmatpush3.bf16.msra.mxu0 %v1683_v11  ;;  %309 = vst [vmem:[#allocation2 + $0x28] sm:$0xff] %v297_v26  ;;  %v1708_v42 = vld [vmem:[%s2084_s1 + $0x98] sm:$0xff]   ;;  %v1709_v43 = vld [vmem:[%s2084_s1 + $0x60] sm:$0xff]   ;;  %v1712_v46 = vld [vmem:[%s2084_s1 + $0x68] sm:$0xff]  }
  0x14   : > { %1609 = vmatpush3.bf16.msra.mxu1 %v1684_v12  ;;  %1517 = vmatprep.subr.bf16.mxu0 %v1685_v13  ;;  %v1710_v44 = vld [vmem:[%s2084_s1 + $0x20] sm:$0xff]   ;;  %v1713_v47 = vld [vmem:[%s2084_s1 + $0x28] sm:$0xff]   ;;  %v1715_v54 = vld [vmem:[%s2084_s1 + $0x70] sm:$0xff]  }
  0x15   : > { %1610 = vmatprep.subr.bf16.mxu1 %v1753_v1  ;;  %598 = vmatprep.mubr.bf16.mxu0 %v371_v25  ;;  %v1711_v45 = vld [vmem:[%s2084_s1 + $0xa0] sm:$0xff]   ;;  %v311_v48 = vld [vmem:[#allocation2 + $0x8] sm:$0x80]  ;;  %v312_v56 = vld [vmem:[#allocation2 + $0x10] sm:$0x80] }
  0x16   : > { %v310_v50 = vld [vmem:[#allocation2] sm:$0x80]  ;;  %v1714_v51 = vld [vmem:[%s2084_s1 + $0xa8] sm:$0xff]   ;;  %v1716_v61 = vld [vmem:[%s2084_s1 + $0x30] sm:$0xff]  }
  0x17   : > { %1518 = vmatpush3.bf16.msra.mxu0 %v1686_v14  ;;  %v1717_v5 = vld [vmem:[%s2084_s1 + $0xb0] sm:$0xff]   ;;  %v1718_v6 = vld [vmem:[%s2084_s1 + $0x78] sm:$0xff]   ;;  %v1721_v14 = vld [vmem:[%s2084_s1 + $0x1c0] sm:$0xff]  }
  0x18   : > { %1611 = vmatpush3.bf16.msra.mxu1 %v1687_v15  ;;  %1519 = vmatprep.subr.bf16.mxu0 %v1688_v16  ;;  %v1719_v8 = vld [vmem:[%s2084_s1 + $0x38] sm:$0xff]   ;;  %v1722_v16 = vld [vmem:[%s2084_s1 + $0x180] sm:$0xff]   ;;  %v1728_v23 = vld [vmem:[%s2084_s1 + $0x190] sm:$0xff]  }
  0x19   : > { %1612 = vmatprep.subr.bf16.mxu1 %v1753_v1  ;;  %v314_v49 = vld [vmem:[#allocation2 + $0x20] sm:$0x7f]  ;;  %v313_v53 = vld [vmem:[#allocation2 + $0x18] sm:$0x7f]  ;;  %v1729_v24 = vld [vmem:[%s2084_s1 + $0x210] sm:$0xff]  }
  0x1a   : > { %v317_v52 = vpack.c.bf16 %v314_v49, %v311_v48  ;;  %v316_v55 = vpack.c.bf16 %v313_v53, %v310_v50  ;;  %v315_v57 = vld [vmem:[#allocation2 + $0x28] sm:$0x7f]  ;;  %v1720_v9 = vld [vmem:[%s2084_s1 + $0xb8] sm:$0xff]   ;;  %v1740_v49 = vld [vmem:[%s2084_s1 + $0x1b0] sm:$0xff]  }
  0x1b   : > { %1520 = vmatpush3.bf16.msra.mxu0 %v1689_v17  ;;  %v318_v60 = vpack.c.bf16 %v315_v57, %v312_v56  ;;  %v1730_v25 = vld [vmem:[%s2084_s1 + $0x1d8] sm:$0xff]  }
  0x1c   : > { %1613 = vmatpush3.bf16.msra.mxu1 %v1690_v18  ;;  %1521 = vmatprep.subr.bf16.mxu0 %v1691_v19  ;;  %v655_v58 = vshrl.u32 %v317_v52, 16  ;;  %v658_v59 = vshll.u32 %v317_v52, 16  ;;  %v647_v0 = vshrl.u32 %v316_v55, 16  ;;  %v650_v2 = vshll.u32 %v316_v55, 16  ;;  %v1723_v18 = vld [vmem:[%s2084_s1 + $0x200] sm:$0xff]   ;;  %v1724_v19 = vld [vmem:[%s2084_s1 + $0x1c8] sm:$0xff]  }
  0x1d   : > { %1614 = vmatprep.subr.bf16.mxu1 %v1753_v1  ;;  %v663_v3 = vshrl.u32 %v318_v60, 16  ;;  %v666_v4 = vshll.u32 %v318_v60, 16  ;;  %v1731_v26 = vld [vmem:[%s2084_s1 + $0x198] sm:$0xff]  }
  0x1e   : > { %v657_v62 = vrot.slane %v655_v58, 3  ;;  %v660_v63 = vrot.slane %v658_v59, 4  ;;  %v649_v10 = vrot.slane %v647_v0, 3  ;;  %v652_v11 = vrot.slane %v650_v2, 4  ;;  %v1742_v52 = vld [vmem:[%s2084_s1 + $0x1f8] sm:$0xff]  }
  0x1f   : > { %1522 = vmatpush3.bf16.msra.mxu0 %v1692_v20  ;;  %v665_v12 = vrot.slane %v663_v3, 3  ;;  %v668_v13 = vrot.slane %v666_v4, 4  ;;  %v1725_v20 = vld [vmem:[%s2084_s1 + $0x188] sm:$0xff]   ;;  %v1743_v55 = vld [vmem:[%s2084_s1 + $0x1b8] sm:$0xff]  }
  0x20   : > { %1615 = vmatpush3.bf16.msra.mxu1 %v1693_v21  ;;  %1523 = vmatprep.subr.bf16.mxu0 %v1694_v22  ;;  %v661_v7 = vor.u32 %v660_v63, %v657_v62  ;;  %v653_v15 = vor.u32 %v652_v11, %v649_v10  ;;  %v1726_v21 = vld [vmem:[%s2084_s1 + $0x208] sm:$0xff]   ;;  %v1727_v22 = vld [vmem:[%s2084_s1 + $0x1d0] sm:$0xff]   ;;  %v1744_v58 = vld [vmem:[%s2084_s1 + $0x238] sm:$0xff]  }
  0x21   : > { %1616 = vmatprep.subr.bf16.mxu1 %v1753_v1  ;;  %v669_v17 = vor.u32 %v668_v13, %v665_v12 }
  0x23   : > { %1524 = vmatpush3.bf16.msra.mxu0 %v1695_v27  ;;  %v1732_v27 = vld [vmem:[%s2084_s1 + $0x218] sm:$0xff]  }
  0x24   : > { %1617 = vmatpush3.bf16.msra.mxu1 %v1696_v28  ;;  %1540 = vmatprep.subr.bf16.mxu0 %v1697_v29  ;;  %v1733_v28 = vld [vmem:[%s2084_s1 + $0x1e0] sm:$0xff]  }
  0x25   : > { %1622 = vmatprep.subr.bf16.mxu1 %v1753_v1  ;;  %v898_v29 = vld [vmem:[#allocation2 + $0x20] sm:$0xfe] }
  0x26   : > { %599 = vmatmul.mubr.bf16.vlgmr.msra.gmra.mrb[0].mxu0 %v370_v30  ;;  %v901_v30 = vld [vmem:[#allocation2 + $0x38] sm:$0x1] }
  0x27   : > { %1619 = vmatmul.mubr.bf16.vlgmr.msra.gmra.mrb[0].mxu1 %v372_v32  ;;  %1541 = vmatpush3.bf16.msra.mxu0 %v1698_v31  ;;  %v904_v31 = vpack.c.bf16 %v901_v30, %v898_v29  ;;  %v1734_v32 = vld [vmem:[%s2084_s1 + $0x1a0] sm:$0xff]  }
  0x28   : > { %1623 = vmatpush3.bf16.msra.mxu1 %v1699_v33  ;;  %1542 = vmatprep.subr.bf16.mxu0 %v1700_v34  ;;  %v1735_v33 = vld [vmem:[%s2084_s1 + $0x220] sm:$0xff]  }
  0x29   : > { %1624 = vmatprep.subr.bf16.mxu1 %v1753_v1  ;;  %1638 = vmatprep.mubr.msk.bf16.mxu1 %vm1754_vm0, %v1753_v1  ;;  %v963_v34 = vshrl.u32 %v904_v31, 16 }
  0x2a   : > { %849 = vmatprep.mubr.bf16.mxu0 %v661_v7 }
  0x2b   : > { %1543 = vmatpush3.bf16.msra.mxu0 %v1701_v35  ;;  %v965_v35 = vshll.u32 %v904_v31, 16 }
  0x2c   : > { %1625 = vmatpush3.bf16.msra.mxu1 %v1702_v36  ;;  %1544 = vmatprep.subr.bf16.mxu0 %v1703_v37  ;;  %v897_v36 = vld [vmem:[#allocation2 + $0x18] sm:$0xfe]  ;;  %v900_v37 = vld [vmem:[#allocation2 + $0x30] sm:$0x1] }
  0x2d   : > { %1626 = vmatprep.subr.bf16.mxu1 %v1753_v1 }
  0x2f   : > { %1545 = vmatpush3.bf16.msra.mxu0 %v1704_v38  ;;  %v1736_v38 = vld [vmem:[%s2084_s1 + $0x1e8] sm:$0xff]  }
  0x30   : > { %1627 = vmatpush3.bf16.msra.mxu1 %v1705_v39  ;;  %1546 = vmatprep.subr.bf16.mxu0 %v1706_v40  ;;  %v899_v39 = vld [vmem:[#allocation2 + $0x28] sm:$0xfe]  ;;  %v902_v40 = vld [vmem:[#allocation2 + $0x40] sm:$0x1] }
  0x31   : > { %1628 = vmatprep.subr.bf16.mxu1 %v1753_v1 }
  0x33   : > { %1547 = vmatpush3.bf16.msra.mxu0 %v1707_v41  ;;  %v967_v41 = vrot.slane %v965_v35, 1 }
  0x34   : > { %1629 = vmatpush3.bf16.msra.mxu1 %v1708_v42  ;;  %1548 = vmatprep.subr.bf16.mxu0 %v1709_v43  ;;  %v903_v42 = vpack.c.bf16 %v900_v37, %v897_v36  ;;  %v1737_v43 = vld [vmem:[%s2084_s1 + $0x1a8] sm:$0xff]  }
  0x35   : > { %1630 = vmatprep.subr.bf16.mxu1 %v1753_v1 }
  0x36   : > { %v958_v48 = vshll.u32 %v903_v42, 16  ;;  %v956_v53 = vshrl.u32 %v903_v42, 16 }
  0x37   : > { %1549 = vmatpush3.bf16.msra.mxu0 %v1710_v44  ;;  %v968_v44 = vor.u32 %v967_v41, %v963_v34 }
  0x38   : > { %1631 = vmatpush3.bf16.msra.mxu1 %v1711_v45  ;;  %1550 = vmatprep.subr.bf16.mxu0 %v1712_v46  ;;  %v905_v45 = vpack.c.bf16 %v902_v40, %v899_v39  ;;  %v1738_v46 = vld [vmem:[%s2084_s1 + $0x228] sm:$0xff]  }
  0x39   : > { %1632 = vmatprep.subr.bf16.mxu1 %v1753_v1 }
  0x3a   : > { %v972_v50 = vshll.u32 %v905_v45, 16  ;;  %v970_v56 = vshrl.u32 %v905_v45, 16 }
  0x3b   : > { %1551 = vmatpush3.bf16.msra.mxu0 %v1713_v47  ;;  %v1739_v47 = vld [vmem:[%s2084_s1 + $0x1f0] sm:$0xff]  }
  0x3c   : > { %1633 = vmatpush3.bf16.msra.mxu1 %v1714_v51  ;;  %1552 = vmatprep.subr.bf16.mxu0 %v1715_v54  ;;  %v1741_v51 = vld [vmem:[%s2084_s1 + $0x230] sm:$0xff]   ;;  %v960_v54 = vrot.slane %v958_v48, 1  ;;  %v974_v57 = vrot.slane %v972_v50, 1 }
  0x3d   : > { %1634 = vmatprep.subr.bf16.mxu1 %v1753_v1 }
  0x3e   : > { %v961_v59 = vor.u32 %v960_v54, %v956_v53  ;;  %v975_v60 = vor.u32 %v974_v57, %v970_v56 }
  0x3f   : > { %1553 = vmatpush3.bf16.msra.mxu0 %v1716_v61 }
  0x40   : > { %1635 = vmatpush3.bf16.msra.mxu1 %v1717_v5  ;;  %1554 = vmatprep.subr.bf16.mxu0 %v1718_v6 }
  0x41   : > { %1636 = vmatprep.subr.bf16.mxu1 %v1753_v1 }
  0x43   : > { %1555 = vmatpush3.bf16.msra.mxu0 %v1719_v8 }
  0x44   : > { %1637 = vmatpush3.bf16.msra.mxu1 %v1720_v9  ;;  %1571 = vmatprep.subr.bf16.mxu0 %v1721_v14 }
  0x45   : > { %1642 = vmatprep.subr.bf16.mxu1 %v1753_v1 }
  0x46   : > { %850 = vmatmul.mubr.bf16.vlgmr.msra.gmra.mrb[4].mxu0 %v653_v15 }
  0x47   : > { %1639 = vmatmul.mubr.bf16.vlgmr.msra.gmra.mrb[4].mxu1 %v669_v17  ;;  %1572 = vmatpush3.bf16.msra.mxu0 %v1722_v16 }
  0x48   : > { %1643 = vmatpush3.bf16.msra.mxu1 %v1723_v18  ;;  %1573 = vmatprep.subr.bf16.mxu0 %v1724_v19 }
  0x49   : > { %1644 = vmatprep.subr.bf16.mxu1 %v1753_v1  ;;  %1658 = vmatprep.mubr.msk.bf16.mxu1 %vm1754_vm0, %v1753_v1 }
  0x4a   : > { %1155 = vmatprep.mubr.bf16.mxu0 %v968_v44 }
  0x4b   : > { %1574 = vmatpush3.bf16.msra.mxu0 %v1725_v20 }
  0x4c   : > { %1645 = vmatpush3.bf16.msra.mxu1 %v1726_v21  ;;  %1575 = vmatprep.subr.bf16.mxu0 %v1727_v22 }
  0x4d   : > { %1646 = vmatprep.subr.bf16.mxu1 %v1753_v1 }
  0x4f   : > { %1576 = vmatpush3.bf16.msra.mxu0 %v1728_v23 }
  0x50   : > { %1647 = vmatpush3.bf16.msra.mxu1 %v1729_v24  ;;  %1577 = vmatprep.subr.bf16.mxu0 %v1730_v25 }
  0x51   : > { %1648 = vmatprep.subr.bf16.mxu1 %v1753_v1 }
  0x53   : > { %1578 = vmatpush3.bf16.msra.mxu0 %v1731_v26 }
  0x54   : > { %1649 = vmatpush3.bf16.msra.mxu1 %v1732_v27  ;;  %1579 = vmatprep.subr.bf16.mxu0 %v1733_v28  ;;  %v1506_v28 = vld [vmem:[%s2085_s2] ss:$0 sm:$0xff] }
  0x55   : > { %1650 = vmatprep.subr.bf16.mxu1 %v1753_v1 }
  0x57   : > { %1580 = vmatpush3.bf16.msra.mxu0 %v1734_v32 }
  0x58   : > { %1651 = vmatpush3.bf16.msra.mxu1 %v1735_v33  ;;  %1581 = vmatprep.subr.bf16.mxu0 %v1736_v38 }
  0x59   : > { %1652 = vmatprep.subr.bf16.mxu1 %v1753_v1 }
  0x5b   : > { %1582 = vmatpush3.bf16.msra.mxu0 %v1737_v43 }
  0x5c   : > { %1653 = vmatpush3.bf16.msra.mxu1 %v1738_v46  ;;  %1583 = vmatprep.subr.bf16.mxu0 %v1739_v47 }
  0x5d   : > { %1654 = vmatprep.subr.bf16.mxu1 %v1753_v1 }
  0x5f   : > { %1584 = vmatpush3.bf16.msra.mxu0 %v1740_v49 }
  0x60   : > { %1655 = vmatpush3.bf16.msra.mxu1 %v1741_v51  ;;  %1585 = vmatprep.subr.bf16.mxu0 %v1742_v52 }
  0x61   : > { %1656 = vmatprep.subr.bf16.mxu1 %v1753_v1 }
  0x63   : > { %1586 = vmatpush3.bf16.msra.mxu0 %v1743_v55 }
  0x64   : > { %1657 = vmatpush3.bf16.msra.mxu1 %v1744_v58 }
  0x66   : > { %1156 = vmatmul.mubr.bf16.vlgmr.msra.gmra.mrb[8].mxu0 %v961_v59 }
  0x67   : > { %1659 = vmatmul.mubr.bf16.vlgmr.msra.gmra.mrb[8].mxu1 %v975_v60 }
  0xf9   : > { %v1525_v61 = vpop.f32.mrb[0].mxu0 }
  0xfa   : > { %v1526_v62 = vpop.f32.mrb[1].mxu0  ;;  %v640_v63 = vpop.f32.mrb[0].mxu1 }
  0xfb   : > { %v1527_v0 = vadd.f32 %v1526_v62, %v1525_v61  ;;  %v1528_v2 = vpop.f32.mrb[2].mxu0  ;;  %v1620_v3 = vpop.f32.mrb[1].mxu1 }
  0xfc   : > { %v1529_v4 = vpop.f32.mrb[3].mxu0  ;;  %v643_v5 = vpop.f32.mrb[2].mxu1 }
  0xfd   : > { %v641_v6 = vadd.f32 %v1527_v0, %v640_v63  ;;  %v1621_v7 = vpop.f32.mrb[3].mxu1 }
 0x119   : > { %v1556_v8 = vpop.f32.mrb[4].mxu0 }
 0x11a   : > { %v1557_v9 = vpop.f32.mrb[5].mxu0  ;;  %v891_v10 = vpop.f32.mrb[4].mxu1 }
 0x11b   : > { %v1558_v1 = vadd.f32 %v1557_v9, %v1556_v8  ;;  %v1559_v11 = vpop.f32.mrb[6].mxu0  ;;  %v1640_v12 = vpop.f32.mrb[5].mxu1 }
 0x11c   : > { %v1560_v13 = vpop.f32.mrb[7].mxu0  ;;  %v894_v14 = vpop.f32.mrb[6].mxu1 }
 0x11d   : > { %v852_v15 = vadd.f32 %v1558_v1, %v641_v6  ;;  %v1641_v16 = vpop.f32.mrb[7].mxu1 }
 0x11f   : > { %v892_v17 = vadd.f32 %v891_v10, %v852_v15 }
 0x139   : > { %v1587_v18 = vpop.f32.mrb[8].mxu0 }
 0x13a   : > { %v1197_v19 = vpop.f32.mrb[8].mxu1  ;;  %v1588_v20 = vpop.f32.mrb[9].mxu0 }
 0x13b   : > { %v1589_v21 = vadd.f32 %v1588_v20, %v1587_v18  ;;  %v1660_v22 = vpop.f32.mrb[9].mxu1  ;;  %v1590_v23 = vpop.f32.mrb[10].mxu0 }
 0x13c   : > { %v1200_v24 = vpop.f32.mrb[10].mxu1  ;;  %v1591_v25 = vpop.f32.mrb[11].mxu0 }
 0x13d   : > { %v1198_v26 = vadd.f32 %v1589_v21, %v1197_v19  ;;  %v1661_v27 = vpop.f32.mrb[11].mxu1 }
 0x13f   : > { %v1203_v29 = vadd.f32 %v1198_v26, %v892_v17 }
 0x141   : > { %v1211_v30 = vadd.f32 %v1506_v28, %v1203_v29 }
 0x143   : > { %1212 = vst [vmem:[%s287_s16] sm:$0xff] %v1211_v30  ;;  %v1213_v31 = vrot.slane %v1211_v30, 4  ;;  %v1220_v32 = vmul.f32 %v1211_v30, %v1211_v30 }
 0x145   : > { %v1214_v33 = vadd.f32 %v1213_v31, %v1211_v30  ;;  %v1221_v34 = vrot.slane %v1220_v32, 4 }
 0x147   : > { %v1215_v35 = vrot.slane %v1214_v33, 2  ;;  %v1222_v36 = vadd.f32 %v1221_v34, %v1220_v32 }
 0x149   : > { %v1216_v37 = vadd.f32 %v1215_v35, %v1214_v33  ;;  %v1223_v38 = vrot.slane %v1222_v36, 2 }
 0x14b   : > { %v1217_v39 = vrot.slane %v1216_v37, 1  ;;  %v1224_v40 = vadd.f32 %v1223_v38, %v1222_v36 }
 0x14d   : > { %v1218_v41 = vadd.f32 %v1217_v39, %v1216_v37  ;;  %v1225_v42 = vrot.slane %v1224_v40, 1 }
 0x14f   : > { %1219 = vst [vmem:[%s290_s19] sm:$0x1] %v1218_v41  ;;  %v1226_v43 = vadd.f32 %v1225_v42, %v1224_v40 }
 0x151   : > { %1227 = vst [vmem:[%s293_s22] sm:$0x1] %v1226_v43 }
 0x152 PF: > { %s18_s24 = sadd.s32 1, %s1751_s24  }
 0x153   : > { %p15_p4 = scmp.ge.s32.totalorder %s18_s24, 4  }
 0x155   :  { %17 = sbr.rel (!%p15_p4) target bundleno = 1 (0x1), region = 96 }

// kernel: unet_forward.39
= control target key start
LH: loop header
LB: loop body
LE: loop exit
PB: predicated region body
PF: predicated region fallthrough
CT: control target
= control target key end

     0   :  { %s530_s18 = smov 0   ;;  %s587_s0 = inlined_call_operand.vmem [shape: f32[2,16,128], index: 0, kind: input, shape index: {}]   ;;  %s588_s1 = inlined_call_operand.vmem [shape: bf16[128,32], index: 1, kind: input, shape index: {}]   ;;  %s589_s2 = inlined_call_operand.vmem [shape: f32[1,32], index: 2, kind: input, shape index: {}]   ;;  %s590_s3 = inlined_call_operand.vmem [shape: f32[1,128], index: 3, kind: input, shape index: {}]   ;;  %s591_s4 = inlined_call_operand.vmem [shape: f32[1,128], index: 4, kind: input, shape index: {}]   ;;  %s592_s5 = inlined_call_operand.vmem [shape: f32[2,16,32], index: 5, kind: output, shape index: {}]  }
   0x1 LB: > { %s419_s19 = sadd.s32 4294967295, %s496_s18   ;;  %p423_p0 = scmp.ge.s32.totalorder %s496_s18, 1  ;;  %s496_s18 = sphi %s530_s18, %s15_s18  }
   0x2   : > { %p187_p1 = scmp.lt.s32.totalorder %s496_s18, 3 }
   0x4   : > { %p188_p2 = pnand %p423_p0, %p187_p1 }
   0x5   : > { %v482_v0 = vld [vmem:[%s588_s1] sm:$0xff] (!%p188_p2)   ;;  %v498_v1 = vmov (!%p188_p2), 0.0   ;;  %v483_v2 = vld [vmem:[%s588_s1 + $0x8] sm:$0xff] (!%p188_p2)   ;;  %vm499_vm0 = vmmov (!%p188_p2), 0   ;;  %p215_p3 = scmp.lt.s32.totalorder (!%p188_p2), %s419_s19, 1  ;;  %v484_v3 = vld [vmem:[%s588_s1 + $0x10] sm:$0xff] (!%p188_p2)  }
   0x6   : > { %191 = sbr.rel (%p188_p2) target bundleno = 255 (0xff), region = 40  ;;  %452 = vmatprep.subr.bf16.mxu0 (!%p188_p2), %v498_v1  ;;  %468 = vmatprep.mubr.msk.bf16.mxu0 (!%p188_p2), %vm499_vm0, %v498_v1  ;;  %v485_v4 = vld [vmem:[%s588_s1 + $0x18] sm:$0xff] (!%p188_p2)   ;;  %v486_v5 = vld [vmem:[%s588_s1 + $0x20] sm:$0xff] (!%p188_p2)   ;;  %v487_v11 = vld [vmem:[%s588_s1 + $0x28] sm:$0xff] (!%p188_p2)   ;;  %vm361_vm1 = vcmask (!%p188_p2), 261120  }
   0x7   : > { %453 = vmatpush3.bf16.msra.mxu0 (!%p188_p2), %v482_v0  ;;  %v428_v8 = vld [vmem:[%s590_s3] ss:$0 sm:$0xff] (!%p188_p2)  ;;  %v488_v15 = vld [vmem:[%s588_s1 + $0x30] sm:$0xff] (!%p188_p2)   ;;  %v489_v18 = vld [vmem:[%s588_s1 + $0x38] sm:$0xff] (!%p188_p2)  }
   0x8   : > { %454 = vmatprep.subr.bf16.mxu0 (!%p188_p2), %v498_v1  ;;  %v429_v12 = vld [vmem:[%s591_s4] ss:$0 sm:$0xff] (!%p188_p2) }
   0x9   : > { %v430_v20 = vld [vmem:[%s589_s2] ss:$0 sm:$0xff] (!%p188_p2) }
   0xb   : > { %455 = vmatpush3.bf16.msra.mxu0 (!%p188_p2), %v483_v2 }
   0xc   : > { %456 = vmatprep.subr.bf16.mxu0 (!%p188_p2), %v498_v1 }
   0xd   : > { %s594_s19 = smov (!%p215_p3, %s419_s19), 1 }
   0xe   : > { %s441_s26 = sshll.u32 %s594_s19, 4 }
   0xf   : > { %457 = vmatpush3.bf16.msra.mxu0 %v484_v3  ;;  %s219_s6 = scalar_lea.vmem %s587_s0, %s441_s26  ;;  %s224_s25 = scalar_lea.vmem %s592_s5, %s441_s26 }
  0x10   : > { %458 = vmatprep.subr.bf16.mxu0 %v498_v1  ;;  %v226_v6 = vld [vmem:[%s219_s6] sm:$0xff]  ;;  %v227_v7 = vld [vmem:[%s219_s6 + $0x8] sm:$0xff] }
  0x11   : > { %v235_v9 = vmul.f32 %v428_v8, %v226_v6  ;;  %v236_v10 = vmul.f32 %v428_v8, %v227_v7 }
  0x13   : > { %459 = vmatpush3.bf16.msra.mxu0 %v485_v4  ;;  %v244_v13 = vadd.f32 %v429_v12, %v235_v9  ;;  %v245_v14 = vadd.f32 %v429_v12, %v236_v10 }
  0x14   : > { %460 = vmatprep.subr.bf16.mxu0 %v498_v1 }
  0x15   : > { %v246_v16 = vmax.f32 %v244_v13, 0.0  ;;  %v247_v17 = vmax.f32 %v245_v14, 0.0 }
  0x17   : > { %461 = vmatpush3.bf16.msra.mxu0 %v486_v5  ;;  %v248_v19 = vpack.c.bf16 %v247_v17, %v246_v16 }
  0x18   : > { %462 = vmatprep.subr.bf16.mxu0 %v498_v1 }
  0x1b   : > { %463 = vmatpush3.bf16.msra.mxu0 %v487_v11 }
  0x1c   : > { %464 = vmatprep.subr.bf16.mxu0 %v498_v1 }
  0x1f   : > { %465 = vmatpush3.bf16.msra.mxu0 %v488_v15 }
  0x20   : > { %466 = vmatprep.subr.bf16.mxu0 %v498_v1 }
  0x23   : > { %467 = vmatpush3.bf16.msra.mxu0 %v489_v18 }
  0x26   : > { %469 = vmatmul.mubr.bf16.vlgmr.msra.gmra.mrb[0].mxu0 %v248_v19 }
  0xf9   : > { %v354_v21 = vpop.f32.mrb[0].mxu0 }
  0xfa   : > { %v355_v22 = vadd.f32 %v430_v20, %v354_v21  ;;  %v470_v23 = vpop.f32.mrb[1].mxu0 }
  0xfb   : > { %v357_v24 = vpop.f32.mrb[2].mxu0 }
  0xfc   : > { %362 = vst.msk [vmem:[%s224_s25] sm:$0xff] %vm361_vm1, %v355_v22  ;;  %v358_v25 = vadd.f32 %v430_v20, %v357_v24  ;;  %v471_v26 = vpop.f32.mrb[3].mxu0 }
  0xfe   : > { %363 = vst.msk [vmem:[%s224_s25 + $0x8] sm:$0xff] %vm361_vm1, %v358_v25 }
  0xff PF: > { %s15_s18 = sadd.s32 1, %s496_s18  }
 0x100   : > { %p12_p4 = scmp.ge.s32.totalorder %s15_s18, 4  }
 0x102   :  { %14 = sbr.rel (!%p12_p4) target bundleno = 1 (0x1), region = 70 }

// kernel: unet_forward.36
= control target key start
LH: loop header
LB: loop body
LE: loop exit
PB: predicated region body
PF: predicated region fallthrough
CT: control target
= control target key end

     0   :  { %s1878_s24 = smov 0   ;;  %s2187_s0 = inlined_call_operand.vmem [shape: f32[2,16,384], index: 0, kind: input, shape index: {}]   ;;  %s2188_s1 = inlined_call_operand.vmem [shape: bf16[3,384,128], index: 1, kind: input, shape index: {}]   ;;  %s2189_s2 = inlined_call_operand.vmem [shape: f32[1,128], index: 2, kind: input, shape index: {}]   ;;  %s2190_s3 = inlined_call_operand.vmem [shape: f32[1,384], index: 3, kind: input, shape index: {}]   ;;  %s2191_s4 = inlined_call_operand.vmem [shape: f32[1,384], index: 4, kind: input, shape index: {}]   ;;  %s2192_s5 = inlined_call_operand.vmem [shape: f32[2,16,128], index: 5, kind: output, shape index: {0}]   ;;  %s2193_s6 = inlined_call_operand.vmem [shape: f32[2,1,128], index: 6, kind: output, shape index: {1}]   ;;  %s2194_s7 = inlined_call_operand.vmem [shape: f32[2,1,128], index: 7, kind: output, shape index: {2}]  }
   0x1 LB: > { %s1412_s3 = sadd.s32 4294967295, %s1834_s24   ;;  %p1416_p0 = scmp.ge.s32.totalorder %s1834_s24, 1  ;;  %s1834_s24 = sphi %s1878_s24, %s18_s24  }
   0x2   : > { %p242_p1 = scmp.lt.s32.totalorder %s1834_s24, 3 }
   0x4   : > { %p243_p2 = pnand %p1416_p0, %p242_p1 }
   0x5   : > { %v1756_v0 = vld [vmem:[%s2188_s1 + $0x100] sm:$0xff] (!%p243_p2)   ;;  %v1836_v1 = vmov (!%p243_p2), 0.0   ;;  %v1759_v4 = vld [vmem:[%s2188_s1 + $0x108] sm:$0xff] (!%p243_p2)   ;;  %vm1837_vm0 = vmmov (!%p243_p2), 0   ;;  %v1762_v7 = vld [vmem:[%s2188_s1 + $0x110] sm:$0xff] (!%p243_p2)   ;;  %p280_p3 = scmp.lt.s32.totalorder (!%p243_p2), %s1412_s3, 1 }
   0x6   : > { %246 = sbr.rel (%p243_p2) target bundleno = 342 (0x156), region = 40  ;;  %1685 = vmatprep.subr.bf16.mxu1 (!%p243_p2), %v1836_v1  ;;  %303 = vst [vmem:[#allocation2] sm:$0xff] (!%p243_p2), %v1836_v1  ;;  %304 = vst [vmem:[#allocation2 + $0x8] sm:$0xff] (!%p243_p2), %v1836_v1  ;;  %v1757_v2 = vld [vmem:[%s2188_s1 + $0xc0] sm:$0xff] (!%p243_p2)   ;;  %1592 = vmatprep.subr.bf16.mxu0 (!%p243_p2), %v1756_v0  ;;  %v1760_v5 = vld [vmem:[%s2188_s1 + $0xc8] sm:$0xff] (!%p243_p2)  }
   0x7   : > { %305 = vst [vmem:[#allocation2 + $0x10] sm:$0xff] (!%p243_p2), %v1836_v1  ;;  %312 = vst [vmem:[#allocation2 + $0x48] sm:$0xff] (!%p243_p2), %v1836_v1  ;;  %v1758_v3 = vld [vmem:[%s2188_s1 + $0x140] sm:$0xff] (!%p243_p2)   ;;  %1593 = vmatpush3.bf16.msra.mxu0 (!%p243_p2), %v1757_v2  ;;  %1701 = vmatprep.mubr.msk.bf16.mxu1 (!%p243_p2), %vm1837_vm0, %v1836_v1  ;;  %v1761_v6 = vld [vmem:[%s2188_s1 + $0x148] sm:$0xff] (!%p243_p2)   ;;  %vm665_vm1 = vsmask.f32 (!%p243_p2), 4352 }
   0x8   : > { %313 = vst [vmem:[#allocation2 + $0x50] sm:$0xff] (!%p243_p2), %v1836_v1  ;;  %314 = vst [vmem:[#allocation2 + $0x58] sm:$0xff] (!%p243_p2), %v1836_v1  ;;  %1686 = vmatpush3.bf16.msra.mxu1 (!%p243_p2), %v1758_v3  ;;  %1594 = vmatprep.subr.bf16.mxu0 (!%p243_p2), %v1759_v4  ;;  %v1763_v8 = vld [vmem:[%s2188_s1 + $0xd0] sm:$0xff] (!%p243_p2)   ;;  %v1765_v10 = vld [vmem:[%s2188_s1 + $0x118] sm:$0xff] (!%p243_p2)   ;;  %vm1010_vm2 = vsmask.f32 (!%p243_p2), 7424 }
   0x9   : > { %1687 = vmatprep.subr.bf16.mxu1 (!%p243_p2), %v1836_v1  ;;  %v1764_v9 = vld [vmem:[%s2188_s1 + $0x150] sm:$0xff] (!%p243_p2)   ;;  %v1766_v11 = vld [vmem:[%s2188_s1 + $0xd8] sm:$0xff] (!%p243_p2)   ;;  %v1768_v13 = vld [vmem:[%s2188_s1 + $0x120] sm:$0xff] (!%p243_p2)  }
   0xa   : > { %v1767_v12 = vld [vmem:[%s2188_s1 + $0x158] sm:$0xff] (!%p243_p2)   ;;  %v1769_v14 = vld [vmem:[%s2188_s1 + $0xe0] sm:$0xff] (!%p243_p2)   ;;  %v1771_v16 = vld [vmem:[%s2188_s1 + $0x128] sm:$0xff] (!%p243_p2)  }
   0xb   : > { %1595 = vmatpush3.bf16.msra.mxu0 (!%p243_p2), %v1760_v5  ;;  %v1770_v15 = vld [vmem:[%s2188_s1 + $0x160] sm:$0xff] (!%p243_p2)   ;;  %v1772_v17 = vld [vmem:[%s2188_s1 + $0xe8] sm:$0xff] (!%p243_p2)   ;;  %v1774_v19 = vld [vmem:[%s2188_s1 + $0x130] sm:$0xff] (!%p243_p2)  }
   0xc   : > { %1688 = vmatpush3.bf16.msra.mxu1 (!%p243_p2), %v1761_v6  ;;  %1596 = vmatprep.subr.bf16.mxu0 (!%p243_p2), %v1762_v7  ;;  %v1773_v18 = vld [vmem:[%s2188_s1 + $0x168] sm:$0xff] (!%p243_p2)   ;;  %v1775_v20 = vld [vmem:[%s2188_s1 + $0xf0] sm:$0xff] (!%p243_p2)   ;;  %v1777_v22 = vld [vmem:[%s2188_s1 + $0x138] sm:$0xff] (!%p243_p2)  }
   0xd   : > { %1689 = vmatprep.subr.bf16.mxu1 %v1836_v1  ;;  %s2196_s3 = smov (!%p280_p3, %s1412_s3), 1  ;;  %v1776_v21 = vld [vmem:[%s2188_s1 + $0x170] sm:$0xff]   ;;  %v1778_v28 = vld [vmem:[%s2188_s1 + $0xf8] sm:$0xff]   ;;  %v1780_v32 = vld [vmem:[%s2188_s1 + $0x40] sm:$0xff]  }
   0xe   : > { %s1745_s10 = smul.u32 48, %s2196_s3  ;;  %v1779_v29 = vld [vmem:[%s2188_s1 + $0x178] sm:$0xff]   ;;  %v1781_v34 = vld [vmem:[%s2188_s1] sm:$0xff]   ;;  %v1783_v37 = vld [vmem:[%s2188_s1 + $0x48] sm:$0xff]   ;;  %s1591_s11 = sshll.u32 %s2196_s3, 4 }
   0xf   : > { %1597 = vmatpush3.bf16.msra.mxu0 %v1763_v8  ;;  %v1782_v36 = vld [vmem:[%s2188_s1 + $0x80] sm:$0xff]   ;;  %v322_v38 = vld [vmem:[#allocation2 + $0x8] sm:$0x80]  ;;  %v1786_v41 = vld [vmem:[%s2188_s1 + $0x50] sm:$0xff]   ;;  %s289_s16 = scalar_lea.vmem %s2192_s5, %s1591_s11  ;;  %s295_s22 = scalar_lea.vmem %s2194_s7, %s2196_s3 }
  0x10   : > { %1690 = vmatpush3.bf16.msra.mxu1 %v1764_v9  ;;  %1598 = vmatprep.subr.bf16.mxu0 %v1765_v10  ;;  %s284_s19 = scalar_lea.vmem %s2187_s0, %s1745_s10  ;;  %v1784_v39 = vld [vmem:[%s2188_s1 + $0x8] sm:$0xff]   ;;  %v321_v42 = vld [vmem:[#allocation2] sm:$0x80]  ;;  %v1787_v43 = vld [vmem:[%s2188_s1 + $0x10] sm:$0xff]  }
  0x11   : > { %1691 = vmatprep.subr.bf16.mxu1 %v1836_v1  ;;  %v298_v23 = vld [vmem:[%s284_s19 + $0x8] sm:$0xff]  ;;  %v1976_v24 = vld [vmem:[%s284_s19 + $0x20] sm:$0xff]  ;;  %v1981_v27 = vld [vmem:[%s284_s19 + $0x18] sm:$0xff] }
  0x12   : > { %316 = vst [vmem:[#allocation2 + $0x20] sm:$0xff] %v298_v23  ;;  %319 = vst [vmem:[#allocation2 + $0x38] sm:$0xff] %v1976_v24  ;;  %v388_v25 = vpack.c.bf16 %v1976_v24, %v298_v23  ;;  %v297_v26 = vld [vmem:[%s284_s19] sm:$0xff]  ;;  %v299_v30 = vld [vmem:[%s284_s19 + $0x10] sm:$0xff]  ;;  %v331_v44 = vpack.c.bf16 %v298_v23, %v322_v38 }
  0x13   : > { %1599 = vmatpush3.bf16.msra.mxu0 %v1766_v11  ;;  %315 = vst [vmem:[#allocation2 + $0x18] sm:$0xff] %v297_v26  ;;  %318 = vst [vmem:[#allocation2 + $0x30] sm:$0xff] %v1981_v27  ;;  %v1990_v31 = vld [vmem:[%s284_s19 + $0x28] sm:$0xff]  ;;  %v387_v33 = vpack.c.bf16 %v1981_v27, %v297_v26  ;;  %v1788_v45 = vld [vmem:[%s2188_s1 + $0x90] sm:$0xff]   ;;  %v330_v47 = vpack.c.bf16 %v297_v26, %v321_v42  ;;  %s292_s19 = scalar_lea.vmem %s2193_s6, %s2196_s3 }
  0x14   : > { %1692 = vmatpush3.bf16.msra.mxu1 %v1767_v12  ;;  %1600 = vmatprep.subr.bf16.mxu0 %v1768_v13  ;;  %317 = vst [vmem:[#allocation2 + $0x28] sm:$0xff] %v299_v30  ;;  %320 = vst [vmem:[#allocation2 + $0x40] sm:$0xff] %v1990_v31  ;;  %v389_v35 = vpack.c.bf16 %v1990_v31, %v299_v30  ;;  %v1785_v40 = vld [vmem:[%s2188_s1 + $0x88] sm:$0xff]   ;;  %v1789_v46 = vld [vmem:[%s2188_s1 + $0x58] sm:$0xff]   ;;  %v684_v50 = vshrl.u32 %v331_v44, 16  ;;  %v687_v54 = vshll.u32 %v331_v44, 16 }
  0x15   : > { %1693 = vmatprep.subr.bf16.mxu1 %v1836_v1  ;;  %615 = vmatprep.mubr.bf16.mxu0 %v388_v25  ;;  %v323_v48 = vld [vmem:[#allocation2 + $0x10] sm:$0x80]  ;;  %v1790_v49 = vld [vmem:[%s2188_s1 + $0x18] sm:$0xff]   ;;  %v1792_v53 = vld [vmem:[%s2188_s1 + $0x60] sm:$0xff]   ;;  %v667_v55 = vshrl.u32 %v330_v47, 16  ;;  %v670_v56 = vshll.u32 %v330_v47, 16 }
  0x16   : > { %v1791_v51 = vld [vmem:[%s2188_s1 + $0x98] sm:$0xff]   ;;  %v332_v52 = vpack.c.bf16 %v299_v30, %v323_v48  ;;  %v1793_v57 = vld [vmem:[%s2188_s1 + $0x20] sm:$0xff]   ;;  %v686_v58 = vrot.slane %v684_v50, 3  ;;  %v1795_v61 = vld [vmem:[%s2188_s1 + $0x68] sm:$0xff]   ;;  %v689_v62 = vrot.slane %v687_v54, 4 }
  0x17   : > { %1601 = vmatpush3.bf16.msra.mxu0 %v1769_v14  ;;  %v1794_v59 = vld [vmem:[%s2188_s1 + $0xa0] sm:$0xff]   ;;  %v669_v0 = vrot.slane %v667_v55, 3  ;;  %v1796_v2 = vld [vmem:[%s2188_s1 + $0x28] sm:$0xff]   ;;  %v672_v3 = vrot.slane %v670_v56, 4  ;;  %v1798_v6 = vld [vmem:[%s2188_s1 + $0x70] sm:$0xff]  }
  0x18   : > { %1694 = vmatpush3.bf16.msra.mxu1 %v1770_v15  ;;  %1602 = vmatprep.subr.bf16.mxu0 %v1771_v16  ;;  %v701_v60 = vshrl.u32 %v332_v52, 16  ;;  %v704_v63 = vshll.u32 %v332_v52, 16  ;;  %v1797_v4 = vld [vmem:[%s2188_s1 + $0xa8] sm:$0xff]   ;;  %v1799_v10 = vld [vmem:[%s2188_s1 + $0x30] sm:$0xff]   ;;  %v1801_v15 = vld [vmem:[%s2188_s1 + $0x78] sm:$0xff]  }
  0x19   : > { %1695 = vmatprep.subr.bf16.mxu1 %v1836_v1  ;;  %v328_v7 = vld [vmem:[#allocation2 + $0x38] sm:$0x7f]  ;;  %v1800_v14 = vld [vmem:[%s2188_s1 + $0xb0] sm:$0xff]   ;;  %v1805_v42 = vld [vmem:[%s2188_s1 + $0x180] sm:$0xff]  }
  0x1a   : > { %v703_v5 = vrot.slane %v701_v60, 3  ;;  %v327_v8 = vld [vmem:[#allocation2 + $0x30] sm:$0x7f]  ;;  %v706_v9 = vrot.slane %v704_v63, 4  ;;  %v334_v11 = vpack.c.bf16 %v328_v7, %v328_v7  ;;  %v1806_v44 = vld [vmem:[%s2188_s1 + $0x200] sm:$0xff]   ;;  %v1808_v47 = vld [vmem:[%s2188_s1 + $0x188] sm:$0xff]  }
  0x1b   : > { %1603 = vmatpush3.bf16.msra.mxu0 %v1772_v17  ;;  %v333_v12 = vpack.c.bf16 %v327_v8, %v327_v8  ;;  %v329_v13 = vld [vmem:[#allocation2 + $0x40] sm:$0x7f]  ;;  %v1809_v48 = vld [vmem:[%s2188_s1 + $0x208] sm:$0xff]   ;;  %v1811_v50 = vld [vmem:[%s2188_s1 + $0x190] sm:$0xff]  }
  0x1c   : > { %1696 = vmatpush3.bf16.msra.mxu1 %v1773_v18  ;;  %1604 = vmatprep.subr.bf16.mxu0 %v1774_v19  ;;  %v692_v16 = vshrl.u32 %v334_v11, 16  ;;  %v695_v17 = vshll.u32 %v334_v11, 16  ;;  %v1813_v52 = vld [vmem:[%s2188_s1 + $0x1d8] sm:$0xff]   ;;  %v1816_v55 = vld [vmem:[%s2188_s1 + $0x1e0] sm:$0xff]   ;;  %v1820_v8 = vld [vmem:[%s2188_s1 + $0x1a8] sm:$0xff]  }
  0x1d   : > { %1697 = vmatprep.subr.bf16.mxu1 %v1836_v1  ;;  %v675_v18 = vshrl.u32 %v333_v12, 16  ;;  %v678_v19 = vshll.u32 %v333_v12, 16  ;;  %v1815_v54 = vld [vmem:[%s2188_s1 + $0x218] sm:$0xff]   ;;  %v947_v56 = vld [vmem:[#allocation2 + $0x20] sm:$0xfe] }
  0x1e   : > { %v697_v23 = vrot.slane %v695_v17, 4  ;;  %v1818_v63 = vld [vmem:[%s2188_s1 + $0x220] sm:$0xff]   ;;  %v954_v7 = vld [vmem:[#allocation2 + $0x58] sm:$0x1] }
  0x1f   : > { %1605 = vmatpush3.bf16.msra.mxu0 %v1775_v20  ;;  %v690_v20 = vor.u32 %v689_v62, %v686_v58  ;;  %v677_v25 = vrot.slane %v675_v18, 3  ;;  %v680_v26 = vrot.slane %v678_v19, 4  ;;  %v1817_v58 = vld [vmem:[%s2188_s1 + $0x1a0] sm:$0xff]   ;;  %v948_v62 = vld [vmem:[#allocation2 + $0x28] sm:$0xfe] }
  0x20   : > { %1698 = vmatpush3.bf16.msra.mxu1 %v1776_v21  ;;  %1606 = vmatprep.subr.bf16.mxu0 %v1777_v22  ;;  %v335_v21 = vpack.c.bf16 %v329_v13, %v329_v13  ;;  %v694_v22 = vrot.slane %v692_v16, 3  ;;  %v960_v13 = vpack.c.bf16 %v954_v7, %v954_v7  ;;  %v1823_v16 = vld [vmem:[%s2188_s1 + $0x1b0] sm:$0xff]  }
  0x21   : > { %1699 = vmatprep.subr.bf16.mxu1 %v1836_v1 }
  0x22   : > { %v712_v30 = vshll.u32 %v335_v21, 16 }
  0x23   : > { %1607 = vmatpush3.bf16.msra.mxu0 %v1778_v28  ;;  %v1802_v28 = vld [vmem:[%s2188_s1 + $0x38] sm:$0xff]  }
  0x24   : > { %1700 = vmatpush3.bf16.msra.mxu1 %v1779_v29  ;;  %1623 = vmatprep.subr.bf16.mxu0 %v1780_v32  ;;  %v709_v29 = vshrl.u32 %v335_v21, 16  ;;  %v698_v32 = vor.u32 %v697_v23, %v694_v22  ;;  %v1824_v21 = vld [vmem:[%s2188_s1 + $0x230] sm:$0xff]   ;;  %v1825_v22 = vld [vmem:[%s2188_s1 + $0x1f8] sm:$0xff]  }
  0x25   : > { %1705 = vmatprep.subr.bf16.mxu1 %v1836_v1 }
  0x26   : > { %616 = vmatmul.mubr.bf16.vlgmr.msra.gmra.mrb[0].mxu0 %v387_v33  ;;  %v673_v33 = vor.u32 %v672_v3, %v669_v0  ;;  %v711_v38 = vrot.slane %v709_v29, 3  ;;  %v1819_v0 = vld [vmem:[%s2188_s1 + $0x1e8] sm:$0xff]  }
  0x27   : > { %1702 = vmatmul.mubr.bf16.vlgmr.msra.gmra.mrb[0].mxu1 %v389_v35  ;;  %1624 = vmatpush3.bf16.msra.mxu0 %v1781_v34  ;;  %v681_v34 = vor.u32 %v680_v26, %v677_v25  ;;  %v1803_v35 = vld [vmem:[%s2188_s1 + $0xb8] sm:$0xff]   ;;  %v1043_v26 = vshll.u32 %v960_v13, 16 }
  0x28   : > { %1706 = vmatpush3.bf16.msra.mxu1 %v1782_v36  ;;  %1625 = vmatprep.subr.bf16.mxu0 %v1783_v37  ;;  %v1804_v36 = vld [vmem:[%s2188_s1 + $0x1c0] sm:$0xff]   ;;  %v707_v37 = vor.u32 %v706_v9, %v703_v5 }
  0x29   : > { %1707 = vmatprep.subr.bf16.mxu1 %v1836_v1  ;;  %1721 = vmatprep.mubr.msk.bf16.mxu1 %vm1837_vm0, %v1836_v1 }
  0x2b   : > { %1626 = vmatpush3.bf16.msra.mxu0 %v1784_v39  ;;  %v714_v39 = vrot.slane %v712_v30, 4 }
  0x2c   : > { %1708 = vmatpush3.bf16.msra.mxu1 %v1785_v40  ;;  %1627 = vmatprep.subr.bf16.mxu0 %v1786_v41  ;;  %v699_v40 = vsel %vm665_vm1, %v690_v20, %v698_v32  ;;  %v1827_v32 = vld [vmem:[%s2188_s1 + $0x238] sm:$0xff]  }
  0x2d   : > { %1709 = vmatprep.subr.bf16.mxu1 %v1836_v1  ;;  %896 = vmatprep.mubr.bf16.mxu0 %v699_v40  ;;  %v715_v41 = vor.u32 %v714_v39, %v711_v38 }
  0x2f   : > { %1628 = vmatpush3.bf16.msra.mxu0 %v1787_v43  ;;  %v682_v43 = vsel %vm665_vm1, %v673_v33, %v681_v34  ;;  %v1045_v34 = vrot.slane %v1043_v26, 1 }
  0x30   : > { %1710 = vmatpush3.bf16.msra.mxu1 %v1788_v45  ;;  %1629 = vmatprep.subr.bf16.mxu0 %v1789_v46  ;;  %v716_v45 = vsel %vm665_vm1, %v707_v37, %v715_v41  ;;  %v1807_v46 = vld [vmem:[%s2188_s1 + $0x1c8] sm:$0xff]  }
  0x31   : > { %1711 = vmatprep.subr.bf16.mxu1 %v1836_v1 }
  0x33   : > { %1630 = vmatpush3.bf16.msra.mxu0 %v1790_v49  ;;  %v1810_v49 = vld [vmem:[%s2188_s1 + $0x1d0] sm:$0xff]  }
  0x34   : > { %1712 = vmatpush3.bf16.msra.mxu1 %v1791_v51  ;;  %1631 = vmatprep.subr.bf16.mxu0 %v1792_v53  ;;  %v1812_v51 = vld [vmem:[%s2188_s1 + $0x210] sm:$0xff]   ;;  %v1814_v53 = vld [vmem:[%s2188_s1 + $0x198] sm:$0xff]  }
  0x35   : > { %1713 = vmatprep.subr.bf16.mxu1 %v1836_v1 }
  0x37   : > { %1632 = vmatpush3.bf16.msra.mxu0 %v1793_v57  ;;  %v953_v57 = vld [vmem:[#allocation2 + $0x50] sm:$0x1] }
  0x38   : > { %1714 = vmatpush3.bf16.msra.mxu1 %v1794_v59  ;;  %1633 = vmatprep.subr.bf16.mxu0 %v1795_v61  ;;  %v956_v59 = vpack.c.bf16 %v1976_v24, %v947_v56  ;;  %v959_v60 = vpack.c.bf16 %v953_v57, %v953_v57  ;;  %v946_v61 = vld [vmem:[#allocation2 + $0x18] sm:$0xfe] }
  0x39   : > { %1715 = vmatprep.subr.bf16.mxu1 %v1836_v1  ;;  %v955_v3 = vpack.c.bf16 %v1981_v27, %v946_v61  ;;  %v1821_v27 = vld [vmem:[%s2188_s1 + $0x228] sm:$0xff]  }
  0x3a   : > { %v1024_v24 = vshrl.u32 %v956_v59, 16  ;;  %v1026_v5 = vshll.u32 %v956_v59, 16 }
  0x3b   : > { %1634 = vmatpush3.bf16.msra.mxu0 %v1796_v2  ;;  %v952_v2 = vld [vmem:[#allocation2 + $0x48] sm:$0x1]  ;;  %v1014_v12 = vshll.u32 %v955_v3, 16  ;;  %v1012_v18 = vshrl.u32 %v955_v3, 16 }
  0x3c   : > { %1716 = vmatpush3.bf16.msra.mxu1 %v1797_v4  ;;  %1635 = vmatprep.subr.bf16.mxu0 %v1798_v6  ;;  %v957_v4 = vpack.c.bf16 %v1990_v31, %v948_v62  ;;  %v1031_v6 = vshll.u32 %v959_v60, 16  ;;  %v1028_v9 = vrot.slane %v1026_v5, 1  ;;  %v958_v11 = vpack.c.bf16 %v952_v2, %v952_v2  ;;  %v1822_v31 = vld [vmem:[%s2188_s1 + $0x1f0] sm:$0xff]  }
  0x3d   : > { %1717 = vmatprep.subr.bf16.mxu1 %v1836_v1  ;;  %v1016_v19 = vrot.slane %v1014_v12, 1 }
  0x3e   : > { %v1019_v20 = vshll.u32 %v958_v11, 16  ;;  %v1036_v23 = vshrl.u32 %v957_v4, 16 }
  0x3f   : > { %1636 = vmatpush3.bf16.msra.mxu0 %v1799_v10  ;;  %v1033_v10 = vrot.slane %v1031_v6, 1  ;;  %v1017_v29 = vor.u32 %v1016_v19, %v1012_v18 }
  0x40   : > { %1718 = vmatpush3.bf16.msra.mxu1 %v1800_v14  ;;  %1637 = vmatprep.subr.bf16.mxu0 %v1801_v15  ;;  %v1038_v14 = vshll.u32 %v957_v4, 16  ;;  %v1029_v15 = vor.u32 %v1028_v9, %v1024_v24  ;;  %v1021_v30 = vrot.slane %v1019_v20, 1  ;;  %v1588_v9 = vld [vmem:[%s2189_s2] ss:$0 sm:$0xff] }
  0x41   : > { %1719 = vmatprep.subr.bf16.mxu1 %v1836_v1 }
  0x42   : > { %v1034_v17 = vsel %vm1010_vm2, %v1029_v15, %v1033_v10  ;;  %v1040_v25 = vrot.slane %v1038_v14, 1 }
  0x43   : > { %1638 = vmatpush3.bf16.msra.mxu0 %v1802_v28  ;;  %v1826_v28 = vld [vmem:[%s2188_s1 + $0x1b8] sm:$0xff]  }
  0x44   : > { %1720 = vmatpush3.bf16.msra.mxu1 %v1803_v35  ;;  %1654 = vmatprep.subr.bf16.mxu0 %v1804_v36  ;;  %v1041_v33 = vor.u32 %v1040_v25, %v1036_v23  ;;  %v1022_v35 = vsel %vm1010_vm2, %v1017_v29, %v1021_v30 }
  0x45   : > { %1725 = vmatprep.subr.bf16.mxu1 %v1836_v1 }
  0x46   : > { %897 = vmatmul.mubr.bf16.vlgmr.msra.gmra.mrb[4].mxu0 %v682_v43  ;;  %v1046_v36 = vsel %vm1010_vm2, %v1041_v33, %v1045_v34 }
  0x47   : > { %1722 = vmatmul.mubr.bf16.vlgmr.msra.gmra.mrb[4].mxu1 %v716_v45  ;;  %1655 = vmatpush3.bf16.msra.mxu0 %v1805_v42 }
  0x48   : > { %1726 = vmatpush3.bf16.msra.mxu1 %v1806_v44  ;;  %1656 = vmatprep.subr.bf16.mxu0 %v1807_v46 }
  0x49   : > { %1727 = vmatprep.subr.bf16.mxu1 %v1836_v1  ;;  %1741 = vmatprep.mubr.msk.bf16.mxu1 %vm1837_vm0, %v1836_v1 }
  0x4a   : > { %1226 = vmatprep.mubr.bf16.mxu0 %v1034_v17 }
  0x4b   : > { %1657 = vmatpush3.bf16.msra.mxu0 %v1808_v47 }
  0x4c   : > { %1728 = vmatpush3.bf16.msra.mxu1 %v1809_v48  ;;  %1658 = vmatprep.subr.bf16.mxu0 %v1810_v49 }
  0x4d   : > { %1729 = vmatprep.subr.bf16.mxu1 %v1836_v1 }
  0x4f   : > { %1659 = vmatpush3.bf16.msra.mxu0 %v1811_v50 }
  0x50   : > { %1730 = vmatpush3.bf16.msra.mxu1 %v1812_v51  ;;  %1660 = vmatprep.subr.bf16.mxu0 %v1813_v52 }
  0x51   : > { %1731 = vmatprep.subr.bf16.mxu1 %v1836_v1 }
  0x53   : > { %1661 = vmatpush3.bf16.msra.mxu0 %v1814_v53 }
  0x54   : > { %1732 = vmatpush3.bf16.msra.mxu1 %v1815_v54  ;;  %1662 = vmatprep.subr.bf16.mxu0 %v1816_v55 }
  0x55   : > { %1733 = vmatprep.subr.bf16.mxu1 %v1836_v1 }
  0x57   : > { %1663 = vmatpush3.bf16.msra.mxu0 %v1817_v58 }
  0x58   : > { %1734 = vmatpush3.bf16.msra.mxu1 %v1818_v63  ;;  %1664 = vmatprep.subr.bf16.mxu0 %v1819_v0 }
  0x59   : > { %1735 = vmatprep.subr.bf16.mxu1 %v1836_v1 }
  0x5b   : > { %1665 = vmatpush3.bf16.msra.mxu0 %v1820_v8 }
  0x5c   : > { %1736 = vmatpush3.bf16.msra.mxu1 %v1821_v27  ;;  %1666 = vmatprep.subr.bf16.mxu0 %v1822_v31 }
  0x5d   : > { %1737 = vmatprep.subr.bf16.mxu1 %v1836_v1 }
  0x5f   : > { %1667 = vmatpush3.bf16.msra.mxu0 %v1823_v16 }
  0x60   : > { %1738 = vmatpush3.bf16.msra.mxu1 %v1824_v21  ;;  %1668 = vmatprep.subr.bf16.mxu0 %v1825_v22 }
  0x61   : > { %1739 = vmatprep.subr.bf16.mxu1 %v1836_v1 }
  0x63   : > { %1669 = vmatpush3.bf16.msra.mxu0 %v1826_v28 }
  0x64   : > { %1740 = vmatpush3.bf16.msra.mxu1 %v1827_v32 }
  0x66   : > { %1227 = vmatmul.mubr.bf16.vlgmr.msra.gmra.mrb[8].mxu0 %v1022_v35 }
  0x67   : > { %1742 = vmatmul.mubr.bf16.vlgmr.msra.gmra.mrb[8].mxu1 %v1046_v36 }
  0xf9   : > { %v1608_v37 = vpop.f32.mrb[0].mxu0 }
  0xfa   : > { %v1609_v38 = vpop.f32.mrb[1].mxu0  ;;  %v658_v39 = vpop.f32.mrb[0].mxu1 }
  0xfb   : > { %v1610_v40 = vadd.f32 %v1609_v38, %v1608_v37  ;;  %v1611_v41 = vpop.f32.mrb[2].mxu0  ;;  %v1703_v42 = vpop.f32.mrb[1].mxu1 }
  0xfc   : > { %v1612_v43 = vpop.f32.mrb[3].mxu0  ;;  %v661_v44 = vpop.f32.mrb[2].mxu1 }
  0xfd   : > { %v659_v45 = vadd.f32 %v1610_v40, %v658_v39  ;;  %v1613_v46 = vadd.f32 %v1612_v43, %v1611_v41  ;;  %v1704_v47 = vpop.f32.mrb[3].mxu1 }
  0xff   : > { %v662_v1 = vadd.f32 %v1613_v46, %v661_v44 }
 0x119   : > { %v1639_v48 = vpop.f32.mrb[4].mxu0 }
 0x11a   : > { %v1640_v49 = vpop.f32.mrb[5].mxu0  ;;  %v939_v50 = vpop.f32.mrb[4].mxu1 }
 0x11b   : > { %v1641_v51 = vadd.f32 %v1640_v49, %v1639_v48  ;;  %v1642_v52 = vpop.f32.mrb[6].mxu0  ;;  %v1723_v53 = vpop.f32.mrb[5].mxu1 }
 0x11c   : > { %v1643_v54 = vpop.f32.mrb[7].mxu0  ;;  %v942_v55 = vpop.f32.mrb[6].mxu1 }
 0x11d   : > { %v899_v56 = vadd.f32 %v1641_v51, %v659_v45  ;;  %v1644_v57 = vadd.f32 %v1643_v54, %v1642_v52  ;;  %v1724_v58 = vpop.f32.mrb[7].mxu1 }
 0x11f   : > { %v940_v59 = vadd.f32 %v939_v50, %v899_v56  ;;  %v902_v60 = vadd.f32 %v1644_v57, %v662_v1 }
 0x121   : > { %v943_v61 = vadd.f32 %v942_v55, %v902_v60 }
 0x139   : > { %v1670_v62 = vpop.f32.mrb[8].mxu0 }
 0x13a   : > { %v1269_v63 = vpop.f32.mrb[8].mxu1  ;;  %v1671_v0 = vpop.f32.mrb[9].mxu0 }
 0x13b   : > { %v1672_v2 = vadd.f32 %v1671_v0, %v1670_v62  ;;  %v1743_v3 = vpop.f32.mrb[9].mxu1  ;;  %v1673_v4 = vpop.f32.mrb[10].mxu0 }
 0x13c   : > { %v1272_v24 = vpop.f32.mrb[10].mxu1  ;;  %v1674_v5 = vpop.f32.mrb[11].mxu0 }
 0x13d   : > { %v1270_v6 = vadd.f32 %v1672_v2, %v1269_v63  ;;  %v1675_v7 = vadd.f32 %v1674_v5, %v1673_v4  ;;  %v1744_v8 = vpop.f32.mrb[11].mxu1 }
 0x13f   : > { %v1276_v10 = vadd.f32 %v1270_v6, %v940_v59  ;;  %v1273_v11 = vadd.f32 %v1675_v7, %v1272_v24 }
 0x141   : > { %v1285_v12 = vadd.f32 %v1588_v9, %v1276_v10  ;;  %v1277_v27 = vadd.f32 %v1273_v11, %v943_v61 }
 0x143   : > { %1287 = vst [vmem:[%s289_s16] sm:$0xff] %v1285_v12  ;;  %v1286_v31 = vadd.f32 %v1588_v9, %v1277_v27  ;;  %v1297_v13 = vmul.f32 %v1285_v12, %v1285_v12 }
 0x145   : > { %1288 = vst [vmem:[%s289_s16 + $0x8] sm:$0xff] %v1286_v31  ;;  %v1289_v14 = vadd.f32 %v1286_v31, %v1285_v12  ;;  %v1298_v15 = vmul.f32 %v1286_v31, %v1286_v31 }
 0x147   : > { %v1290_v16 = vrot.slane %v1289_v14, 4  ;;  %v1299_v17 = vadd.f32 %v1298_v15, %v1297_v13 }
 0x149   : > { %v1291_v18 = vadd.f32 %v1290_v16, %v1289_v14  ;;  %v1300_v19 = vrot.slane %v1299_v17, 4 }
 0x14b   : > { %v1292_v20 = vrot.slane %v1291_v18, 2  ;;  %v1301_v21 = vadd.f32 %v1300_v19, %v1299_v17 }
 0x14d   : > { %v1293_v22 = vadd.f32 %v1292_v20, %v1291_v18  ;;  %v1302_v23 = vrot.slane %v1301_v21, 2 }
 0x14f   : > { %v1294_v25 = vrot.slane %v1293_v22, 1  ;;  %v1303_v26 = vadd.f32 %v1302_v23, %v1301_v21 }
 0x151   : > { %v1295_v28 = vadd.f32 %v1294_v25, %v1293_v22  ;;  %v1304_v29 = vrot.slane %v1303_v26, 1 }
 0x153   : > { %1296 = vst [vmem:[%s292_s19] sm:$0x1] %v1295_v28  ;;  %v1305_v30 = vadd.f32 %v1304_v29, %v1303_v26 }
 0x155   : > { %1306 = vst [vmem:[%s295_s22] sm:$0x1] %v1305_v30 }
 0x156 PF: > { %s18_s24 = sadd.s32 1, %s1834_s24  }
 0x157   : > { %p15_p4 = scmp.ge.s32.totalorder %s18_s24, 4  }
 0x159   :  { %17 = sbr.rel (!%p15_p4) target bundleno = 1 (0x1), region = 96 }

</bundles_post_ra>
